<compile_context>
chip_gen: v5e
topology: v5e:2x2
jax: 0.10.0
libtpu: 0.0.40
codegen_flags: <defaults>
</compile_context>

<pallas_src>
import math

import jax
import jax.numpy as jnp
from jax.experimental import pallas as pl
from jax.experimental.pallas import tpu as pltpu


def _make_gnn_kernel(step, H, mm_dtype):
    """Kernel over one batch tile (M = b_tile * n flattened node rows)."""

    def dot(a, b):
        return jnp.dot(a, b, preferred_element_type=jnp.float32)

    def kernel(a_in_ref, a_out_ref, h_ref,
               w_ein_t_ref, w_eout_t_ref,
               b_ein_ref, b_eout_ref, b_iah_ref, b_oah_ref,
               wih_in_t_ref, wih_out_t_ref, whh_t_ref,
               b_ih_ref, b_hh_ref,
               out_ref):
        # --- loop-invariant loads, hoisted out of the step loop ---
        a_in = a_in_ref[0]                 # (M, M) block-diag adjacency (mm_dtype)
        a_out = a_out_ref[0]               # (M, M)
        w_ein_t = w_ein_t_ref[...]         # (H, H)   mm_dtype
        w_eout_t = w_eout_t_ref[...]       # (H, H)
        wih_in_t = wih_in_t_ref[...]       # (H, 3H)
        wih_out_t = wih_out_t_ref[...]     # (H, 3H)
        whh_t = whh_t_ref[...]             # (H, 3H)
        b_ein = b_ein_ref[...]             # (1, H)   f32
        b_eout = b_eout_ref[...]           # (1, H)
        b_iah = b_iah_ref[...]             # (1, H)
        b_oah = b_oah_ref[...]             # (1, H)
        b_ih = b_ih_ref[...]               # (1, 3H)
        b_hh = b_hh_ref[...]               # (1, 3H)

        def cell(h):                       # h: (M, H) f32 state
            h_mm = h.astype(mm_dtype)
            # Edge linears, kept separate (no (M, 2H) concat / lane-offset slices).
            h_ein = dot(h_mm, w_ein_t) + b_ein                       # (M, H) f32
            h_eout = dot(h_mm, w_eout_t) + b_eout                    # (M, H) f32
            # Block-diagonal adjacency aggregation: one dense matmul per direction.
            inp_in = dot(a_in, h_ein.astype(mm_dtype)) + b_iah       # (M, H) f32
            inp_out = dot(a_out, h_eout.astype(mm_dtype)) + b_oah    # (M, H) f32
            # Gate projections fused along N (3H lanes -> fewer MXU pushes).
            gi = (dot(inp_in.astype(mm_dtype), wih_in_t)
                  + dot(inp_out.astype(mm_dtype), wih_out_t) + b_ih)  # (M, 3H) f32
            gh = dot(h_mm, whh_t) + b_hh                              # (M, 3H) f32
            r = jax.nn.sigmoid(gi[:, :H] + gh[:, :H])
            z = jax.nn.sigmoid(gi[:, H:2 * H] + gh[:, H:2 * H])
            ng = jnp.tanh(gi[:, 2 * H:] + r * gh[:, 2 * H:])
            return ng + z * (h - ng)

        h = h_ref[...]
        if step <= 4:
            for _ in range(step):          # short unroll: fine for LLO scheduling
                h = cell(h)
        else:                              # bound live ranges for long propagation
            h = jax.lax.fori_loop(0, step, lambda _, hh: cell(hh), h, unroll=2)

        out_ref[...] = h

    return kernel


def attention_gnn_forward(A, hidden, params, step=1, b_tile=None, use_bf16=True):
    """GRU-style gated GNN forward. A: (B, n, 2n), hidden: (B, n, H)."""
    A = jnp.asarray(A, jnp.float32)
    hidden = jnp.asarray(hidden, jnp.float32)
    B, n, H = hidden.shape
    assert A.shape == (B, n, 2 * n)
    mm_dtype = jnp.bfloat16 if use_bf16 else jnp.float32

    # ---- batch-tile selection: fill MXU rows, keep >=2 tiles for v7x megacore ----
    if b_tile is None:
        b_tile = max(1, 256 // max(n, 1))        # aim M = b_tile*n ~ 256
        if b_tile >= B:
            b_tile = max(1, -(-B // 2))          # split into two tiles when possible
    b_tile = max(1, min(b_tile, B))
    if b_tile < B and (b_tile * n) % 8 != 0:
        b_tile = B                               # single full tile -> block == array dims
    n_tiles = -(-B // b_tile)
    B_pad = n_tiles * b_tile
    M = b_tile * n

    a_in = A[:, :, :n]
    a_out = A[:, :, n:]
    hidden_p = hidden
    if B_pad != B:
        pad = B_pad - B
        a_in = jnp.pad(a_in, ((0, pad), (0, 0), (0, 0)))
        a_out = jnp.pad(a_out, ((0, pad), (0, 0), (0, 0)))
        hidden_p = jnp.pad(hidden, ((0, pad), (0, 0), (0, 0)))
    h_flat = hidden_p.reshape(B_pad * n, H)      # node-major flattened rows

    # ---- block-diagonal adjacency per batch tile (cheap XLA glue, off hot path) ----
    eye = jnp.eye(b_tile, dtype=mm_dtype)

    def block_diag(a):                           # (B_pad, n, n) -> (n_tiles, M, M)
        a = a.astype(mm_dtype).reshape(n_tiles, b_tile, n, n)
        return jnp.einsum("tbij,bc->tbicj", a, eye).reshape(n_tiles, M, M)

    a_in_bd = block_diag(a_in)
    a_out_bd = block_diag(a_out)

    # ---- weight / bias preprocessing (plain XLA glue) ----
    f32 = lambda x: jnp.asarray(x, jnp.float32)
    w_ein_t = f32(params["w_edge_in"]).T.astype(mm_dtype)        # (H, H)
    w_eout_t = f32(params["w_edge_out"]).T.astype(mm_dtype)      # (H, H)
    b_ein = f32(params["b_edge_in"]).reshape(1, H)
    b_eout = f32(params["b_edge_out"]).reshape(1, H)
    b_iah = f32(params["b_iah"]).reshape(1, H)
    b_oah = f32(params["b_oah"]).reshape(1, H)

    w_ih = f32(params["w_ih"])                                   # (3H, 2H)
    w_hh = f32(params["w_hh"])                                   # (3H, H)
    wih_in_t = w_ih[:, :H].T.astype(mm_dtype)                    # (H, 3H)
    wih_out_t = w_ih[:, H:].T.astype(mm_dtype)                   # (H, 3H)
    whh_t = w_hh.T.astype(mm_dtype)                              # (H, 3H)
    b_ih = f32(params["b_ih"]).reshape(1, 3 * H)
    b_hh = f32(params["b_hh"]).reshape(1, 3 * H)

    kernel = _make_gnn_kernel(step, H, mm_dtype)
    full2 = lambda i: (0, 0)
    rows2 = lambda i: (i, 0)
    batched3 = lambda i: (i, 0, 0)

    out_flat = pl.pallas_call(
        kernel,
        out_shape=jax.ShapeDtypeStruct((B_pad * n, H), jnp.float32),
        grid_spec=pltpu.PrefetchScalarGridSpec(
            num_scalar_prefetch=0,
            grid=(n_tiles,),
            in_specs=[
                pl.BlockSpec((1, M, M), batched3),      # block-diag A_in tile
                pl.BlockSpec((1, M, M), batched3),      # block-diag A_out tile
                pl.BlockSpec((M, H), rows2),            # hidden (flattened rows)
                pl.BlockSpec((H, H), full2),            # W_edge_in^T
                pl.BlockSpec((H, H), full2),            # W_edge_out^T
                pl.BlockSpec((1, H), full2),            # b_edge_in
                pl.BlockSpec((1, H), full2),            # b_edge_out
                pl.BlockSpec((1, H), full2),            # b_iah
                pl.BlockSpec((1, H), full2),            # b_oah
                pl.BlockSpec((H, 3 * H), full2),        # W_ih[:, :H]^T
                pl.BlockSpec((H, 3 * H), full2),        # W_ih[:, H:]^T
                pl.BlockSpec((H, 3 * H), full2),        # W_hh^T
                pl.BlockSpec((1, 3 * H), full2),        # b_ih
                pl.BlockSpec((1, 3 * H), full2),        # b_hh
            ],
            out_specs=pl.BlockSpec((M, H), rows2),
        ),
        input_output_aliases={2: 0},                    # hidden rows -> output (in place)
        compiler_params=pltpu.CompilerParams(
            dimension_semantics=("parallel",)),
    )(a_in_bd, a_out_bd, h_flat,
      w_ein_t, w_eout_t, b_ein, b_eout, b_iah, b_oah,
      wih_in_t, wih_out_t, whh_t, b_ih, b_hh)

    return out_flat[:B * n].reshape(B, n, H)


# ---------------- pure-JAX reference (mirrors the PyTorch code) ----------------
def _reference(A, hidden, params, step=1):
    n = A.shape[1]
    H = hidden.shape[-1]
    hp = jax.lax.Precision.HIGHEST
    for _ in range(step):
        h_in = jnp.matmul(hidden, params["w_edge_in"].T, precision=hp) + params["b_edge_in"]
        h_out = jnp.matmul(hidden, params["w_edge_out"].T, precision=hp) + params["b_edge_out"]
        input_in = jnp.matmul(A[:, :, :n], h_in, precision=hp) + params["b_iah"]
        input_out = jnp.matmul(A[:, :, n:2 * n], h_out, precision=hp) + params["b_oah"]
        inputs = jnp.concatenate([input_in, input_out], axis=2)
        gi = jnp.matmul(inputs, params["w_ih"].T, precision=hp) + params["b_ih"]
        gh = jnp.matmul(hidden, params["w_hh"].T, precision=hp) + params["b_hh"]
        i_r, i_i, i_n = gi[..., :H], gi[..., H:2 * H], gi[..., 2 * H:]
        h_r, h_i, h_n = gh[..., :H], gh[..., H:2 * H], gh[..., 2 * H:]
        resetgate = jax.nn.sigmoid(i_r + h_r)
        inputgate = jax.nn.sigmoid(i_i + h_i)
        newgate = jnp.tanh(i_n + resetgate * h_n)
        hidden = newgate + inputgate * (hidden - newgate)
    return hidden


def init_params(key, hidden_size):
    H = hidden_size
    stdv = 1.0 / math.sqrt(H)
    keys = jax.random.split(key, 12)
    u = lambda k, shape: jax.random.uniform(k, shape, jnp.float32, -stdv, stdv)
    return {
        "w_ih": u(keys[0], (3 * H, 2 * H)),
        "w_hh": u(keys[1], (3 * H, H)),
        "b_ih": u(keys[2], (3 * H,)),
        "b_hh": u(keys[3], (3 * H,)),
        "b_iah": u(keys[4], (H,)),
        "b_oah": u(keys[5], (H,)),
        "w_edge_in": u(keys[6], (H, H)),
        "b_edge_in": u(keys[7], (H,)),
        "w_edge_out": u(keys[8], (H, H)),
        "b_edge_out": u(keys[9], (H,)),
        # TODO(synk): linear_edge_f exists in __init__ but is unused in forward; kept for parity.
        "w_edge_f": u(keys[10], (H, H)),
        "b_edge_f": u(keys[11], (H,)),
    }


if __name__ == "__main__":
    # B=64, n=8, H=32 -> auto b_tile=32 -> M=256 MXU rows, 2 grid tiles (v7x megacore).
    B, n, H = 64, 8, 32

    key = jax.random.PRNGKey(0)
    k_a, k_h, k_p = jax.random.split(key, 3)
    A = jax.random.uniform(k_a, (B, n, 2 * n), jnp.float32)
    hidden = jax.random.normal(k_h, (B, n, H), jnp.float32)
    params = init_params(k_p, H)

    # f32 MXU operands, step = 1 (module default): tight tolerance.
    out1 = jax.block_until_ready(
        attention_gnn_forward(A, hidden, params, step=1, use_bf16=False))
    ref1 = _reference(A, hidden, params, step=1)
    assert out1.shape == (B, n, H)
    assert jnp.allclose(out1, ref1, atol=1e-3, rtol=1e-3), "mismatch (f32, step=1)"

    # f32, step = 3: propagation loop runs inside the kernel (hidden stays resident).
    out3 = jax.block_until_ready(
        attention_gnn_forward(A, hidden, params, step=3, use_bf16=False))
    ref3 = _reference(A, hidden, params, step=3)
    assert jnp.allclose(out3, ref3, atol=1e-3, rtol=1e-3), "mismatch (f32, step=3)"

    # bf16 MXU operands (f32 accumulation / gate math): relaxed tolerance.
    out_bf = jax.block_until_ready(
        attention_gnn_forward(A, hidden, params, step=1, use_bf16=True))
    assert jnp.allclose(out_bf, ref1, atol=5e-2, rtol=5e-2), "mismatch (bf16, step=1)"

    # step > 4 exercises the lax.fori_loop propagation path.
    out6 = jax.block_until_ready(
        attention_gnn_forward(A, hidden, params, step=6, use_bf16=False))
    ref6 = _reference(A, hidden, params, step=6)
    assert jnp.allclose(out6, ref6, atol=2e-3, rtol=2e-3), "mismatch (f32, step=6)"

    print("KERNEL_OK")
</pallas_src>

<mosaic_0001>
module attributes {stable_mosaic.version = 11 : i64} {
  func.func @kernel(%arg0: i32, %arg1: memref<1x256x256xf32, #tpu.memory_space<vmem>>, %arg2: memref<1x256x256xf32, #tpu.memory_space<vmem>>, %arg3: memref<256x32xf32, #tpu.memory_space<vmem>>, %arg4: memref<32x32xf32, #tpu.memory_space<vmem>>, %arg5: memref<32x32xf32, #tpu.memory_space<vmem>>, %arg6: memref<1x32xf32, #tpu.memory_space<vmem>>, %arg7: memref<1x32xf32, #tpu.memory_space<vmem>>, %arg8: memref<1x32xf32, #tpu.memory_space<vmem>>, %arg9: memref<1x32xf32, #tpu.memory_space<vmem>>, %arg10: memref<32x96xf32, #tpu.memory_space<vmem>>, %arg11: memref<32x96xf32, #tpu.memory_space<vmem>>, %arg12: memref<32x96xf32, #tpu.memory_space<vmem>>, %arg13: memref<1x96xf32, #tpu.memory_space<vmem>>, %arg14: memref<1x96xf32, #tpu.memory_space<vmem>>, %arg15: memref<256x32xf32, #tpu.memory_space<vmem>>) attributes {dimension_semantics = [#tpu.dimension_semantics<parallel>], iteration_bounds = array<i64: 2>, scalar_prefetch = 0 : i64, scratch_operands = 0 : i64, tpu.core_type = #tpu.core_type<tc>, window_params = [{transform_indices = @transform_0, window_bounds = array<i64: 1, 256, 256>}, {transform_indices = @transform_1, window_bounds = array<i64: 1, 256, 256>}, {transform_indices = @transform_2, window_bounds = array<i64: 256, 32>}, {pipeline_mode = #tpu.pipeline_mode<synchronous>, transform_indices = @transform_3, window_bounds = array<i64: 32, 32>}, {pipeline_mode = #tpu.pipeline_mode<synchronous>, transform_indices = @transform_4, window_bounds = array<i64: 32, 32>}, {pipeline_mode = #tpu.pipeline_mode<synchronous>, transform_indices = @transform_5, window_bounds = array<i64: 1, 32>}, {pipeline_mode = #tpu.pipeline_mode<synchronous>, transform_indices = @transform_6, window_bounds = array<i64: 1, 32>}, {pipeline_mode = #tpu.pipeline_mode<synchronous>, transform_indices = @transform_7, window_bounds = array<i64: 1, 32>}, {pipeline_mode = #tpu.pipeline_mode<synchronous>, transform_indices = @transform_8, window_bounds = array<i64: 1, 32>}, {pipeline_mode = #tpu.pipeline_mode<synchronous>, transform_indices = @transform_9, window_bounds = array<i64: 32, 96>}, {pipeline_mode = #tpu.pipeline_mode<synchronous>, transform_indices = @transform_10, window_bounds = array<i64: 32, 96>}, {pipeline_mode = #tpu.pipeline_mode<synchronous>, transform_indices = @transform_11, window_bounds = array<i64: 32, 96>}, {pipeline_mode = #tpu.pipeline_mode<synchronous>, transform_indices = @transform_12, window_bounds = array<i64: 1, 96>}, {pipeline_mode = #tpu.pipeline_mode<synchronous>, transform_indices = @transform_13, window_bounds = array<i64: 1, 96>}, {transform_indices = @transform_14, window_bounds = array<i64: 256, 32>}]} {
    %c0 = arith.constant 0 : index
    %c0_0 = arith.constant 0 : index
    %c0_1 = arith.constant 0 : index
    %0 = vector.load %arg1[%c0, %c0_0, %c0_1] : memref<1x256x256xf32, #tpu.memory_space<vmem>>, vector<1x256x256xf32>
    %1 = vector.shape_cast %0 : vector<1x256x256xf32> to vector<256x256xf32>
    %c0_2 = arith.constant 0 : index
    %c0_3 = arith.constant 0 : index
    %c0_4 = arith.constant 0 : index
    %2 = vector.load %arg2[%c0_2, %c0_3, %c0_4] : memref<1x256x256xf32, #tpu.memory_space<vmem>>, vector<1x256x256xf32>
    %3 = vector.shape_cast %2 : vector<1x256x256xf32> to vector<256x256xf32>
    %c0_5 = arith.constant 0 : index
    %c0_6 = arith.constant 0 : index
    %4 = vector.load %arg4[%c0_5, %c0_6] : memref<32x32xf32, #tpu.memory_space<vmem>>, vector<32x32xf32>
    %c0_7 = arith.constant 0 : index
    %c0_8 = arith.constant 0 : index
    %5 = vector.load %arg5[%c0_7, %c0_8] : memref<32x32xf32, #tpu.memory_space<vmem>>, vector<32x32xf32>
    %c0_9 = arith.constant 0 : index
    %c0_10 = arith.constant 0 : index
    %6 = vector.load %arg10[%c0_9, %c0_10] : memref<32x96xf32, #tpu.memory_space<vmem>>, vector<32x96xf32>
    %c0_11 = arith.constant 0 : index
    %c0_12 = arith.constant 0 : index
    %7 = vector.load %arg11[%c0_11, %c0_12] : memref<32x96xf32, #tpu.memory_space<vmem>>, vector<32x96xf32>
    %c0_13 = arith.constant 0 : index
    %c0_14 = arith.constant 0 : index
    %8 = vector.load %arg12[%c0_13, %c0_14] : memref<32x96xf32, #tpu.memory_space<vmem>>, vector<32x96xf32>
    %c0_15 = arith.constant 0 : index
    %c0_16 = arith.constant 0 : index
    %9 = vector.load %arg6[%c0_15, %c0_16] : memref<1x32xf32, #tpu.memory_space<vmem>>, vector<1x32xf32>
    %c0_17 = arith.constant 0 : index
    %c0_18 = arith.constant 0 : index
    %10 = vector.load %arg7[%c0_17, %c0_18] : memref<1x32xf32, #tpu.memory_space<vmem>>, vector<1x32xf32>
    %c0_19 = arith.constant 0 : index
    %c0_20 = arith.constant 0 : index
    %11 = vector.load %arg8[%c0_19, %c0_20] : memref<1x32xf32, #tpu.memory_space<vmem>>, vector<1x32xf32>
    %c0_21 = arith.constant 0 : index
    %c0_22 = arith.constant 0 : index
    %12 = vector.load %arg9[%c0_21, %c0_22] : memref<1x32xf32, #tpu.memory_space<vmem>>, vector<1x32xf32>
    %c0_23 = arith.constant 0 : index
    %c0_24 = arith.constant 0 : index
    %13 = vector.load %arg13[%c0_23, %c0_24] : memref<1x96xf32, #tpu.memory_space<vmem>>, vector<1x96xf32>
    %c0_25 = arith.constant 0 : index
    %c0_26 = arith.constant 0 : index
    %14 = vector.load %arg14[%c0_25, %c0_26] : memref<1x96xf32, #tpu.memory_space<vmem>>, vector<1x96xf32>
    %c0_27 = arith.constant 0 : index
    %c0_28 = arith.constant 0 : index
    %15 = vector.load %arg3[%c0_27, %c0_28] : memref<256x32xf32, #tpu.memory_space<vmem>>, vector<256x32xf32>
    %cst = arith.constant dense<0.000000e+00> : vector<256x32xf32>
    %16 = tpu.matmul %15, %4, %cst {dimension_numbers = #tpu.dot_dimension_numbers<[1], [0], [0], [1], [0, 0, 1, 1], [], []>} : vector<256x32xf32>, vector<32x32xf32>, vector<256x32xf32> -> vector<256x32xf32>
    %17 = vector.broadcast %9 : vector<1x32xf32> to vector<256x32xf32>
    %18 = arith.addf %16, %17 : vector<256x32xf32>
    %cst_29 = arith.constant dense<0.000000e+00> : vector<256x32xf32>
    %19 = tpu.matmul %15, %5, %cst_29 {dimension_numbers = #tpu.dot_dimension_numbers<[1], [0], [0], [1], [0, 0, 1, 1], [], []>} : vector<256x32xf32>, vector<32x32xf32>, vector<256x32xf32> -> vector<256x32xf32>
    %20 = vector.broadcast %10 : vector<1x32xf32> to vector<256x32xf32>
    %21 = arith.addf %19, %20 : vector<256x32xf32>
    %cst_30 = arith.constant dense<0.000000e+00> : vector<256x32xf32>
    %22 = tpu.matmul %1, %18, %cst_30 {dimension_numbers = #tpu.dot_dimension_numbers<[1], [0], [0], [1], [0, 0, 1, 1], [], []>} : vector<256x256xf32>, vector<256x32xf32>, vector<256x32xf32> -> vector<256x32xf32>
    %23 = vector.broadcast %11 : vector<1x32xf32> to vector<256x32xf32>
    %24 = arith.addf %22, %23 : vector<256x32xf32>
    %cst_31 = arith.constant dense<0.000000e+00> : vector<256x32xf32>
    %25 = tpu.matmul %3, %21, %cst_31 {dimension_numbers = #tpu.dot_dimension_numbers<[1], [0], [0], [1], [0, 0, 1, 1], [], []>} : vector<256x256xf32>, vector<256x32xf32>, vector<256x32xf32> -> vector<256x32xf32>
    %26 = vector.broadcast %12 : vector<1x32xf32> to vector<256x32xf32>
    %27 = arith.addf %25, %26 : vector<256x32xf32>
    %cst_32 = arith.constant dense<0.000000e+00> : vector<256x96xf32>
    %28 = tpu.matmul %24, %6, %cst_32 {dimension_numbers = #tpu.dot_dimension_numbers<[1], [0], [0], [1], [0, 0, 1, 1], [], []>} : vector<256x32xf32>, vector<32x96xf32>, vector<256x96xf32> -> vector<256x96xf32>
    %cst_33 = arith.constant dense<0.000000e+00> : vector<256x96xf32>
    %29 = tpu.matmul %27, %7, %cst_33 {dimension_numbers = #tpu.dot_dimension_numbers<[1], [0], [0], [1], [0, 0, 1, 1], [], []>} : vector<256x32xf32>, vector<32x96xf32>, vector<256x96xf32> -> vector<256x96xf32>
    %30 = arith.addf %28, %29 : vector<256x96xf32>
    %31 = vector.broadcast %13 : vector<1x96xf32> to vector<256x96xf32>
    %32 = arith.addf %30, %31 : vector<256x96xf32>
    %cst_34 = arith.constant dense<0.000000e+00> : vector<256x96xf32>
    %33 = tpu.matmul %15, %8, %cst_34 {dimension_numbers = #tpu.dot_dimension_numbers<[1], [0], [0], [1], [0, 0, 1, 1], [], []>} : vector<256x32xf32>, vector<32x96xf32>, vector<256x96xf32> -> vector<256x96xf32>
    %34 = vector.broadcast %14 : vector<1x96xf32> to vector<256x96xf32>
    %35 = arith.addf %33, %34 : vector<256x96xf32>
    %36 = vector.extract_strided_slice %32 {offsets = [0, 0], sizes = [256, 32], strides = [1, 1]} : vector<256x96xf32> to vector<256x32xf32>
    %37 = vector.extract_strided_slice %35 {offsets = [0, 0], sizes = [256, 32], strides = [1, 1]} : vector<256x96xf32> to vector<256x32xf32>
    %38 = arith.addf %36, %37 : vector<256x32xf32>
    %39 = arith.negf %38 : vector<256x32xf32>
    %40 = math.exp %39 : vector<256x32xf32>
    %cst_35 = arith.constant 1.000000e+00 : f32
    %41 = vector.broadcast %cst_35 : f32 to vector<256x32xf32>
    %42 = arith.addf %41, %40 : vector<256x32xf32>
    %43 = arith.divf %41, %42 : vector<256x32xf32>
    %44 = vector.extract_strided_slice %32 {offsets = [0, 32], sizes = [256, 32], strides = [1, 1]} : vector<256x96xf32> to vector<256x32xf32>
    %45 = vector.extract_strided_slice %35 {offsets = [0, 32], sizes = [256, 32], strides = [1, 1]} : vector<256x96xf32> to vector<256x32xf32>
    %46 = arith.addf %44, %45 : vector<256x32xf32>
    %47 = arith.negf %46 : vector<256x32xf32>
    %48 = math.exp %47 : vector<256x32xf32>
    %cst_36 = arith.constant 1.000000e+00 : f32
    %49 = vector.broadcast %cst_36 : f32 to vector<256x32xf32>
    %50 = arith.addf %49, %48 : vector<256x32xf32>
    %51 = arith.divf %49, %50 : vector<256x32xf32>
    %52 = vector.extract_strided_slice %32 {offsets = [0, 64], sizes = [256, 32], strides = [1, 1]} : vector<256x96xf32> to vector<256x32xf32>
    %53 = vector.extract_strided_slice %35 {offsets = [0, 64], sizes = [256, 32], strides = [1, 1]} : vector<256x96xf32> to vector<256x32xf32>
    %54 = arith.mulf %43, %53 : vector<256x32xf32>
    %55 = arith.addf %52, %54 : vector<256x32xf32>
    %56 = math.tanh %55 : vector<256x32xf32>
    %57 = arith.subf %15, %56 : vector<256x32xf32>
    %58 = arith.mulf %51, %57 : vector<256x32xf32>
    %59 = arith.addf %56, %58 : vector<256x32xf32>
    %c0_37 = arith.constant 0 : index
    %c0_38 = arith.constant 0 : index
    %60 = vector.load %arg15[%c0_37, %c0_38] : memref<256x32xf32, #tpu.memory_space<vmem>>, vector<256x32xf32>
    tpu.vector_store %arg15[%c0_37, %c0_38], %59 {strides = array<i32>} : memref<256x32xf32, #tpu.memory_space<vmem>>, vector<256x32xf32>,
    return
  }
  func.func @transform_0(%arg0: i32) -> (i32, i32, i32) {
    %c0_i32 = arith.constant 0 : i32
    %c0_i32_0 = arith.constant 0 : i32
    %c0_i32_1 = arith.constant 0 : i32
    return %arg0, %c0_i32, %c0_i32_0 : i32, i32, i32
  }
  func.func @transform_1(%arg0: i32) -> (i32, i32, i32) {
    %c0_i32 = arith.constant 0 : i32
    %c0_i32_0 = arith.constant 0 : i32
    %c0_i32_1 = arith.constant 0 : i32
    return %arg0, %c0_i32, %c0_i32_0 : i32, i32, i32
  }
  func.func @transform_2(%arg0: i32) -> (i32, i32) {
    %c0_i32 = arith.constant 0 : i32
    %c0_i32_0 = arith.constant 0 : i32
    return %arg0, %c0_i32 : i32, i32
  }
  func.func @transform_3(%arg0: i32) -> (i32, i32) {
    %c0_i32 = arith.constant 0 : i32
    %c0_i32_0 = arith.constant 0 : i32
    %c0_i32_1 = arith.constant 0 : i32
    return %c0_i32, %c0_i32_0 : i32, i32
  }
  func.func @transform_4(%arg0: i32) -> (i32, i32) {
    %c0_i32 = arith.constant 0 : i32
    %c0_i32_0 = arith.constant 0 : i32
    %c0_i32_1 = arith.constant 0 : i32
    return %c0_i32, %c0_i32_0 : i32, i32
  }
  func.func @transform_5(%arg0: i32) -> (i32, i32) {
    %c0_i32 = arith.constant 0 : i32
    %c0_i32_0 = arith.constant 0 : i32
    %c0_i32_1 = arith.constant 0 : i32
    return %c0_i32, %c0_i32_0 : i32, i32
  }
  func.func @transform_6(%arg0: i32) -> (i32, i32) {
    %c0_i32 = arith.constant 0 : i32
    %c0_i32_0 = arith.constant 0 : i32
    %c0_i32_1 = arith.constant 0 : i32
    return %c0_i32, %c0_i32_0 : i32, i32
  }
  func.func @transform_7(%arg0: i32) -> (i32, i32) {
    %c0_i32 = arith.constant 0 : i32
    %c0_i32_0 = arith.constant 0 : i32
    %c0_i32_1 = arith.constant 0 : i32
    return %c0_i32, %c0_i32_0 : i32, i32
  }
  func.func @transform_8(%arg0: i32) -> (i32, i32) {
    %c0_i32 = arith.constant 0 : i32
    %c0_i32_0 = arith.constant 0 : i32
    %c0_i32_1 = arith.constant 0 : i32
    return %c0_i32, %c0_i32_0 : i32, i32
  }
  func.func @transform_9(%arg0: i32) -> (i32, i32) {
    %c0_i32 = arith.constant 0 : i32
    %c0_i32_0 = arith.constant 0 : i32
    %c0_i32_1 = arith.constant 0 : i32
    return %c0_i32, %c0_i32_0 : i32, i32
  }
  func.func @transform_10(%arg0: i32) -> (i32, i32) {
    %c0_i32 = arith.constant 0 : i32
    %c0_i32_0 = arith.constant 0 : i32
    %c0_i32_1 = arith.constant 0 : i32
    return %c0_i32, %c0_i32_0 : i32, i32
  }
  func.func @transform_11(%arg0: i32) -> (i32, i32) {
    %c0_i32 = arith.constant 0 : i32
    %c0_i32_0 = arith.constant 0 : i32
    %c0_i32_1 = arith.constant 0 : i32
    return %c0_i32, %c0_i32_0 : i32, i32
  }
  func.func @transform_12(%arg0: i32) -> (i32, i32) {
    %c0_i32 = arith.constant 0 : i32
    %c0_i32_0 = arith.constant 0 : i32
    %c0_i32_1 = arith.constant 0 : i32
    return %c0_i32, %c0_i32_0 : i32, i32
  }
  func.func @transform_13(%arg0: i32) -> (i32, i32) {
    %c0_i32 = arith.constant 0 : i32
    %c0_i32_0 = arith.constant 0 : i32
    %c0_i32_1 = arith.constant 0 : i32
    return %c0_i32, %c0_i32_0 : i32, i32
  }
  func.func @transform_14(%arg0: i32) -> (i32, i32) {
    %c0_i32 = arith.constant 0 : i32
    %c0_i32_0 = arith.constant 0 : i32
    return %arg0, %c0_i32 : i32, i32
  }
}

</mosaic_0001>

<bundles_post_ra>
// kernel: tpu_custom_call.1
= control target key start
LH: loop header
LB: loop body
LE: loop exit
PB: predicated region body
PF: predicated region fallthrough
CT: control target
= control target key end

     0   :  { %s7259_s0 = inlined_call_operand.hbm [shape: f32[2,256,256], index: 0, kind: input, shape index: {}]   ;;  %s7260_s1 = inlined_call_operand.hbm [shape: f32[2,256,256], index: 1, kind: input, shape index: {}]   ;;  %s7261_s2 = inlined_call_operand.vmem [shape: f32[512,32], index: 2, kind: input, shape index: {}, may-alias: {2,14}]   ;;  %s7262_s3 = inlined_call_operand.vmem [shape: f32[32,32], index: 3, kind: input, shape index: {}]   ;;  %s7263_s4 = inlined_call_operand.vmem [shape: f32[32,32], index: 4, kind: input, shape index: {}]   ;;  %s7264_s5 = inlined_call_operand.vmem [shape: f32[1,32], index: 5, kind: input, shape index: {}]   ;;  %s7265_s6 = inlined_call_operand.vmem [shape: f32[1,32], index: 6, kind: input, shape index: {}]   ;;  %s7266_s7 = inlined_call_operand.vmem [shape: f32[1,32], index: 7, kind: input, shape index: {}]   ;;  %s7267_s8 = inlined_call_operand.vmem [shape: f32[1,32], index: 8, kind: input, shape index: {}]   ;;  %s7268_s9 = inlined_call_operand.vmem [shape: f32[32,96], index: 9, kind: input, shape index: {}]   ;;  %s7269_s10 = inlined_call_operand.vmem [shape: f32[32,96], index: 10, kind: input, shape index: {}]   ;;  %s7270_s11 = inlined_call_operand.vmem [shape: f32[32,96], index: 11, kind: input, shape index: {}]   ;;  %s7271_s12 = inlined_call_operand.vmem [shape: f32[1,96], index: 12, kind: input, shape index: {}]   ;;  %s7272_s13 = inlined_call_operand.vmem [shape: f32[1,96], index: 13, kind: input, shape index: {}]   ;;  %s7273_s14 = inlined_call_operand.vmem [shape: f32[512,32], index: 14, kind: output, shape index: {}, may-alias: {2,14}]  }
   0x1   :  { %7304 = sst [smem:[#allocation33_spill]] %s7259_s0 }
   0x2   :  { %7305 = sst [smem:[#allocation34_spill]] %s7267_s8 }
   0x3   :  { %7306 = sst [smem:[#allocation35_spill]] %s7271_s12 }
   0x4   :  { %7307 = sst [smem:[#allocation36_spill]] %s7272_s13 }
   0x5   :  { %7308 = sst [smem:[#allocation37_spill]] %s7273_s14 }
   0x6   :  { %19 = vsyncpa [#allocation3], 0 }
   0x7   :  { %21 = vsyncpa [#allocation3 + $0x1], 0 }
   0x8   :  { %22 = vsyncpa [#allocation5], 0 }
   0x9   :  { %24 = vsyncpa [#allocation5 + $0x1], 0  ;;  %s4563_s29 = smov 0   ;;  %s4565_s30 = smov 0  }
   0xa   :  { %s4567_s15 = smov 0   ;;  %s4569_s16 = smov 0  }
   0xb LB: > { %7309 = sst [smem:[#allocation8_spill]] %s4478_s15  ;;  %s7274_s17 = sadd.s32 4294967295, %s4482_s16   ;;  %s4482_s16 = sphi %s4569_s16, %s7400_s16   ;;  %s4478_s15 = sphi %s4567_s15, %s7402_s15   ;;  %s4474_s30 = sphi %s4565_s30, %s7404_s30   ;;  %s4470_s29 = sphi %s4563_s29, %s7403_s29  }
   0xc   : > { %s4583_s18 = sadd.s32 1, %s4482_s16   ;;  %s37_s20 = sadd.s32 1, %s4478_s15 }
   0xd   : > { %7310 = sst [smem:[#allocation9_spill]] %s4583_s18  ;;  %s34_s19 = ssub.s32 %s4482_s16, %s4583_s18 }
   0xe   : > { %p35_p0 = scmp.eq.s32.totalorder %s34_s19, 0  ;;  %p44_p1 = scmp.ne.s32.totalorder %s4478_s15, %s4474_s30 }
   0xf   : > { %p45_p2 = scmp.eq.s32.totalorder %s4482_s16, 0  ;;  %p50_p3 = scmp.ne.s32.totalorder %s4474_s30, %s4470_s29 }
  0x10   : > { %s4593_s21 = scalar_select %p35_p0, %s4478_s15, %s37_s20  }
  0x11   : > { %p4595_p4 = por %p45_p2, %p44_p1  ;;  %p51_p5 = scmp.eq.s32.totalorder %s7274_s17, 0 }
  0x12   : > { %7311 = sst [smem:[#allocation10_spill]] %s4593_s21  ;;  %p4083_p6 = scmp.lt.s32.totalorder %s4482_s16, 2 }
  0x13   : > { %p4602_p7 = por %p51_p5, %p50_p3  ;;  %s4607_s24 = sand.u32 1, %s4478_s15  }
  0x14   : > { %s7278_s25 = sshll.u32 %s4607_s24, 9  ;;  %s7279_s26 = sshll.u32 %s4482_s16, 9 }
  0x15   : > { %s7314_s0 = sld [smem:[#allocation33_spill]]  ;;  %s420_s19 = scalar_lea.vmem [#allocation2], %s7278_s25 }
  0x16   : > { %s428_s20 = sshll.u32 %s420_s19, 4  ;;  %p4620_p8 = pnand %p4083_p6, %p4595_p4  ;;  %s429_s20 = int_to_ptr.vmem [resolvable:$true] %s428_s20 }
  0x17   : > { %p3841_p9 = scmp.ge.s32.totalorder %s4482_s16, 1  ;;  %s417_s15 = scalar_lea.sflag [#allocation3], %s4607_s24 }
  0x18   : > { %p4388_p11 = pneg %p4620_p8 }
  0x1b   : > { %s425_s29 = scalar_lea.hbm %s7314_s0, %s7279_s26  ;;  %s4391_s28 = scalar_lea.hbm %s7314_s0, 1024 }
  0x1c   : > { %s426_s17 = sshll.u32 %s425_s29, 4  ;;  %s427_s17 = int_to_ptr.hbm [resolvable:$true] %s426_s17 }
  0x1d   : > { %s4384_s18 = sshra.s32 %s427_s17, 4  ;;  %s4385_s18 = int_to_ptr.hbm [resolvable:$true] %s4384_s18 }
  0x1e   : > { %s4386_s14 = scalar_lea.hbm %s4385_s18, 512  ;;  %p4392_p0 = scmp.lt.s32.totalorder %s4385_s18, %s7314_s0 }
  0x1f   : > { %p4387_p10 = scmp.ne.s32.totalorder %s4385_s18, %s4386_s14  ;;  %p4393_p1 = scmp.lt.s32.totalorder %s4391_s28, %s4386_s14 }
  0x21   : > { %p4389_p12 = pnand %p4388_p11, %p4387_p10  ;;  %p4394_p2 = por %p4393_p1, %p4392_p0 }
  0x23   : > { %p4390_p13 = pneg %p4389_p12 }
  0x25   : > { %p4395_p3 = pnand %p4394_p2, %p4390_p13 }
  0x27   : > { %4398 = shalt.err (!%p4395_p3)
}
  0x28   : > { %s4484_s25 = smov 256   ;;  %s4485_s26 = smov 16  }
  0x29   : > { %4079 = dma.hbm_to_vmem [thread:$0]  (!%p4620_p8), %s427_s17, 8192, %s429_s20, %s417_s15, %s4484_s25, %s4484_s25, %s4485_s26  }
  0x2a   : > { %p467_p4 = scmp.lt.s32.totalorder %s4482_s16, 3  ;;  %s7316_s27 = sshll.u32 %s4482_s16, 9 }
  0x2b   : > { %s447_s14 = scalar_lea.hbm %s7260_s1, %s7316_s27  ;;  %s7318_s19 = sshll.u32 %s4607_s24, 9 }
  0x2c   : > { %p4647_p5 = pnand %p3841_p9, %p467_p4  ;;  %s448_s28 = sshll.u32 %s447_s14, 4  ;;  %s449_s28 = int_to_ptr.hbm [resolvable:$true] %s448_s28 }
  0x2d   : > { %s442_s0 = scalar_lea.vmem [#allocation4], %s7318_s19  ;;  %s439_s13 = scalar_lea.sflag [#allocation5], %s4607_s24 }
  0x2e   : > { %s450_s12 = sshll.u32 %s442_s0, 4  ;;  %s4414_s8 = sshra.s32 %s449_s28, 4  ;;  %s451_s12 = int_to_ptr.vmem [resolvable:$true] %s450_s12  ;;  %s4415_s8 = int_to_ptr.hbm [resolvable:$true] %s4414_s8 }
  0x2f   : > { %s4416_s15 = scalar_lea.hbm %s4415_s8, 512  ;;  %s4421_s27 = scalar_lea.hbm %s7260_s1, 1024 }
  0x30   : > { %p4417_p6 = scmp.ne.s32.totalorder %s4415_s8, %s4416_s15  ;;  %p4422_p9 = scmp.lt.s32.totalorder %s4415_s8, %s7260_s1 }
  0x31   : > { %p4423_p13 = scmp.lt.s32.totalorder %s4421_s27, %s4416_s15 }
  0x32   : > { %p4419_p10 = pnand %p4417_p6, %p4388_p11 }
  0x33   : > { %p4424_p0 = por %p4423_p13, %p4422_p9 }
  0x34   : > { %p4420_p12 = pneg %p4419_p10 }
  0x36   : > { %p4425_p1 = pnand %p4424_p0, %p4420_p12 }
  0x38   : > { %4428 = shalt.err (!%p4425_p1)
}
  0x39   : > { %4082 = dma.hbm_to_vmem [thread:$0]  (!%p4620_p8), %s449_s28, 8192, %s451_s12, %s439_s13, %s4484_s25, %s4484_s25, %s4485_s26  }
  0x3a   : > { %471 = sbr.rel (%p4647_p5) target bundleno = 1711 (0x6af), region = 76 }
  0x3f   : > { %s473_s0 = sand.u32 1, %s4474_s30  }
  0x40   : > { %s3842_s24 = sshll.u32 %s473_s0, 9  ;;  %s474_s14 = scalar_lea.sflag [#allocation3], %s473_s0 }
  0x41   : > { %s4668_s19 = scalar_lea.vmem [#allocation2], %s3842_s24 }
  0x42   : > { %4461 = dma.done.wait (%p4602_p7), %s474_s14, 8192  }
  0x43   : > { %4463 = vsyncadd (%p4602_p7), %s474_s14, 4294959104  ;;  %s484_s8 = scalar_lea.sflag [#allocation5], %s473_s0  ;;  %s4674_s15 = scalar_lea.vmem [#allocation4], %s3842_s24 }
  0x44   : > { %4465 = dma.done.wait (%p4602_p7), %s484_s8, 8192  }
  0x45   : > { %4467 = vsyncadd (%p4602_p7), %s484_s8, 4294959104  ;;  %s7319_s12 = sadd.s32 4294967295, %s4482_s16   ;;  %v686_v0 = vld [vmem:[%s7262_s3 + $0x18] sm:$0xff]  ;;  %v685_v1 = vld [vmem:[%s7262_s3 + $0x10] sm:$0xff]  ;;  %vm744_vm0 = vcmask 261120   ;;  %s7320_s23 = sld [smem:[#allocation34_spill]] }
  0x46   : > { %s3844_s13 = sshll.u32 %s7319_s12, 5  ;;  %4044 = vmatpush.msra.mxu1 %v686_v0  ;;  %4045 = vmatpush.msra.mxu2 %v686_v0  ;;  %v684_v2 = vld [vmem:[%s7262_s3 + $0x8] sm:$0xff]  ;;  %v683_v3 = vld [vmem:[%s7262_s3] sm:$0xff]  ;;  %v690_v19 = vld [vmem:[%s7263_s4 + $0x18] sm:$0xff]  ;;  %s7321_s27 = sld [smem:[#allocation36_spill]] }
  0x47   : > { %p544_p8 = scmp.lt.s32.totalorder %s3844_s13, 63  ;;  %4046 = vmatpush.msra.mxu3 %v686_v0  ;;  %853 = vmatpush.msra.mxu0 %v686_v0  ;;  %v689_v20 = vld [vmem:[%s7263_s4 + $0x10] sm:$0xff]  ;;  %v688_v22 = vld [vmem:[%s7263_s4 + $0x8] sm:$0xff]  ;;  %v687_v23 = vld [vmem:[%s7263_s4] sm:$0xff]  ;;  %s4486_s22 = smov 64  }
  0x48   : > { %4047 = vmatpush.msra.mxu1 %v685_v1  ;;  %4048 = vmatpush.msra.mxu2 %v685_v1  ;;  %v4865_v54 = vld [vmem:[%s7264_s5] ss:$0 sm:$0xff]  ;;  %s7322_s0 = sld [smem:[#allocation35_spill]]  ;;  %s4487_s12 = smov 32  }
  0x49   : > { %s7406_s13 = smov (!%p544_p8, %s3844_s13), 63  ;;  %4049 = vmatpush.msra.mxu3 %v685_v1  ;;  %854 = vmatpush.msra.mxu0 %v685_v1  ;;  %s7399_s26 = sld [smem:[#allocation37_spill]] }
  0x4a   : > { %s3845_s21 = sshll.u32 %s7406_s13, 3  ;;  %4050 = vmatpush.msra.mxu1 %v684_v2  ;;  %4051 = vmatpush.msra.mxu2 %v684_v2 }
  0x4b   : > { %s4696_s17 = scalar_lea.vmem %s7261_s2, %s3845_s21  ;;  %4052 = vmatpush.msra.mxu3 %v684_v2  ;;  %855 = vmatpush.msra.mxu0 %v684_v2 }
  0x4c   : > { %v4705_v4 = vld [vmem:[%s4696_s17 + $0x50] sm:$0xff]  ;;  %v4708_v5 = vld [vmem:[%s4696_s17 + $0x98] sm:$0xff]  ;;  %4053 = vmatpush.msra.mxu1 %v683_v3  ;;  %4054 = vmatpush.msra.mxu2 %v683_v3  ;;  %v4723_v8 = vld [vmem:[%s4696_s17 + $0xa0] sm:$0xff] }
  0x4d   : > { %v4711_v6 = vld [vmem:[%s4696_s17 + $0xd8] sm:$0xff]  ;;  %3858 = vmatmul.msk.f32.vlgmr.msra.gmra.mxu1 %vm744_vm0, %v4705_v4  ;;  %3867 = vmatmul.msk.f32.vlgmr.msra.gmra.mxu2 %vm744_vm0, %v4708_v5  ;;  %v4726_v9 = vld [vmem:[%s4696_s17 + $0xe0] sm:$0xff]  ;;  %v4738_v11 = vld [vmem:[%s4696_s17 + $0xa8] sm:$0xff] }
  0x4e   : > { %4055 = vmatpush.msra.mxu3 %v683_v3  ;;  %856 = vmatpush.msra.mxu0 %v683_v3  ;;  %v4720_v7 = vld [vmem:[%s4696_s17 + $0x58] sm:$0xff]  ;;  %v4735_v10 = vld [vmem:[%s4696_s17 + $0x60] sm:$0xff]  ;;  %v4741_v12 = vld [vmem:[%s4696_s17 + $0xe8] sm:$0xff] }
  0x4f   : > { %3875 = vmatmul.msk.f32.vlgmr.msra.gmra.mxu3 %vm744_vm0, %v4711_v6  ;;  %v4750_v13 = vld [vmem:[%s4696_s17 + $0x68] sm:$0xff]  ;;  %v4753_v14 = vld [vmem:[%s4696_s17 + $0xb0] sm:$0xff]  ;;  %v4768_v17 = vld [vmem:[%s4696_s17 + $0xb8] sm:$0xff]  ;;  %969 = vmatpush.msrb.mxu1 %v690_v19  ;;  %s7138_s18 = scalar_lea.vmem %s7399_s26, %s3845_s21 }
  0x50   : > { %v4756_v15 = vld [vmem:[%s4696_s17 + $0xf0] sm:$0xff]  ;;  %v4771_v18 = vld [vmem:[%s4696_s17 + $0xf8] sm:$0xff]  ;;  %v709_v21 = vld [vmem:[%s4696_s17] sm:$0xff] }
  0x51   : > { %v4765_v16 = vld [vmem:[%s4696_s17 + $0x70] sm:$0xff]  ;;  %3848 = vmatmul.msk.f32.vlgmr.msra.gmra.mxu0 %vm744_vm0, %v709_v21  ;;  %970 = vmatpush.msrb.mxu1 %v689_v20  ;;  %v4794_v24 = vld [vmem:[%s4696_s17 + $0x78] sm:$0xff]  ;;  %v4797_v25 = vld [vmem:[%s4696_s17 + $0xc0] sm:$0xff] }
  0x52   : > { %v710_v26 = vld [vmem:[%s4696_s17 + $0x8] sm:$0xff]  ;;  %v4806_v27 = vld [vmem:[%s4696_s17 + $0x80] sm:$0xff]  ;;  %v711_v29 = vld [vmem:[%s4696_s17 + $0x10] sm:$0xff] }
  0x53   : > { %971 = vmatpush.msrb.mxu1 %v688_v22  ;;  %v4809_v28 = vld [vmem:[%s4696_s17 + $0xc8] sm:$0xff]  ;;  %v4821_v31 = vld [vmem:[%s4696_s17 + $0xd0] sm:$0xff]  ;;  %v712_v32 = vld [vmem:[%s4696_s17 + $0x18] sm:$0xff] }
  0x54   : > { %v4818_v30 = vld [vmem:[%s4696_s17 + $0x88] sm:$0xff]  ;;  %v4830_v33 = vld [vmem:[%s4696_s17 + $0x90] sm:$0xff]  ;;  %v713_v34 = vld [vmem:[%s4696_s17 + $0x20] sm:$0xff] }
  0x55   : > { %3859 = vmatmul.msk.f32.gmra.mxu1 %vm744_vm0, %v4720_v7  ;;  %3868 = vmatmul.msk.f32.gmra.mxu2 %vm744_vm0, %v4723_v8  ;;  %v714_v35 = vld [vmem:[%s4696_s17 + $0x28] sm:$0xff]  ;;  %v715_v36 = vld [vmem:[%s4696_s17 + $0x30] sm:$0xff]  ;;  %v716_v37 = vld [vmem:[%s4696_s17 + $0x38] sm:$0xff] }
  0x56   : > { %972 = vmatpush.msrb.mxu1 %v687_v23  ;;  %v717_v38 = vld [vmem:[%s4696_s17 + $0x40] sm:$0xff]  ;;  %v718_v39 = vld [vmem:[%s4696_s17 + $0x48] sm:$0xff] }
  0x57   : > { %3876 = vmatmul.msk.f32.gmra.mxu3 %vm744_vm0, %v4726_v9 }
  0x59   : > { %3849 = vmatmul.msk.f32.gmra.mxu0 %vm744_vm0, %v710_v26 }
  0x5d   : > { %3860 = vmatmul.msk.f32.gmra.mxu1 %vm744_vm0, %v4735_v10  ;;  %3869 = vmatmul.msk.f32.gmra.mxu2 %vm744_vm0, %v4738_v11 }
  0x5f   : > { %3877 = vmatmul.msk.f32.gmra.mxu3 %vm744_vm0, %v4741_v12 }
  0x61   : > { %3850 = vmatmul.msk.f32.gmra.mxu0 %vm744_vm0, %v711_v29 }
  0x65   : > { %3861 = vmatmul.msk.f32.gmra.mxu1 %vm744_vm0, %v4750_v13  ;;  %3870 = vmatmul.msk.f32.gmra.mxu2 %vm744_vm0, %v4753_v14 }
  0x67   : > { %3878 = vmatmul.msk.f32.gmra.mxu3 %vm744_vm0, %v4756_v15 }
  0x69   : > { %3851 = vmatmul.msk.f32.gmra.mxu0 %vm744_vm0, %v712_v32 }
  0x6d   : > { %3862 = vmatmul.msk.f32.gmra.mxu1 %vm744_vm0, %v4765_v16  ;;  %3871 = vmatmul.msk.f32.gmra.mxu2 %vm744_vm0, %v4768_v17 }
  0x6f   : > { %3879 = vmatmul.msk.f32.gmra.mxu3 %vm744_vm0, %v4771_v18 }
  0x71   : > { %3852 = vmatmul.msk.f32.gmra.mxu0 %vm744_vm0, %v713_v34 }
  0x75   : > { %3863 = vmatmul.msk.f32.gmra.mxu1 %vm744_vm0, %v4794_v24  ;;  %3872 = vmatmul.msk.f32.gmra.mxu2 %vm744_vm0, %v4797_v25 }
  0x79   : > { %3853 = vmatmul.msk.f32.gmra.mxu0 %vm744_vm0, %v714_v35 }
  0x7d   : > { %3864 = vmatmul.msk.f32.gmra.mxu1 %vm744_vm0, %v4806_v27  ;;  %3873 = vmatmul.msk.f32.gmra.mxu2 %vm744_vm0, %v4809_v28 }
  0x81   : > { %3854 = vmatmul.msk.f32.gmra.mxu0 %vm744_vm0, %v715_v36 }
  0x85   : > { %3865 = vmatmul.msk.f32.gmra.mxu1 %vm744_vm0, %v4818_v30  ;;  %3874 = vmatmul.msk.f32.gmra.mxu2 %vm744_vm0, %v4821_v31 }
  0x89   : > { %3855 = vmatmul.msk.f32.gmra.mxu0 %vm744_vm0, %v716_v37 }
  0x8d   : > { %3866 = vmatmul.msk.f32.gmra.mxu1 %vm744_vm0, %v4830_v33 }
  0x91   : > { %3856 = vmatmul.msk.f32.gmra.mxu0 %vm744_vm0, %v717_v38 }
  0x95   : > { %3880 = vmatmul.msk.f32.vlgmr.msrb.gmra.mxu1 %vm744_vm0, %v709_v21 }
  0x99   : > { %3857 = vmatmul.msk.f32.gmra.mxu0 %vm744_vm0, %v718_v39 }
  0x9d   : > { %3881 = vmatmul.msk.f32.gmra.mxu1 %vm744_vm0, %v710_v26 }
  0xa5   : > { %3882 = vmatmul.msk.f32.gmra.mxu1 %vm744_vm0, %v711_v29 }
  0xad   : > { %3883 = vmatmul.msk.f32.gmra.mxu1 %vm744_vm0, %v712_v32 }
  0xb5   : > { %3884 = vmatmul.msk.f32.gmra.mxu1 %vm744_vm0, %v713_v34 }
  0xbd   : > { %3885 = vmatmul.msk.f32.gmra.mxu1 %vm744_vm0, %v714_v35 }
  0xc5   : > { %3886 = vmatmul.msk.f32.gmra.mxu1 %vm744_vm0, %v715_v36 }
  0xca   : > { %v888_v40 = vpop.f32.mrf.mxu1 }
  0xcd   : > { %3887 = vmatmul.msk.f32.gmra.mxu1 %vm744_vm0, %v716_v37 }
  0xce   : > { %v4891_v32 = vpop.f32.mrf.mxu0 }
  0xd0   : > { %v4854_v41 = vpop.f32.mrf.mxu2 }
  0xd2   : > { %v891_v42 = vpop.f32.mrf.mxu1  ;;  %v939_v43 = vpop.f32.mrf.mxu3 }
  0xd3   : > { %v940_v3 = vadd.f32 %v4865_v54, %v939_v43 }
  0xd5   : > { %3888 = vmatmul.msk.f32.gmra.mxu1 %vm744_vm0, %v717_v38 }
  0xd6   : > { %v4901_v36 = vpop.f32.mrf.mxu0 }
  0xd8   : > { %v918_v44 = vpop.f32.mrf.mxu2 }
  0xd9   : > { %v919_v35 = vadd.f32 %v4865_v54, %v918_v44  ;;  %v556_v44 = vld [vmem:[%s4668_s19 + $0x8] sm:$0xff] }
  0xda   : > { %v894_v45 = vpop.f32.mrf.mxu1  ;;  %v942_v46 = vpop.f32.mrf.mxu3 }
  0xdb   : > { %v943_v0 = vadd.f32 %v4865_v54, %v942_v46  ;;  %v895_v1 = vadd.f32 %v4865_v54, %v894_v45  ;;  %v558_v46 = vld [vmem:[%s4668_s19 + $0x18] sm:$0xff] }
  0xdd   : > { %3889 = vmatmul.msk.f32.gmra.mxu1 %vm744_vm0, %v718_v39 }
  0xe0   : > { %v921_v47 = vpop.f32.mrf.mxu2 }
  0xe2   : > { %v897_v48 = vpop.f32.mrf.mxu1  ;;  %v945_v49 = vpop.f32.mrf.mxu3 }
  0xe3   : > { %v946_v61 = vadd.f32 %v4865_v54, %v945_v49  ;;  %v898_v62 = vadd.f32 %v4865_v54, %v897_v48 }
  0xe5   : > { %3890 = vmatmul.msk.f32.gmra.mxu1 %vm744_vm0, %v4705_v4  ;;  %v892_v4 = vadd.f32 %v4865_v54, %v891_v42 }
  0xe8   : > { %v924_v50 = vpop.f32.mrf.mxu2 }
  0xe9   : > { %v925_v29 = vadd.f32 %v4865_v54, %v924_v50  ;;  %v562_v50 = vld [vmem:[%s4668_s19 + $0x38] sm:$0xff] }
  0xea   : > { %v900_v51 = vpop.f32.mrf.mxu1  ;;  %v948_v52 = vpop.f32.mrf.mxu3 }
  0xeb   : > { %v949_v59 = vadd.f32 %v4865_v54, %v948_v52  ;;  %v901_v60 = vadd.f32 %v4865_v54, %v900_v51  ;;  %v564_v52 = vld [vmem:[%s4668_s19 + $0x48] sm:$0xff] }
  0xed   : > { %3891 = vmatmul.msk.f32.gmra.mxu1 %vm744_vm0, %v4720_v7  ;;  %v889_v7 = vadd.f32 %v4865_v54, %v888_v40  ;;  %v864_v40 = vpop.f32.mrf.mxu0 }
  0xf0   : > { %v927_v53 = vpop.f32.mrf.mxu2 }
  0xf2   : > { %v903_v55 = vpop.f32.mrf.mxu1  ;;  %v951_v56 = vpop.f32.mrf.mxu3 }
  0xf3   : > { %v904_v57 = vadd.f32 %v4865_v54, %v903_v55  ;;  %v952_v58 = vadd.f32 %v4865_v54, %v951_v56  ;;  %v566_v55 = vld [vmem:[%s4668_s19 + $0x58] sm:$0xff] }
  0xf5   : > { %3892 = vmatmul.msk.f32.gmra.mxu1 %vm744_vm0, %v4735_v10  ;;  %1073 = vmatpush.msrb.mxu2 %v904_v57  ;;  %v867_v42 = vpop.f32.mrf.mxu0 }
  0xf6   : > { %1186 = vmatpush.msrb.mxu3 %v952_v58 }
  0xf7   : > { %1074 = vmatpush.msrb.mxu2 %v901_v60 }
  0xf8   : > { %v930_v63 = vpop.f32.mrf.mxu2  ;;  %1187 = vmatpush.msrb.mxu3 %v949_v59  ;;  %v568_v59 = vld [vmem:[%s4668_s19 + $0x68] sm:$0xff] }
  0xf9   : > { %1075 = vmatpush.msrb.mxu2 %v898_v62  ;;  %v931_v26 = vadd.f32 %v4865_v54, %v930_v63  ;;  %v570_v63 = vld [vmem:[%s4668_s19 + $0x78] sm:$0xff] }
  0xfa   : > { %v906_v2 = vpop.f32.mrf.mxu1  ;;  %1188 = vmatpush.msrb.mxu3 %v946_v61 }
  0xfb   : > { %1076 = vmatpush.msrb.mxu2 %v895_v1 }
  0xfc   : > { %1189 = vmatpush.msrb.mxu3 %v943_v0  ;;  %v865_v0 = vadd.f32 %v4865_v54, %v864_v40  ;;  %v584_v40 = vld [vmem:[%s4668_s19 + $0xe8] sm:$0xff] }
  0xfd   : > { %3893 = vmatmul.msk.f32.gmra.mxu1 %vm744_vm0, %v4750_v13  ;;  %1077 = vmatpush.msrb.mxu2 %v892_v4  ;;  %v928_v13 = vadd.f32 %v4865_v54, %v927_v53 }
  0xfe   : > { %1190 = vmatpush.msrb.mxu3 %v940_v3  ;;  %v572_v3 = vld [vmem:[%s4668_s19 + $0x88] sm:$0xff] }
  0xff   : > { %1078 = vmatpush.msrb.mxu2 %v889_v7  ;;  %v574_v7 = vld [vmem:[%s4668_s19 + $0x98] sm:$0xff] }
 0x100   : > { %v933_v10 = vpop.f32.mrf.mxu2 }
 0x101   : > { %v934_v22 = vadd.f32 %v4865_v54, %v933_v10 }
 0x102   : > { %v909_v19 = vpop.f32.mrf.mxu1 }
 0x103   : > { %v910_v39 = vadd.f32 %v4865_v54, %v909_v19  ;;  %v576_v19 = vld [vmem:[%s4668_s19 + $0xa8] sm:$0xff] }
 0x105   : > { %3894 = vmatmul.msk.f32.gmra.mxu1 %vm744_vm0, %v4765_v16  ;;  %v922_v16 = vadd.f32 %v4865_v54, %v921_v47 }
 0x108   : > { %v936_v20 = vpop.f32.mrf.mxu2 }
 0x109   : > { %v937_v21 = vadd.f32 %v4865_v54, %v936_v20  ;;  %v4979_v20 = vld [vmem:[%s7265_s6] ss:$0 sm:$0xff] }
 0x10a   : > { %v912_v23 = vpop.f32.mrf.mxu1 }
 0x10b   : > { %1191 = vmatpush.msrb.mxu3 %v937_v21  ;;  %v913_v37 = vadd.f32 %v4865_v54, %v912_v23 }
 0x10d   : > { %3895 = vmatmul.msk.f32.gmra.mxu1 %vm744_vm0, %v4794_v24  ;;  %1192 = vmatpush.msrb.mxu3 %v934_v22  ;;  %v916_v24 = vadd.f32 %v4865_v54, %v4854_v41  ;;  %v555_v22 = vld [vmem:[%s4668_s19] sm:$0xff] }
 0x10f   : > { %1193 = vmatpush.msrb.mxu3 %v931_v26 }
 0x111   : > { %1194 = vmatpush.msrb.mxu3 %v928_v13 }
 0x112   : > { %v4894_v34 = vpop.f32.mrf.mxu1 }
 0x113   : > { %1195 = vmatpush.msrb.mxu3 %v925_v29  ;;  %v557_v29 = vld [vmem:[%s4668_s19 + $0x10] sm:$0xff] }
 0x115   : > { %3896 = vmatmul.msk.f32.gmra.mxu1 %vm744_vm0, %v4806_v27  ;;  %1196 = vmatpush.msrb.mxu3 %v922_v16  ;;  %v907_v27 = vadd.f32 %v4865_v54, %v906_v2  ;;  %v862_v2 = vadd.f32 %v4865_v54, %v4901_v36  ;;  %v582_v16 = vld [vmem:[%s4668_s19 + $0xd8] sm:$0xff] }
 0x117   : > { %1197 = vmatpush.msrb.mxu3 %v919_v35 }
 0x119   : > { %1198 = vmatpush.msrb.mxu3 %v916_v24 }
 0x11a   : > { %v4904_v38 = vpop.f32.mrf.mxu1 }
 0x11b   : > { %1199 = vmatpush.msrb.mxu3 %v913_v37 }
 0x11d   : > { %3897 = vmatmul.msk.f32.gmra.mxu1 %vm744_vm0, %v4818_v30  ;;  %1200 = vmatpush.msrb.mxu3 %v910_v39  ;;  %v870_v30 = vpop.f32.mrf.mxu0  ;;  %v559_v39 = vld [vmem:[%s4668_s19 + $0x20] sm:$0xff] }
 0x11e   : > { %v871_v62 = vadd.f32 %v4865_v54, %v870_v30 }
 0x11f   : > { %1201 = vmatpush.msrb.mxu3 %v907_v27 }
 0x120   : > { %1202 = vmatmul.f32.vlgmr.msrb.gmra.mxu3 %v556_v44 }
 0x122   : > { %v4910_v41 = vpop.f32.mrf.mxu1 }
 0x125   : > { %3898 = vmatmul.msk.f32.gmra.mxu1 %vm744_vm0, %v4830_v33  ;;  %v873_v47 = vpop.f32.mrf.mxu0 }
 0x126   : > { %v874_v61 = vadd.f32 %v4865_v54, %v873_v47  ;;  %v561_v47 = vld [vmem:[%s4668_s19 + $0x30] sm:$0xff] }
 0x128   : > { %1205 = vmatmul.f32.gmra.mxu3 %v558_v46 }
 0x12a   : > { %v4914_v43 = vpop.f32.mrf.mxu1 }
 0x12b   : > { %v984_v46 = vadd.f32 %v4979_v20, %v4914_v43  ;;  %v975_v43 = vadd.f32 %v4979_v20, %v4894_v34 }
 0x12d   : > { %3899 = vmatmul.msk.f32.gmra.mxu1 %vm744_vm0, %v4708_v5  ;;  %v560_v5 = vld [vmem:[%s4668_s19 + $0x28] sm:$0xff]  ;;  %v876_v48 = vpop.f32.mrf.mxu0 }
 0x130   : > { %1208 = vmatmul.f32.gmra.mxu3 %v560_v5  ;;  %v586_v5 = vld [vmem:[%s4668_s19 + $0xf8] sm:$0xff] }
 0x132   : > { %v4919_v45 = vpop.f32.mrf.mxu1 }
 0x133   : > { %v987_v44 = vadd.f32 %v4979_v20, %v4919_v45  ;;  %v978_v45 = vadd.f32 %v4979_v20, %v4904_v38  ;;  %v588_v38 = vld [vmem:[%s4668_s19 + $0x108] sm:$0xff] }
 0x135   : > { %3900 = vmatmul.msk.f32.gmra.mxu1 %vm744_vm0, %v4723_v8  ;;  %v879_v8 = vpop.f32.mrf.mxu0 }
 0x138   : > { %1211 = vmatmul.f32.gmra.mxu3 %v562_v50  ;;  %v621_v50 = vld [vmem:[%s4674_s15 + $0x10] sm:$0xff] }
 0x13a   : > { %v4924_v33 = vpop.f32.mrf.mxu1 }
 0x13d   : > { %3901 = vmatmul.msk.f32.gmra.mxu1 %vm744_vm0, %v4738_v11  ;;  %v882_v11 = vpop.f32.mrf.mxu0 }
 0x13e   : > { %v883_v58 = vadd.f32 %v4865_v54, %v882_v11  ;;  %v623_v11 = vld [vmem:[%s4674_s15 + $0x20] sm:$0xff] }
 0x140   : > { %1214 = vmatmul.f32.gmra.mxu3 %v564_v52  ;;  %v590_v52 = vld [vmem:[%s4668_s19 + $0x118] sm:$0xff] }
 0x142   : > { %v4929_v49 = vpop.f32.mrf.mxu1 }
 0x143   : > { %v993_v27 = vadd.f32 %v4979_v20, %v4929_v49  ;;  %v563_v49 = vld [vmem:[%s4668_s19 + $0x40] sm:$0xff] }
 0x145   : > { %3902 = vmatmul.msk.f32.gmra.mxu1 %vm744_vm0, %v4753_v14  ;;  %v885_v14 = vpop.f32.mrf.mxu0 }
 0x146   : > { %v886_v57 = vadd.f32 %v4865_v54, %v885_v14  ;;  %v567_v14 = vld [vmem:[%s4668_s19 + $0x60] sm:$0xff] }
 0x148   : > { %1217 = vmatmul.f32.gmra.mxu3 %v566_v55  ;;  %1079 = vmatpush.msrb.mxu2 %v886_v57  ;;  %v625_v57 = vld [vmem:[%s4674_s15 + $0x30] sm:$0xff] }
 0x14a   : > { %v4934_v51 = vpop.f32.mrf.mxu1  ;;  %1080 = vmatpush.msrb.mxu2 %v883_v58 }
 0x14b   : > { %v996_v37 = vadd.f32 %v4979_v20, %v4934_v51  ;;  %v565_v51 = vld [vmem:[%s4668_s19 + $0x50] sm:$0xff] }
 0x14d   : > { %3903 = vmatmul.msk.f32.gmra.mxu1 %vm744_vm0, %v4768_v17  ;;  %v880_v17 = vadd.f32 %v4865_v54, %v879_v8 }
 0x14f   : > { %1081 = vmatpush.msrb.mxu2 %v880_v17 }
 0x150   : > { %1220 = vmatmul.f32.gmra.mxu3 %v568_v59  ;;  %v569_v59 = vld [vmem:[%s4668_s19 + $0x70] sm:$0xff] }
 0x152   : > { %v4939_v53 = vpop.f32.mrf.mxu1 }
 0x153   : > { %v999_v24 = vadd.f32 %v4979_v20, %v4939_v53 }
 0x155   : > { %3904 = vmatmul.msk.f32.gmra.mxu1 %vm744_vm0, %v4797_v25  ;;  %v877_v25 = vadd.f32 %v4865_v54, %v876_v48  ;;  %v619_v48 = vld [vmem:[%s4674_s15] sm:$0xff] }
 0x157   : > { %1082 = vmatpush.msrb.mxu2 %v877_v25  ;;  %v594_v25 = vld [vmem:[%s4668_s19 + $0x138] sm:$0xff] }
 0x158   : > { %1223 = vmatmul.f32.gmra.mxu3 %v570_v63  ;;  %v596_v63 = vld [vmem:[%s4668_s19 + $0x148] sm:$0xff] }
 0x159   : > { %1083 = vmatpush.msrb.mxu2 %v874_v61 }
 0x15a   : > { %v4944_v56 = vpop.f32.mrf.mxu1 }
 0x15b   : > { %1084 = vmatpush.msrb.mxu2 %v871_v62  ;;  %v1002_v35 = vadd.f32 %v4979_v20, %v4944_v56  ;;  %v592_v56 = vld [vmem:[%s4668_s19 + $0x128] sm:$0xff] }
 0x15d   : > { %3905 = vmatmul.msk.f32.gmra.mxu1 %vm744_vm0, %v4809_v28  ;;  %v868_v28 = vadd.f32 %v4865_v54, %v867_v42  ;;  %v990_v42 = vadd.f32 %v4979_v20, %v4924_v33  ;;  %v981_v33 = vadd.f32 %v4979_v20, %v4910_v41 }
 0x15f   : > { %1085 = vmatpush.msrb.mxu2 %v868_v28  ;;  %v571_v28 = vld [vmem:[%s4668_s19 + $0x80] sm:$0xff] }
 0x160   : > { %1226 = vmatmul.f32.gmra.mxu3 %v572_v3  ;;  %v598_v3 = vld [vmem:[%s4668_s19 + $0x158] sm:$0xff] }
 0x161   : > { %1086 = vmatpush.msrb.mxu2 %v865_v0  ;;  %v629_v0 = vld [vmem:[%s4674_s15 + $0x50] sm:$0xff] }
 0x162   : > { %v1004_v60 = vpop.f32.mrf.mxu1 }
 0x163   : > { %1087 = vmatpush.msrb.mxu2 %v862_v2 }
 0x165   : > { %3906 = vmatmul.msk.f32.gmra.mxu1 %vm744_vm0, %v4821_v31  ;;  %v859_v31 = vadd.f32 %v4865_v54, %v4891_v32  ;;  %v1005_v32 = vadd.f32 %v4979_v20, %v1004_v60  ;;  %v627_v60 = vld [vmem:[%s4674_s15 + $0x40] sm:$0xff] }
 0x167   : > { %1088 = vmatpush.msrb.mxu2 %v859_v31  ;;  %v573_v31 = vld [vmem:[%s4668_s19 + $0x90] sm:$0xff] }
 0x168   : > { %1229 = vmatmul.f32.gmra.mxu3 %v574_v7  ;;  %1089 = vmatmul.f32.vlgmr.msrb.gmra.mxu2 %v555_v22  ;;  %v577_v22 = vld [vmem:[%s4668_s19 + $0xb0] sm:$0xff] }
 0x16a   : > { %v1007_v1 = vpop.f32.mrf.mxu1 }
 0x16d   : > { %3907 = vmatmul.msk.f32.gmra.mxu1 %vm744_vm0, %v4711_v6  ;;  %v578_v6 = vld [vmem:[%s4668_s19 + $0xb8] sm:$0xff] }
 0x170   : > { %1232 = vmatmul.f32.gmra.mxu3 %v576_v19  ;;  %1092 = vmatmul.f32.gmra.mxu2 %v557_v29  ;;  %v575_v19 = vld [vmem:[%s4668_s19 + $0xa0] sm:$0xff]  ;;  %v604_v29 = vld [vmem:[%s4668_s19 + $0x188] sm:$0xff] }
 0x172   : > { %v1010_v4 = vpop.f32.mrf.mxu1 }
 0x173   : > { %v1011_v26 = vadd.f32 %v4979_v20, %v1010_v4  ;;  %v631_v4 = vld [vmem:[%s4674_s15 + $0x60] sm:$0xff] }
 0x175   : > { %3908 = vmatmul.msk.f32.gmra.mxu1 %vm744_vm0, %v4726_v9 }
 0x178   : > { %1235 = vmatmul.f32.gmra.mxu3 %v578_v6  ;;  %1095 = vmatmul.f32.gmra.mxu2 %v559_v39  ;;  %v633_v6 = vld [vmem:[%s4674_s15 + $0x70] sm:$0xff]  ;;  %v639_v39 = vld [vmem:[%s4674_s15 + $0xa0] sm:$0xff] }
 0x17a   : > { %v1013_v10 = vpop.f32.mrf.mxu1 }
 0x17b   : > { %v1014_v23 = vadd.f32 %v4979_v20, %v1013_v10 }
 0x17d   : > { %3909 = vmatmul.msk.f32.gmra.mxu1 %vm744_vm0, %v4741_v12 }
 0x180   : > { %1098 = vmatmul.f32.gmra.mxu2 %v561_v47 }
 0x182   : > { %v1016_v54 = vpop.f32.mrf.mxu1 }
 0x183   : > { %v1017_v12 = vadd.f32 %v4979_v20, %v1016_v54  ;;  %v600_v54 = vld [vmem:[%s4668_s19 + $0x168] sm:$0xff] }
 0x185   : > { %3910 = vmatmul.msk.f32.gmra.mxu1 %vm744_vm0, %v4756_v15  ;;  %v580_v15 = vld [vmem:[%s4668_s19 + $0xc8] sm:$0xff] }
 0x186   : > { %1238 = vmatmul.f32.gmra.mxu3 %v580_v15  ;;  %v635_v15 = vld [vmem:[%s4674_s15 + $0x80] sm:$0xff] }
 0x188   : > { %1101 = vmatmul.f32.gmra.mxu2 %v563_v49 }
 0x18a   : > { %v1019_v9 = vpop.f32.mrf.mxu1 }
 0x18b   : > { %v1020_v21 = vadd.f32 %v4979_v20, %v1019_v9 }
 0x18d   : > { %3911 = vmatmul.msk.f32.gmra.mxu1 %vm744_vm0, %v4771_v18  ;;  %1302 = vmatpush.msrb.mxu0 %v1020_v21  ;;  %v1008_v18 = vadd.f32 %v4979_v20, %v1007_v1 }
 0x18e   : > { %4056 = vmatpush.msra.mxu3 %v1020_v21 }
 0x18f   : > { %1303 = vmatpush.msrb.mxu0 %v1017_v12  ;;  %1241 = vmatmul.f32.gmra.mxu3 %v582_v16 }
 0x190   : > { %4057 = vmatpush.msra.mxu3 %v1017_v12  ;;  %1104 = vmatmul.f32.gmra.mxu2 %v565_v51  ;;  %v602_v12 = vld [vmem:[%s4668_s19 + $0x178] sm:$0xff] }
 0x191   : > { %1304 = vmatpush.msrb.mxu0 %v1014_v23 }
 0x192   : > { %4058 = vmatpush.msra.mxu3 %v1014_v23  ;;  %v4989_v13 = vpop.f32.mrf.mxu1 }
 0x193   : > { %1305 = vmatpush.msrb.mxu0 %v1011_v26 }
 0x194   : > { %4059 = vmatpush.msra.mxu3 %v1011_v26 }
 0x195   : > { %1306 = vmatpush.msrb.mxu0 %v1008_v18 }
 0x196   : > { %4060 = vmatpush.msra.mxu3 %v1008_v18  ;;  %v579_v18 = vld [vmem:[%s4668_s19 + $0xc0] sm:$0xff] }
 0x197   : > { %1307 = vmatpush.msrb.mxu0 %v1005_v32  ;;  %1244 = vmatmul.f32.gmra.mxu3 %v584_v40 }
 0x198   : > { %4061 = vmatpush.msra.mxu3 %v1005_v32  ;;  %1107 = vmatmul.f32.gmra.mxu2 %v567_v14  ;;  %v637_v32 = vld [vmem:[%s4674_s15 + $0x90] sm:$0xff] }
 0x199   : > { %1308 = vmatpush.msrb.mxu0 %v1002_v35 }
 0x19a   : > { %4062 = vmatpush.msra.mxu3 %v1002_v35  ;;  %v4999_v36 = vpop.f32.mrf.mxu1 }
 0x19b   : > { %1309 = vmatpush.msrb.mxu0 %v999_v24 }
 0x19c   : > { %4063 = vmatpush.msra.mxu3 %v999_v24  ;;  %v581_v24 = vld [vmem:[%s4668_s19 + $0xd0] sm:$0xff] }
 0x19d   : > { %1310 = vmatpush.msrb.mxu0 %v996_v37 }
 0x19e   : > { %4064 = vmatpush.msra.mxu3 %v996_v37  ;;  %v606_v37 = vld [vmem:[%s4668_s19 + $0x198] sm:$0xff] }
 0x19f   : > { %1311 = vmatpush.msrb.mxu0 %v993_v27  ;;  %1247 = vmatmul.f32.gmra.mxu3 %v586_v5  ;;  %v585_v5 = vld [vmem:[%s4668_s19 + $0xf0] sm:$0xff] }
 0x1a0   : > { %4065 = vmatpush.msra.mxu3 %v993_v27  ;;  %1110 = vmatmul.f32.gmra.mxu2 %v569_v59 }
 0x1a1   : > { %1312 = vmatpush.msrb.mxu0 %v990_v42 }
 0x1a2   : > { %4066 = vmatpush.msra.mxu3 %v990_v42  ;;  %v5011_v30 = vpop.f32.mrf.mxu1  ;;  %v583_v42 = vld [vmem:[%s4668_s19 + $0xe0] sm:$0xff] }
 0x1a3   : > { %1313 = vmatpush.msrb.mxu0 %v987_v44  ;;  %v5031_v34 = vpop.f32.mrf.mxu3 }
 0x1a4   : > { %4067 = vmatpush.msra.mxu3 %v987_v44  ;;  %v608_v44 = vld [vmem:[%s4668_s19 + $0x1a8] sm:$0xff] }
 0x1a5   : > { %1314 = vmatpush.msrb.mxu0 %v984_v46 }
 0x1a6   : > { %4068 = vmatpush.msra.mxu3 %v984_v46  ;;  %v641_v46 = vld [vmem:[%s4674_s15 + $0xb0] sm:$0xff] }
 0x1a7   : > { %1315 = vmatpush.msrb.mxu0 %v981_v33  ;;  %1250 = vmatmul.f32.gmra.mxu3 %v588_v38 }
 0x1a8   : > { %4069 = vmatpush.msra.mxu3 %v981_v33  ;;  %1113 = vmatmul.f32.gmra.mxu2 %v571_v28 }
 0x1a9   : > { %1316 = vmatpush.msrb.mxu0 %v978_v45 }
 0x1aa   : > { %4070 = vmatpush.msra.mxu3 %v978_v45  ;;  %v5024_v41 = vpop.f32.mrf.mxu1  ;;  %v610_v45 = vld [vmem:[%s4668_s19 + $0x1b8] sm:$0xff] }
 0x1ab   : > { %1317 = vmatpush.msrb.mxu0 %v975_v43  ;;  %v5038_v55 = vpop.f32.mrf.mxu3 }
 0x1ac   : > { %4071 = vmatpush.msra.mxu3 %v975_v43  ;;  %1318 = vmatmul.f32.vlgmr.msrb.gmra.mxu0 %v619_v48  ;;  %v643_v43 = vld [vmem:[%s4674_s15 + $0xc0] sm:$0xff] }
 0x1af   : > { %1253 = vmatmul.f32.gmra.mxu3 %v590_v52 }
 0x1b0   : > { %1116 = vmatmul.f32.gmra.mxu2 %v573_v31 }
 0x1b2   : > { %v5029_v8 = vpop.f32.mrf.mxu1 }
 0x1b3   : > { %v5045_v17 = vpop.f32.mrf.mxu3 }
 0x1b4   : > { %1321 = vmatmul.f32.gmra.mxu0 %v621_v50  ;;  %v587_v50 = vld [vmem:[%s4668_s19 + $0x100] sm:$0xff] }
 0x1b7   : > { %1256 = vmatmul.f32.gmra.mxu3 %v592_v56 }
 0x1b8   : > { %1119 = vmatmul.f32.gmra.mxu2 %v575_v19 }
 0x1ba   : > { %v5036_v53 = vpop.f32.mrf.mxu1 }
 0x1bb   : > { %v5052_v62 = vpop.f32.mrf.mxu3 }
 0x1bc   : > { %1324 = vmatmul.f32.gmra.mxu0 %v623_v11  ;;  %v612_v11 = vld [vmem:[%s4668_s19 + $0x1c8] sm:$0xff] }
 0x1bf   : > { %1259 = vmatmul.f32.gmra.mxu3 %v594_v25 }
 0x1c0   : > { %1122 = vmatmul.f32.gmra.mxu2 %v577_v22  ;;  %v649_v22 = vld [vmem:[%s4674_s15 + $0xf0] sm:$0xff] }
 0x1c2   : > { %v5043_v58 = vpop.f32.mrf.mxu1 }
 0x1c3   : > { %v5059_v2 = vpop.f32.mrf.mxu3 }
 0x1c4   : > { %1327 = vmatmul.f32.gmra.mxu0 %v625_v57  ;;  %v645_v57 = vld [vmem:[%s4674_s15 + $0xd0] sm:$0xff] }
 0x1c7   : > { %1262 = vmatmul.f32.gmra.mxu3 %v596_v63 }
 0x1c8   : > { %1125 = vmatmul.f32.gmra.mxu2 %v579_v18 }
 0x1ca   : > { %v5050_v61 = vpop.f32.mrf.mxu1 }
 0x1cb   : > { %v5066_v10 = vpop.f32.mrf.mxu3  ;;  %v1044_v19 = vadd.f32 %v4979_v20, %v5050_v61  ;;  %v1035_v61 = vadd.f32 %v4979_v20, %v5029_v8  ;;  %v1026_v8 = vadd.f32 %v4979_v20, %v4999_v36  ;;  %v595_v36 = vld [vmem:[%s4668_s19 + $0x140] sm:$0xff] }
 0x1cc   : > { %1330 = vmatmul.f32.gmra.mxu0 %v627_v60  ;;  %v589_v60 = vld [vmem:[%s4668_s19 + $0x110] sm:$0xff] }
 0x1cf   : > { %1265 = vmatmul.f32.gmra.mxu3 %v598_v3  ;;  %v647_v3 = vld [vmem:[%s4674_s15 + $0xe0] sm:$0xff] }
 0x1d0   : > { %1128 = vmatmul.f32.gmra.mxu2 %v581_v24  ;;  %v679_v24 = vld [vmem:[%s4674_s15 + $0x1e0] sm:$0xff] }
 0x1d2   : > { %v5057_v1 = vpop.f32.mrf.mxu1 }
 0x1d3   : > { %v5071_v21 = vpop.f32.mrf.mxu3  ;;  %v1047_v31 = vadd.f32 %v4979_v20, %v5057_v1  ;;  %v1038_v1 = vadd.f32 %v4979_v20, %v5036_v53  ;;  %v1029_v53 = vadd.f32 %v4979_v20, %v5011_v30  ;;  %v620_v30 = vld [vmem:[%s4674_s15 + $0x8] sm:$0xff] }
 0x1d4   : > { %1333 = vmatmul.f32.gmra.mxu0 %v629_v0  ;;  %v614_v0 = vld [vmem:[%s4668_s19 + $0x1d8] sm:$0xff] }
 0x1d7   : > { %1268 = vmatmul.f32.gmra.mxu3 %v600_v54  ;;  %v1041_v54 = vadd.f32 %v4979_v20, %v5043_v58  ;;  %v1032_v58 = vadd.f32 %v4979_v20, %v5024_v41  ;;  %v1023_v41 = vadd.f32 %v4979_v20, %v4989_v13  ;;  %v653_v13 = vld [vmem:[%s4674_s15 + $0x110] sm:$0xff] }
 0x1d8   : > { %1131 = vmatmul.f32.gmra.mxu2 %v583_v42  ;;  %v5167_v42 = vld [vmem:[%s7266_s7] ss:$0 sm:$0xff] }
 0x1da   : > { %v5064_v7 = vpop.f32.mrf.mxu1 }
 0x1db   : > { %v5076_v26 = vpop.f32.mrf.mxu3  ;;  %v1050_v28 = vadd.f32 %v4979_v20, %v5064_v7  ;;  %v591_v7 = vld [vmem:[%s4668_s19 + $0x120] sm:$0xff] }
 0x1dc   : > { %1336 = vmatmul.f32.gmra.mxu0 %v631_v4 }
 0x1df   : > { %1271 = vmatmul.f32.gmra.mxu3 %v602_v12 }
 0x1e0   : > { %1134 = vmatmul.f32.gmra.mxu2 %v585_v5  ;;  %v694_v5 = vld [vmem:[%s7268_s9 + $0x18] sm:$0xff] }
 0x1e1   : > { %1845 = vmatpush.msrb.mxu3 %v694_v5 }
 0x1e2   : > { %v1052_v9 = vpop.f32.mrf.mxu1 }
 0x1e3   : > { %v5081_v35 = vpop.f32.mrf.mxu3  ;;  %v1053_v25 = vadd.f32 %v4979_v20, %v1052_v9 }
 0x1e4   : > { %1339 = vmatmul.f32.gmra.mxu0 %v633_v6  ;;  %v616_v6 = vld [vmem:[%s4668_s19 + $0x1e8] sm:$0xff] }
 0x1e7   : > { %1274 = vmatmul.f32.gmra.mxu3 %v604_v29  ;;  %v651_v29 = vld [vmem:[%s4674_s15 + $0x100] sm:$0xff] }
 0x1e8   : > { %1137 = vmatmul.f32.gmra.mxu2 %v587_v50  ;;  %v693_v50 = vld [vmem:[%s7268_s9 + $0x10] sm:$0xff] }
 0x1e9   : > { %1846 = vmatpush.msrb.mxu3 %v693_v50 }
 0x1ea   : > { %v1055_v23 = vpop.f32.mrf.mxu1 }
 0x1eb   : > { %v5086_v40 = vpop.f32.mrf.mxu3  ;;  %v1056_v56 = vadd.f32 %v4979_v20, %v1055_v23  ;;  %v5106_v59 = vpop.f32.mrf.mxu2  ;;  %v618_v23 = vld [vmem:[%s4668_s19 + $0x1f8] sm:$0xff] }
 0x1ec   : > { %1342 = vmatmul.f32.gmra.mxu0 %v635_v15  ;;  %v593_v15 = vld [vmem:[%s4668_s19 + $0x130] sm:$0xff] }
 0x1ef   : > { %1277 = vmatmul.f32.gmra.mxu3 %v606_v37  ;;  %v622_v37 = vld [vmem:[%s4674_s15 + $0x18] sm:$0xff] }
 0x1f0   : > { %1140 = vmatmul.f32.gmra.mxu2 %v589_v60  ;;  %v626_v60 = vld [vmem:[%s4674_s15 + $0x38] sm:$0xff] }
 0x1f2   : > { %v1058_v16 = vpop.f32.mrf.mxu1 }
 0x1f3   : > { %v5091_v33 = vpop.f32.mrf.mxu3  ;;  %v1059_v14 = vadd.f32 %v4979_v20, %v1058_v16  ;;  %v5118_v4 = vpop.f32.mrf.mxu2 }
 0x1f4   : > { %1345 = vmatmul.f32.gmra.mxu0 %v637_v32 }
 0x1f7   : > { %1280 = vmatmul.f32.gmra.mxu3 %v608_v44  ;;  %v597_v44 = vld [vmem:[%s4668_s19 + $0x150] sm:$0xff] }
 0x1f8   : > { %1143 = vmatmul.f32.gmra.mxu2 %v591_v7  ;;  %v659_v7 = vld [vmem:[%s4674_s15 + $0x140] sm:$0xff] }
 0x1fa   : > { %v1061_v27 = vpop.f32.mrf.mxu1 }
 0x1fb   : > { %v5099_v51 = vpop.f32.mrf.mxu3  ;;  %v1062_v52 = vadd.f32 %v4979_v20, %v1061_v27  ;;  %v5133_v12 = vpop.f32.mrf.mxu2  ;;  %v702_v27 = vld [vmem:[%s7270_s11 + $0x18] sm:$0xff] }
 0x1fc   : > { %1348 = vmatmul.f32.gmra.mxu0 %v639_v39 }
 0x1fd   : > { %1996 = vmatpush.msra.mxu0 %v702_v27  ;;  %v634_v27 = vld [vmem:[%s4674_s15 + $0x78] sm:$0xff] }
 0x1ff   : > { %1283 = vmatmul.f32.gmra.mxu3 %v610_v45  ;;  %v1091_v45 = vadd.f32 %v5167_v42, %v5106_v59  ;;  %v1094_v59 = vadd.f32 %v5167_v42, %v5118_v4 }
 0x200   : > { %1146 = vmatmul.f32.gmra.mxu2 %v593_v15 }
 0x202   : > { %v1064_v47 = vpop.f32.mrf.mxu1 }
 0x203   : > { %v1065_v49 = vadd.f32 %v4979_v20, %v1064_v47  ;;  %v5149_v32 = vpop.f32.mrf.mxu2  ;;  %v681_v47 = vld [vmem:[%s4674_s15 + $0x1f0] sm:$0xff] }
 0x204   : > { %1351 = vmatmul.f32.gmra.mxu0 %v641_v46 }
 0x207   : > { %1286 = vmatmul.f32.gmra.mxu3 %v612_v11  ;;  %v1204_v11 = vadd.f32 %v5031_v34, %v1091_v45 }
 0x208   : > { %1149 = vmatmul.f32.gmra.mxu2 %v595_v36 }
 0x209   : > { %v5112_v63 = vpop.f32.mrf.mxu3 }
 0x20a   : > { %v1067_v48 = vpop.f32.mrf.mxu1 }
 0x20b   : > { %v1068_v38 = vadd.f32 %v4979_v20, %v1067_v48  ;;  %v5159_v39 = vpop.f32.mrf.mxu2  ;;  %v655_v48 = vld [vmem:[%s4674_s15 + $0x120] sm:$0xff] }
 0x20c   : > { %1354 = vmatmul.f32.gmra.mxu0 %v643_v43 }
 0x20d   : > { %1415 = vmatpush.msra.mxu1 %v1068_v38 }
 0x20f   : > { %1416 = vmatpush.msra.mxu1 %v1065_v49  ;;  %1289 = vmatmul.f32.gmra.mxu3 %v614_v0  ;;  %v624_v49 = vld [vmem:[%s4674_s15 + $0x28] sm:$0xff]  ;;  %v1207_v0 = vadd.f32 %v5038_v55, %v1094_v59 }
 0x210   : > { %1152 = vmatmul.f32.gmra.mxu2 %v597_v44 }
 0x211   : > { %1417 = vmatpush.msra.mxu1 %v1062_v52  ;;  %v692_v52 = vld [vmem:[%s7268_s9 + $0x8] sm:$0xff] }
 0x212   : > { %v5128_v9 = vpop.f32.mrf.mxu3  ;;  %1847 = vmatpush.msrb.mxu3 %v692_v52  ;;  %v698_v52 = vld [vmem:[%s7269_s10 + $0x18] sm:$0xff] }
 0x213   : > { %1418 = vmatpush.msra.mxu1 %v1059_v14  ;;  %v1105_v38 = vpop.f32.mrf.mxu2  ;;  %v599_v14 = vld [vmem:[%s4668_s19 + $0x160] sm:$0xff]  ;;  %1636 = vmatpush.msra.mxu2 %v698_v52  ;;  %v646_v52 = vld [vmem:[%s4674_s15 + $0xd8] sm:$0xff] }
 0x214   : > { %1357 = vmatmul.f32.gmra.mxu0 %v645_v57 }
 0x215   : > { %1419 = vmatpush.msra.mxu1 %v1056_v56  ;;  %v691_v56 = vld [vmem:[%s7268_s9] sm:$0xff] }
 0x216   : > { %1848 = vmatpush.msrb.mxu3 %v691_v56 }
 0x217   : > { %1420 = vmatpush.msra.mxu1 %v1053_v25  ;;  %1292 = vmatmul.f32.gmra.mxu3 %v616_v6  ;;  %v657_v25 = vld [vmem:[%s4674_s15 + $0x130] sm:$0xff] }
 0x218   : > { %1155 = vmatmul.f32.gmra.mxu2 %v599_v14  ;;  %v611_v14 = vld [vmem:[%s4668_s19 + $0x1c0] sm:$0xff] }
 0x219   : > { %1421 = vmatpush.msra.mxu1 %v1050_v28 }
 0x21a   : > { %v5151_v16 = vpop.f32.mrf.mxu3 }
 0x21b   : > { %1422 = vmatpush.msra.mxu1 %v1047_v31  ;;  %v1108_v28 = vpop.f32.mrf.mxu2  ;;  %v601_v31 = vld [vmem:[%s4668_s19 + $0x170] sm:$0xff] }
 0x21c   : > { %1360 = vmatmul.f32.gmra.mxu0 %v647_v3  ;;  %v1097_v3 = vadd.f32 %v5167_v42, %v5133_v12  ;;  %v661_v12 = vld [vmem:[%s4674_s15 + $0x150] sm:$0xff]  ;;  %v1109_v45 = vadd.f32 %v5167_v42, %v1108_v28 }
 0x21d   : > { %1423 = vmatpush.msra.mxu1 %v1044_v19 }
 0x21e   : > { %v1210_v55 = vadd.f32 %v5045_v17, %v1097_v3 }
 0x21f   : > { %1424 = vmatpush.msra.mxu1 %v1041_v54  ;;  %1295 = vmatmul.f32.gmra.mxu3 %v618_v23  ;;  %v628_v54 = vld [vmem:[%s4674_s15 + $0x48] sm:$0xff]  ;;  %v605_v23 = vld [vmem:[%s4668_s19 + $0x190] sm:$0xff] }
 0x220   : > { %1158 = vmatmul.f32.gmra.mxu2 %v601_v31  ;;  %v613_v31 = vld [vmem:[%s4668_s19 + $0x1d0] sm:$0xff] }
 0x221   : > { %1425 = vmatpush.msra.mxu1 %v1038_v1  ;;  %v603_v1 = vld [vmem:[%s4668_s19 + $0x180] sm:$0xff] }
 0x222   : > { %v5170_v46 = vpop.f32.mrf.mxu3 }
 0x223   : > { %1426 = vmatpush.msra.mxu1 %v1035_v61  ;;  %v1111_v6 = vpop.f32.mrf.mxu2  ;;  %v1100_v61 = vadd.f32 %v5167_v42, %v5149_v32 }
 0x224   : > { %1363 = vmatmul.f32.gmra.mxu0 %v649_v22  ;;  %v1112_v56 = vadd.f32 %v5167_v42, %v1111_v6  ;;  %v640_v6 = vld [vmem:[%s4674_s15 + $0xa8] sm:$0xff] }
 0x225   : > { %1427 = vmatpush.msra.mxu1 %v1032_v58  ;;  %v630_v58 = vld [vmem:[%s4674_s15 + $0x58] sm:$0xff]  ;;  %v1213_v17 = vadd.f32 %v5052_v62, %v1100_v61  ;;  %v607_v62 = vld [vmem:[%s4668_s19 + $0x1a0] sm:$0xff] }
 0x227   : > { %1428 = vmatpush.msra.mxu1 %v1029_v53  ;;  %1408 = vmatmul.f32.vlgmr.msra.gmra.mxu3 %v679_v24 }
 0x228   : > { %1161 = vmatmul.f32.gmra.mxu2 %v603_v1 }
 0x229   : > { %v5145_v18 = vpop.f32.mrf.mxu0  ;;  %1429 = vmatpush.msra.mxu1 %v1026_v8  ;;  %v1103_v8 = vadd.f32 %v5167_v42, %v5159_v39  ;;  %v665_v39 = vld [vmem:[%s4674_s15 + $0x170] sm:$0xff] }
 0x22a   : > { %v5193_v57 = vpop.f32.mrf.mxu3 }
 0x22b   : > { %1430 = vmatpush.msra.mxu1 %v1023_v41  ;;  %v1114_v15 = vpop.f32.mrf.mxu2  ;;  %v1216_v36 = vadd.f32 %v5059_v2, %v1103_v8  ;;  %v642_v8 = vld [vmem:[%s4674_s15 + $0xb8] sm:$0xff] }
 0x22c   : > { %1366 = vmatmul.f32.gmra.mxu0 %v651_v29  ;;  %1431 = vmatmul.f32.vlgmr.msra.gmra.mxu1 %v620_v30  ;;  %v663_v29 = vld [vmem:[%s4674_s15 + $0x160] sm:$0xff]  ;;  %v632_v30 = vld [vmem:[%s4674_s15 + $0x68] sm:$0xff]  ;;  %v1115_v3 = vadd.f32 %v5167_v42, %v1114_v15 }
 0x22f   : > { %1411 = vmatmul.f32.gmra.mxu3 %v681_v47  ;;  %v609_v47 = vld [vmem:[%s4668_s19 + $0x1b0] sm:$0xff] }
 0x230   : > { %1164 = vmatmul.f32.gmra.mxu2 %v605_v23  ;;  %v673_v23 = vld [vmem:[%s4674_s15 + $0x1b0] sm:$0xff] }
 0x231   : > { %v5155_v20 = vpop.f32.mrf.mxu0 }
 0x232   : > { %v5206_v4 = vpop.f32.mrf.mxu3 }
 0x233   : > { %v1117_v32 = vpop.f32.mrf.mxu2 }
 0x234   : > { %1369 = vmatmul.f32.gmra.mxu0 %v653_v13  ;;  %1434 = vmatmul.f32.gmra.mxu1 %v622_v37  ;;  %v1106_v13 = vadd.f32 %v5167_v42, %v1105_v38  ;;  %v636_v38 = vld [vmem:[%s4674_s15 + $0x88] sm:$0xff]  ;;  %v1118_v15 = vadd.f32 %v5167_v42, %v1117_v32  ;;  %v697_v32 = vld [vmem:[%s7269_s10 + $0x10] sm:$0xff] }
 0x235   : > { %1637 = vmatpush.msra.mxu2 %v697_v32 }
 0x236   : > { %v1219_v2 = vadd.f32 %v5066_v10, %v1106_v13  ;;  %v1222_v10 = vadd.f32 %v5071_v21, %v1109_v45 }
 0x237   : > { %3944 = vmatmul.msk.f32.vlgmr.msrb.gmra.mxu3 %vm744_vm0, %v1204_v11  ;;  %v701_v11 = vld [vmem:[%s7270_s11 + $0x10] sm:$0xff] }
 0x238   : > { %1167 = vmatmul.f32.gmra.mxu2 %v607_v62  ;;  %1997 = vmatpush.msra.mxu0 %v701_v11 }
 0x239   : > { %v5178_v43 = vpop.f32.mrf.mxu0 }
 0x23a   : > { %v5222_v53 = vpop.f32.mrf.mxu3 }
 0x23b   : > { %v5243_v44 = vpop.f32.mrf.mxu2 }
 0x23c   : > { %1372 = vmatmul.f32.gmra.mxu0 %v655_v48  ;;  %1437 = vmatmul.f32.gmra.mxu1 %v624_v49  ;;  %v667_v49 = vld [vmem:[%s4674_s15 + $0x180] sm:$0xff]  ;;  %v1121_v62 = vadd.f32 %v5167_v42, %v5243_v44 }
 0x23e   : > { %v1234_v44 = vadd.f32 %v5091_v33, %v1121_v62 }
 0x23f   : > { %3945 = vmatmul.msk.f32.gmra.mxu3 %vm744_vm0, %v1207_v0  ;;  %v1225_v0 = vadd.f32 %v5076_v26, %v1112_v56  ;;  %v699_v26 = vld [vmem:[%s7270_s11] sm:$0xff] }
 0x240   : > { %1170 = vmatmul.f32.gmra.mxu2 %v609_v47  ;;  %v695_v47 = vld [vmem:[%s7269_s10] sm:$0xff] }
 0x241   : > { %v5198_v34 = vpop.f32.mrf.mxu0 }
 0x242   : > { %v5235_v24 = vpop.f32.mrf.mxu3 }
 0x243   : > { %v5255_v50 = vpop.f32.mrf.mxu2 }
 0x244   : > { %1375 = vmatmul.f32.gmra.mxu0 %v657_v25  ;;  %1440 = vmatmul.f32.gmra.mxu1 %v626_v60  ;;  %v669_v25 = vld [vmem:[%s4674_s15 + $0x190] sm:$0xff]  ;;  %v638_v60 = vld [vmem:[%s4674_s15 + $0x98] sm:$0xff] }
 0x247   : > { %3946 = vmatmul.msk.f32.gmra.mxu3 %vm744_vm0, %v1210_v55  ;;  %v700_v55 = vld [vmem:[%s7270_s11 + $0x8] sm:$0xff] }
 0x248   : > { %1173 = vmatmul.f32.gmra.mxu2 %v611_v14  ;;  %1998 = vmatpush.msra.mxu0 %v700_v55  ;;  %v4319_v55 = vld [vmem:[%s4696_s17 + $0x8] sm:$0xff] }
 0x249   : > { %v5209_v19 = vpop.f32.mrf.mxu0 }
 0x24a   : > { %v5247_v5 = vpop.f32.mrf.mxu3  ;;  %1999 = vmatpush.msra.mxu0 %v699_v26 }
 0x24b   : > { %v1126_v28 = vpop.f32.mrf.mxu2 }
 0x24c   : > { %1378 = vmatmul.f32.gmra.mxu0 %v659_v7  ;;  %1443 = vmatmul.f32.gmra.mxu1 %v628_v54  ;;  %v671_v54 = vld [vmem:[%s4674_s15 + $0x1a0] sm:$0xff]  ;;  %v1127_v14 = vadd.f32 %v5167_v42, %v1126_v28 }
 0x24f   : > { %3947 = vmatmul.msk.f32.gmra.mxu3 %vm744_vm0, %v1213_v17 }
 0x250   : > { %1176 = vmatmul.f32.gmra.mxu2 %v613_v31  ;;  %v1240_v31 = vadd.f32 %v5112_v63, %v1127_v14  ;;  %v4322_v14 = vld [vmem:[%s4696_s17 + $0x20] sm:$0xff] }
 0x251   : > { %v5218_v22 = vpop.f32.mrf.mxu0 }
 0x252   : > { %v5266_v59 = vpop.f32.mrf.mxu3 }
 0x253   : > { %v1129_v1 = vpop.f32.mrf.mxu2 }
 0x254   : > { %1381 = vmatmul.f32.gmra.mxu0 %v661_v12  ;;  %1446 = vmatmul.f32.gmra.mxu1 %v630_v58  ;;  %v1228_v12 = vadd.f32 %v5081_v35, %v1115_v3  ;;  %v615_v58 = vld [vmem:[%s4668_s19 + $0x1e0] sm:$0xff]  ;;  %v617_v35 = vld [vmem:[%s4668_s19 + $0x1f0] sm:$0xff]  ;;  %v650_v3 = vld [vmem:[%s4674_s15 + $0xf8] sm:$0xff] }
 0x257   : > { %3948 = vmatmul.msk.f32.gmra.mxu3 %vm744_vm0, %v1216_v36 }
 0x258   : > { %1179 = vmatmul.f32.gmra.mxu2 %v615_v58 }
 0x259   : > { %v5229_v41 = vpop.f32.mrf.mxu0 }
 0x25a   : > { %v5287_v61 = vpop.f32.mrf.mxu3 }
 0x25c   : > { %1384 = vmatmul.f32.gmra.mxu0 %v663_v29  ;;  %1449 = vmatmul.f32.gmra.mxu1 %v632_v30  ;;  %v1132_v29 = vpop.f32.mrf.mxu2  ;;  %v1231_v30 = vadd.f32 %v5086_v40, %v1118_v15  ;;  %v675_v40 = vld [vmem:[%s4674_s15 + $0x1c0] sm:$0xff] }
 0x25f   : > { %3949 = vmatmul.msk.f32.gmra.mxu3 %vm744_vm0, %v1219_v2  ;;  %v696_v2 = vld [vmem:[%s7269_s10 + $0x8] sm:$0xff] }
 0x260   : > { %1182 = vmatmul.f32.gmra.mxu2 %v617_v35 }
 0x261   : > { %v5239_v37 = vpop.f32.mrf.mxu0  ;;  %1638 = vmatpush.msra.mxu2 %v696_v2  ;;  %v4321_v2 = vld [vmem:[%s4696_s17 + $0x18] sm:$0xff] }
 0x262   : > { %v5299_v36 = vpop.f32.mrf.mxu3 }
 0x263   : > { %1639 = vmatpush.msra.mxu2 %v695_v47 }
 0x264   : > { %1387 = vmatmul.f32.gmra.mxu0 %v665_v39  ;;  %1452 = vmatmul.f32.gmra.mxu1 %v634_v27  ;;  %v644_v39 = vld [vmem:[%s4674_s15 + $0xc8] sm:$0xff]  ;;  %v1135_v27 = vpop.f32.mrf.mxu2 }
 0x265   : > { %v1136_v32 = vadd.f32 %v5167_v42, %v1135_v27 }
 0x267   : > { %3950 = vmatmul.msk.f32.gmra.mxu3 %vm744_vm0, %v1222_v10  ;;  %v677_v10 = vld [vmem:[%s4674_s15 + $0x1d0] sm:$0xff]  ;;  %v1249_v47 = vadd.f32 %v5170_v46, %v1136_v32 }
 0x269   : > { %v5251_v48 = vpop.f32.mrf.mxu0 }
 0x26a   : > { %v5318_v45 = vpop.f32.mrf.mxu3 }
 0x26c   : > { %1390 = vmatmul.f32.gmra.mxu0 %v667_v49  ;;  %1455 = vmatmul.f32.gmra.mxu1 %v636_v38  ;;  %v1124_v49 = vadd.f32 %v5167_v42, %v5255_v50  ;;  %v1138_v11 = vpop.f32.mrf.mxu2 }
 0x26e   : > { %v1237_v33 = vadd.f32 %v5099_v51, %v1124_v49  ;;  %v1130_v51 = vadd.f32 %v5167_v42, %v1129_v1 }
 0x26f   : > { %3951 = vmatmul.msk.f32.gmra.mxu3 %vm744_vm0, %v1225_v0  ;;  %v4318_v0 = vld [vmem:[%s4696_s17] sm:$0xff] }
 0x270   : > { %v1243_v63 = vadd.f32 %v5128_v9, %v1130_v51 }
 0x271   : > { %v5269_v21 = vpop.f32.mrf.mxu0 }
 0x272   : > { %v5329_v56 = vpop.f32.mrf.mxu3 }
 0x274   : > { %1393 = vmatmul.f32.gmra.mxu0 %v669_v25  ;;  %1458 = vmatmul.f32.gmra.mxu1 %v638_v60  ;;  %v648_v25 = vld [vmem:[%s4674_s15 + $0xe8] sm:$0xff]  ;;  %v1141_v60 = vpop.f32.mrf.mxu2 }
 0x277   : > { %3952 = vmatmul.msk.f32.gmra.mxu3 %vm744_vm0, %v1228_v12  ;;  %v1133_v12 = vadd.f32 %v5167_v42, %v1132_v29 }
 0x279   : > { %v5277_v7 = vpop.f32.mrf.mxu0  ;;  %v1246_v9 = vadd.f32 %v5151_v16, %v1133_v12 }
 0x27c   : > { %1396 = vmatmul.f32.gmra.mxu0 %v671_v54  ;;  %1461 = vmatmul.f32.gmra.mxu1 %v640_v6  ;;  %v5343_v54 = vpop.f32.mrf.mxu3  ;;  %v5348_v6 = vld [vmem:[%s7320_s23] ss:$0 sm:$0xff]  ;;  %v1144_v1 = vpop.f32.mrf.mxu2 }
 0x27d   : > { %v1320_v26 = vadd.f32 %v5348_v6, %v5145_v18  ;;  %v1323_v29 = vadd.f32 %v5348_v6, %v5155_v20  ;;  %v1326_v27 = vadd.f32 %v5348_v6, %v5178_v43  ;;  %v1329_v43 = vadd.f32 %v5348_v6, %v5198_v34 }
 0x27e   : > { %v1332_v34 = vadd.f32 %v5348_v6, %v5209_v19 }
 0x27f   : > { %3953 = vmatmul.msk.f32.gmra.mxu3 %vm744_vm0, %v1231_v30  ;;  %v4320_v30 = vld [vmem:[%s4696_s17 + $0x10] sm:$0xff] }
 0x281   : > { %v5293_v17 = vpop.f32.mrf.mxu0 }
 0x284   : > { %1399 = vmatmul.f32.gmra.mxu0 %v673_v23  ;;  %1464 = vmatmul.f32.gmra.mxu1 %v642_v8  ;;  %v652_v23 = vld [vmem:[%s4674_s15 + $0x108] sm:$0xff]  ;;  %v5363_v35 = vpop.f32.mrf.mxu3  ;;  %v1147_v18 = vpop.f32.mrf.mxu2 }
 0x287   : > { %3954 = vmatmul.msk.f32.gmra.mxu3 %vm744_vm0, %v1234_v44  ;;  %v1139_v44 = vadd.f32 %v5167_v42, %v1138_v11  ;;  %v1142_v11 = vadd.f32 %v5167_v42, %v1141_v60  ;;  %v1145_v60 = vadd.f32 %v5167_v42, %v1144_v1  ;;  %v1335_v1 = vadd.f32 %v5348_v6, %v5218_v22 }
 0x289   : > { %v5307_v13 = vpop.f32.mrf.mxu0 }
 0x28c   : > { %1402 = vmatmul.f32.gmra.mxu0 %v675_v40  ;;  %1467 = vmatmul.f32.gmra.mxu1 %v644_v39  ;;  %v654_v39 = vld [vmem:[%s4674_s15 + $0x118] sm:$0xff]  ;;  %v5377_v20 = vpop.f32.mrf.mxu3  ;;  %v1150_v49 = vpop.f32.mrf.mxu2 }
 0x28f   : > { %3955 = vmatmul.msk.f32.gmra.mxu3 %vm744_vm0, %v1237_v33  ;;  %v656_v33 = vld [vmem:[%s4674_s15 + $0x128] sm:$0xff] }
 0x291   : > { %v5323_v38 = vpop.f32.mrf.mxu0 }
 0x294   : > { %1405 = vmatmul.f32.gmra.mxu0 %v677_v10  ;;  %1470 = vmatmul.f32.gmra.mxu1 %v646_v52 }
 0x297   : > { %3956 = vmatmul.msk.f32.gmra.mxu3 %vm744_vm0, %v1240_v31 }
 0x299   : > { %v5332_v50 = vpop.f32.mrf.mxu0 }
 0x29c   : > { %3976 = vmatmul.msk.f32.vlgmr.msra.gmra.mxu0 %vm744_vm0, %v4318_v0  ;;  %1473 = vmatmul.f32.gmra.mxu1 %v648_v25  ;;  %v1252_v25 = vadd.f32 %v5193_v57, %v1139_v44  ;;  %v5393_v0 = vpop.f32.mrf.mxu3  ;;  %v1153_v57 = vpop.f32.mrf.mxu2 }
 0x29f   : > { %3957 = vmatmul.msk.f32.gmra.mxu3 %vm744_vm0, %v1243_v63  ;;  %v4323_v63 = vld [vmem:[%s4696_s17 + $0x28] sm:$0xff] }
 0x2a1   : > { %v5340_v28 = vpop.f32.mrf.mxu0 }
 0x2a4   : > { %3977 = vmatmul.msk.f32.gmra.mxu0 %vm744_vm0, %v4319_v55  ;;  %1476 = vmatmul.f32.gmra.mxu1 %v650_v3  ;;  %v658_v3 = vld [vmem:[%s4674_s15 + $0x138] sm:$0xff]  ;;  %v1156_v19 = vpop.f32.mrf.mxu2 }
 0x2a7   : > { %3958 = vmatmul.msk.f32.gmra.mxu3 %vm744_vm0, %v1246_v9  ;;  %v1258_v9 = vadd.f32 %v5222_v53, %v1145_v60 }
 0x2a9   : > { %v5357_v58 = vpop.f32.mrf.mxu0  ;;  %v1432_v15 = vpop.f32.mrf.mxu1 }
 0x2aa   : > { %v1433_v8 = vadd.f32 %v1432_v15, %v1320_v26  ;;  %v1255_v26 = vadd.f32 %v5206_v4, %v1142_v11  ;;  %v4324_v4 = vld [vmem:[%s4696_s17 + $0x30] sm:$0xff] }
 0x2ac   : > { %3978 = vmatmul.msk.f32.gmra.mxu0 %vm744_vm0, %v4320_v30  ;;  %1479 = vmatmul.f32.gmra.mxu1 %v652_v23  ;;  %v660_v23 = vld [vmem:[%s4674_s15 + $0x148] sm:$0xff]  ;;  %v5410_v30 = vpop.f32.mrf.mxu3  ;;  %v1159_v22 = vpop.f32.mrf.mxu2 }
 0x2ad   : > { %3912 = vmatmul.msk.f32.vlgmr.msra.gmra.mxu2 %vm744_vm0, %v1433_v8 }
 0x2af   : > { %3959 = vmatmul.msk.f32.gmra.mxu3 %vm744_vm0, %v1249_v47 }
 0x2b1   : > { %v5370_v62 = vpop.f32.mrf.mxu0  ;;  %v1435_v40 = vpop.f32.mrf.mxu1 }
 0x2b2   : > { %v1436_v16 = vadd.f32 %v1435_v40, %v1323_v29  ;;  %v1148_v29 = vadd.f32 %v5167_v42, %v1147_v18  ;;  %v1338_v18 = vadd.f32 %v5348_v6, %v5229_v41 }
 0x2b4   : > { %3979 = vmatmul.msk.f32.gmra.mxu0 %vm744_vm0, %v4321_v2  ;;  %1482 = vmatmul.f32.gmra.mxu1 %v654_v39  ;;  %v662_v39 = vld [vmem:[%s4674_s15 + $0x158] sm:$0xff]  ;;  %v1261_v53 = vadd.f32 %v5235_v24, %v1148_v29  ;;  %v5426_v47 = vpop.f32.mrf.mxu3 }
 0x2b5   : > { %3913 = vmatmul.msk.f32.gmra.mxu2 %vm744_vm0, %v1436_v16  ;;  %v4325_v2 = vld [vmem:[%s4696_s17 + $0x38] sm:$0xff] }
 0x2b6   : > { %v670_v29 = vld [vmem:[%s4674_s15 + $0x198] sm:$0xff] }
 0x2b7   : > { %3960 = vmatmul.msk.f32.gmra.mxu3 %vm744_vm0, %v1252_v25  ;;  %v1154_v25 = vadd.f32 %v5167_v42, %v1153_v57  ;;  %v1157_v57 = vadd.f32 %v5167_v42, %v1156_v19 }
 0x2b9   : > { %v5383_v10 = vpop.f32.mrf.mxu0  ;;  %v1438_v52 = vpop.f32.mrf.mxu1 }
 0x2ba   : > { %v1439_v46 = vadd.f32 %v1438_v52, %v1326_v27  ;;  %v1151_v27 = vadd.f32 %v5167_v42, %v1150_v49  ;;  %v1341_v49 = vadd.f32 %v5348_v6, %v5239_v37  ;;  %v1344_v37 = vadd.f32 %v5348_v6, %v5251_v48 }
 0x2bb   : > { %v1347_v48 = vadd.f32 %v5348_v6, %v5269_v21 }
 0x2bc   : > { %3980 = vmatmul.msk.f32.gmra.mxu0 %vm744_vm0, %v4322_v14  ;;  %1485 = vmatmul.f32.gmra.mxu1 %v656_v33  ;;  %v664_v33 = vld [vmem:[%s4674_s15 + $0x168] sm:$0xff]  ;;  %v1264_v14 = vadd.f32 %v5247_v5, %v1151_v27  ;;  %v5440_v41 = vpop.f32.mrf.mxu3 }
 0x2bd   : > { %3914 = vmatmul.msk.f32.gmra.mxu2 %vm744_vm0, %v1439_v46  ;;  %v4326_v46 = vld [vmem:[%s4696_s17 + $0x40] sm:$0xff]  ;;  %v672_v27 = vld [vmem:[%s4674_s15 + $0x1a8] sm:$0xff] }
 0x2bf   : > { %3961 = vmatmul.msk.f32.gmra.mxu3 %vm744_vm0, %v1255_v26 }
 0x2c1   : > { %v5396_v31 = vpop.f32.mrf.mxu0  ;;  %v1441_v51 = vpop.f32.mrf.mxu1 }
 0x2c2   : > { %v1442_v55 = vadd.f32 %v1441_v51, %v1329_v43  ;;  %v1162_v43 = vpop.f32.mrf.mxu2 }
 0x2c4   : > { %3981 = vmatmul.msk.f32.gmra.mxu0 %vm744_vm0, %v4323_v63  ;;  %1488 = vmatmul.f32.gmra.mxu1 %v658_v3  ;;  %v666_v3 = vld [vmem:[%s4674_s15 + $0x178] sm:$0xff]  ;;  %v1267_v63 = vadd.f32 %v5266_v59, %v1154_v25  ;;  %v5456_v26 = vpop.f32.mrf.mxu3 }
 0x2c5   : > { %3915 = vmatmul.msk.f32.gmra.mxu2 %vm744_vm0, %v1442_v55  ;;  %v4327_v55 = vld [vmem:[%s4696_s17 + $0x48] sm:$0xff] }
 0x2c7   : > { %3962 = vmatmul.msk.f32.gmra.mxu3 %vm744_vm0, %v1258_v9  ;;  %v1160_v9 = vadd.f32 %v5167_v42, %v1159_v22 }
 0x2c9   : > { %v5407_v12 = vpop.f32.mrf.mxu0  ;;  %v1444_v15 = vpop.f32.mrf.mxu1 }
 0x2ca   : > { %v1445_v8 = vadd.f32 %v1444_v15, %v1332_v34  ;;  %v668_v15 = vld [vmem:[%s4674_s15 + $0x188] sm:$0xff]  ;;  %v1165_v59 = vpop.f32.mrf.mxu2 }
 0x2cc   : > { %3982 = vmatmul.msk.f32.gmra.mxu0 %vm744_vm0, %v4324_v4  ;;  %1491 = vmatmul.f32.gmra.mxu1 %v660_v23  ;;  %v1270_v4 = vadd.f32 %v5287_v61, %v1157_v57  ;;  %v4329_v61 = vld [vmem:[%s4696_s17 + $0x58] sm:$0xff] }
 0x2cd   : > { %3916 = vmatmul.msk.f32.gmra.mxu2 %vm744_vm0, %v1445_v8  ;;  %v4328_v8 = vld [vmem:[%s4696_s17 + $0x50] sm:$0xff] }
 0x2cf   : > { %3963 = vmatmul.msk.f32.gmra.mxu3 %vm744_vm0, %v1261_v53  ;;  %v1163_v53 = vadd.f32 %v5167_v42, %v1162_v43  ;;  %v674_v43 = vld [vmem:[%s4674_s15 + $0x1b8] sm:$0xff] }
 0x2d1   : > { %v5420_v32 = vpop.f32.mrf.mxu0  ;;  %v1447_v40 = vpop.f32.mrf.mxu1 }
 0x2d2   : > { %v1448_v16 = vadd.f32 %v1447_v40, %v1335_v1  ;;  %v1168_v21 = vpop.f32.mrf.mxu2 }
 0x2d4   : > { %3983 = vmatmul.msk.f32.gmra.mxu0 %vm744_vm0, %v4325_v2  ;;  %1494 = vmatmul.f32.gmra.mxu1 %v662_v39  ;;  %v5473_v39 = vpop.f32.mrf.mxu3  ;;  %v1350_v2 = vadd.f32 %v5348_v6, %v5277_v7 }
 0x2d5   : > { %3917 = vmatmul.msk.f32.gmra.mxu2 %vm744_vm0, %v1448_v16  ;;  %v1273_v16 = vadd.f32 %v5299_v36, %v1160_v9  ;;  %v1276_v36 = vadd.f32 %v5318_v45, %v1163_v53  ;;  %v678_v9 = vld [vmem:[%s4674_s15 + $0x1d8] sm:$0xff] }
 0x2d7   : > { %3964 = vmatmul.msk.f32.gmra.mxu3 %vm744_vm0, %v1264_v14  ;;  %v1166_v14 = vadd.f32 %v5167_v42, %v1165_v59 }
 0x2d9   : > { %v5433_v44 = vpop.f32.mrf.mxu0  ;;  %v1450_v52 = vpop.f32.mrf.mxu1 }
 0x2da   : > { %v1451_v24 = vadd.f32 %v1450_v52, %v1338_v18  ;;  %v1171_v7 = vpop.f32.mrf.mxu2 }
 0x2db   : > { %v1172_v59 = vadd.f32 %v5167_v42, %v1171_v7 }
 0x2dc   : > { %3984 = vmatmul.msk.f32.gmra.mxu0 %vm744_vm0, %v4326_v46  ;;  %1497 = vmatmul.f32.gmra.mxu1 %v664_v33  ;;  %v4330_v33 = vld [vmem:[%s4696_s17 + $0x60] sm:$0xff]  ;;  %v1353_v46 = vadd.f32 %v5348_v6, %v5293_v17 }
 0x2dd   : > { %3918 = vmatmul.msk.f32.gmra.mxu2 %vm744_vm0, %v1451_v24  ;;  %v5489_v24 = vpop.f32.mrf.mxu3 }
 0x2df   : > { %3965 = vmatmul.msk.f32.gmra.mxu3 %vm744_vm0, %v1267_v63 }
 0x2e1   : > { %v5446_v11 = vpop.f32.mrf.mxu0  ;;  %v1453_v51 = vpop.f32.mrf.mxu1 }
 0x2e2   : > { %v1454_v5 = vadd.f32 %v1453_v51, %v1341_v49  ;;  %v4331_v51 = vld [vmem:[%s4696_s17 + $0x68] sm:$0xff]  ;;  %v1174_v63 = vpop.f32.mrf.mxu2 }
 0x2e4   : > { %3985 = vmatmul.msk.f32.gmra.mxu0 %vm744_vm0, %v4327_v55  ;;  %1500 = vmatmul.f32.gmra.mxu1 %v666_v3  ;;  %v1279_v3 = vadd.f32 %v5329_v56, %v1166_v14  ;;  %v1169_v55 = vadd.f32 %v5167_v42, %v1168_v21 }
 0x2e5   : > { %3919 = vmatmul.msk.f32.gmra.mxu2 %vm744_vm0, %v1454_v5  ;;  %v5503_v17 = vpop.f32.mrf.mxu3  ;;  %v1356_v5 = vadd.f32 %v5348_v6, %v5307_v13  ;;  %v1359_v13 = vadd.f32 %v5348_v6, %v5323_v38  ;;  %v5532_v38 = vld [vmem:[%s7321_s27] ss:$0 sm:$0xff] }
 0x2e7   : > { %3966 = vmatmul.msk.f32.gmra.mxu3 %vm744_vm0, %v1270_v4 }
 0x2e9   : > { %v5459_v34 = vpop.f32.mrf.mxu0  ;;  %v1456_v60 = vpop.f32.mrf.mxu1 }
 0x2ea   : > { %v1457_v23 = vadd.f32 %v1456_v60, %v1344_v37  ;;  %v676_v60 = vld [vmem:[%s4674_s15 + $0x1c8] sm:$0xff] }
 0x2ec   : > { %3986 = vmatmul.msk.f32.gmra.mxu0 %vm744_vm0, %v4328_v8  ;;  %1503 = vmatmul.f32.gmra.mxu1 %v668_v15  ;;  %v4332_v15 = vld [vmem:[%s4696_s17 + $0x70] sm:$0xff] }
 0x2ed   : > { %3920 = vmatmul.msk.f32.gmra.mxu2 %vm744_vm0, %v1457_v23  ;;  %v1282_v23 = vadd.f32 %v5343_v54, %v1169_v55  ;;  %v5519_v8 = vpop.f32.mrf.mxu3  ;;  %v4333_v54 = vld [vmem:[%s4696_s17 + $0x78] sm:$0xff] }
 0x2ef   : > { %3967 = vmatmul.msk.f32.gmra.mxu3 %vm744_vm0, %v1273_v16  ;;  %v1175_v16 = vadd.f32 %v5167_v42, %v1174_v63 }
 0x2f1   : > { %v5470_v19 = vpop.f32.mrf.mxu0  ;;  %v1459_v1 = vpop.f32.mrf.mxu1 }
 0x2f2   : > { %v1460_v40 = vadd.f32 %v1459_v1, %v1347_v48 }
 0x2f4   : > { %3987 = vmatmul.msk.f32.gmra.mxu0 %vm744_vm0, %v4329_v61  ;;  %1506 = vmatmul.f32.gmra.mxu1 %v670_v29  ;;  %v1177_v29 = vpop.f32.mrf.mxu2  ;;  %v1362_v61 = vadd.f32 %v5348_v6, %v5332_v50  ;;  %v1288_v50 = vadd.f32 %v5377_v20, %v1175_v16  ;;  %v4335_v20 = vld [vmem:[%s4696_s17 + $0x88] sm:$0xff] }
 0x2f5   : > { %3921 = vmatmul.msk.f32.gmra.mxu2 %vm744_vm0, %v1460_v40  ;;  %v1285_v40 = vadd.f32 %v5363_v35, %v1172_v59  ;;  %v1178_v7 = vadd.f32 %v5167_v42, %v1177_v29 }
 0x2f7   : > { %3968 = vmatmul.msk.f32.gmra.mxu3 %vm744_vm0, %v1276_v36  ;;  %v1365_v36 = vadd.f32 %v5348_v6, %v5340_v28  ;;  %v1291_v28 = vadd.f32 %v5393_v0, %v1178_v7  ;;  %v1380_v7 = vadd.f32 %v5348_v6, %v5407_v12  ;;  %v1383_v12 = vadd.f32 %v5348_v6, %v5420_v32 }
 0x2f8   : > { %v1386_v32 = vadd.f32 %v5348_v6, %v5433_v44  ;;  %v4342_v44 = vld [vmem:[%s4696_s17 + $0xc0] sm:$0xff] }
 0x2f9   : > { %v5483_v22 = vpop.f32.mrf.mxu0  ;;  %v1462_v18 = vpop.f32.mrf.mxu1 }
 0x2fa   : > { %v1463_v52 = vadd.f32 %v1462_v18, %v1350_v2  ;;  %v680_v18 = vld [vmem:[%s4674_s15 + $0x1e8] sm:$0xff] }
 0x2fc   : > { %3988 = vmatmul.msk.f32.gmra.mxu0 %vm744_vm0, %v4330_v33  ;;  %1509 = vmatmul.f32.gmra.mxu1 %v672_v27  ;;  %v5542_v27 = vpop.f32.mrf.mxu3  ;;  %v1180_v33 = vpop.f32.mrf.mxu2 }
 0x2fd   : > { %3922 = vmatmul.msk.f32.gmra.mxu2 %vm744_vm0, %v1463_v52  ;;  %v4334_v52 = vld [vmem:[%s4696_s17 + $0x80] sm:$0xff]  ;;  %v1181_v55 = vadd.f32 %v5167_v42, %v1180_v33 }
 0x2ff   : > { %3969 = vmatmul.msk.f32.gmra.mxu3 %vm744_vm0, %v1279_v3 }
 0x301   : > { %v5496_v49 = vpop.f32.mrf.mxu0  ;;  %v1465_v25 = vpop.f32.mrf.mxu1 }
 0x302   : > { %v1466_v45 = vadd.f32 %v1465_v25, %v1353_v46 }
 0x304   : > { %3989 = vmatmul.msk.f32.gmra.mxu0 %vm744_vm0, %v4331_v51  ;;  %1512 = vmatmul.f32.gmra.mxu1 %v674_v43  ;;  %v5563_v51 = vpop.f32.mrf.mxu3  ;;  %v1183_v3 = vpop.f32.mrf.mxu2 }
 0x305   : > { %3923 = vmatmul.msk.f32.gmra.mxu2 %vm744_vm0, %v1466_v45  ;;  %v682_v45 = vld [vmem:[%s4674_s15 + $0x1f8] sm:$0xff] }
 0x307   : > { %3970 = vmatmul.msk.f32.gmra.mxu3 %vm744_vm0, %v1282_v23  ;;  %v1371_v23 = vadd.f32 %v5348_v6, %v5370_v62 }
 0x309   : > { %v5509_v37 = vpop.f32.mrf.mxu0  ;;  %v1468_v57 = vpop.f32.mrf.mxu1 }
 0x30a   : > { %v1469_v56 = vadd.f32 %v1468_v57, %v1356_v5  ;;  %v1368_v5 = vadd.f32 %v5348_v6, %v5357_v58 }
 0x30c   : > { %3990 = vmatmul.msk.f32.gmra.mxu0 %vm744_vm0, %v4332_v15  ;;  %1515 = vmatmul.f32.gmra.mxu1 %v676_v60  ;;  %v1294_v15 = vadd.f32 %v5410_v30, %v1181_v55  ;;  %v5579_v58 = vpop.f32.mrf.mxu3  ;;  %v4337_v30 = vld [vmem:[%s4696_s17 + $0x98] sm:$0xff] }
 0x30d   : > { %3924 = vmatmul.msk.f32.gmra.mxu2 %vm744_vm0, %v1469_v56  ;;  %v4336_v56 = vld [vmem:[%s4696_s17 + $0x90] sm:$0xff] }
 0x30f   : > { %3971 = vmatmul.msk.f32.gmra.mxu3 %vm744_vm0, %v1285_v40 }
 0x311   : > { %v5522_v4 = vpop.f32.mrf.mxu0  ;;  %v1471_v48 = vpop.f32.mrf.mxu1 }
 0x312   : > { %v1472_v1 = vadd.f32 %v1471_v48, %v1359_v13  ;;  %v1184_v13 = vadd.f32 %v5167_v42, %v1183_v3  ;;  %v1374_v42 = vadd.f32 %v5348_v6, %v5383_v10  ;;  %v1377_v10 = vadd.f32 %v5348_v6, %v5396_v31 }
 0x314   : > { %3991 = vmatmul.msk.f32.gmra.mxu0 %vm744_vm0, %v4333_v54  ;;  %1518 = vmatmul.f32.gmra.mxu1 %v678_v9  ;;  %v1297_v62 = vadd.f32 %v5426_v47, %v1184_v13  ;;  %v5596_v40 = vpop.f32.mrf.mxu3 }
 0x315   : > { %3925 = vmatmul.msk.f32.gmra.mxu2 %vm744_vm0, %v1472_v1 }
 0x317   : > { %3972 = vmatmul.msk.f32.gmra.mxu3 %vm744_vm0, %v1288_v50 }
 0x319   : > { %v2001_v21 = vpop.f32.mrf.mxu0  ;;  %v1474_v2 = vpop.f32.mrf.mxu1 }
 0x31a   : > { %v5539_v53 = vadd.f32 %v5532_v38, %v2001_v21  ;;  %v1475_v35 = vadd.f32 %v1474_v2, %v1362_v61 }
 0x31c   : > { %3992 = vmatmul.msk.f32.gmra.mxu0 %vm744_vm0, %v4334_v52  ;;  %2769 = vrot.lane.b32.xlu0 %v5539_v53, %s4486_s22 }
 0x31d   : > { %3926 = vmatmul.msk.f32.gmra.mxu2 %vm744_vm0, %v1475_v35  ;;  %1521 = vmatmul.f32.gmra.mxu1 %v680_v18  ;;  %v4338_v35 = vld [vmem:[%s4696_s17 + $0xa0] sm:$0xff] }
 0x31f   : > { %3973 = vmatmul.msk.f32.gmra.mxu3 %vm744_vm0, %v1291_v28 }
 0x321   : > { %v2004_v46 = vpop.f32.mrf.mxu0  ;;  %v1477_v14 = vpop.f32.mrf.mxu1 }
 0x322   : > { %v5555_v25 = vadd.f32 %v5532_v38, %v2004_v46  ;;  %v1478_v43 = vadd.f32 %v1477_v14, %v1365_v36  ;;  %v4339_v36 = vld [vmem:[%s4696_s17 + $0xa8] sm:$0xff] }
 0x324   : > { %3993 = vmatmul.msk.f32.gmra.mxu0 %vm744_vm0, %v4335_v20  ;;  %2771 = vrot.lane.b32.xlu0 %v5555_v25, %s4486_s22  ;;  %v4340_v20 = vld [vmem:[%s4696_s17 + $0xb0] sm:$0xff] }
 0x325   : > { %3927 = vmatmul.msk.f32.gmra.mxu2 %vm744_vm0, %v1478_v43  ;;  %1524 = vmatmul.f32.gmra.mxu1 %v682_v45 }
 0x327   : > { %3974 = vmatmul.msk.f32.gmra.mxu3 %vm744_vm0, %v1294_v15  ;;  %v5649_v15 = vld [vmem:[%s7322_s0] ss:$0 sm:$0xff] }
 0x329   : > { %v2007_v63 = vpop.f32.mrf.mxu0  ;;  %v1480_v57 = vpop.f32.mrf.mxu1 }
 0x32a   : > { %v5571_v60 = vadd.f32 %v5532_v38, %v2007_v63  ;;  %v1481_v0 = vadd.f32 %v1480_v57, %v1368_v5  ;;  %v5636_v57 = vpop.f32.mrf.mxu3 }
 0x32c   : > { %3994 = vmatmul.msk.f32.gmra.mxu0 %vm744_vm0, %v4336_v56  ;;  %2773 = vrot.lane.b32.xlu1 %v5571_v60, %s4486_s22 }
 0x32d   : > { %3928 = vmatmul.msk.f32.gmra.mxu2 %vm744_vm0, %v1481_v0  ;;  %v4341_v0 = vld [vmem:[%s4696_s17 + $0xb8] sm:$0xff] }
 0x32f   : > { %3975 = vmatmul.msk.f32.gmra.mxu3 %vm744_vm0, %v1297_v62 }
 0x330   : > { %v1641_v59 = vpop.f32.mrf.mxu2 }
 0x331   : > { %v2010_v48 = vpop.f32.mrf.mxu0  ;;  %v1483_v9 = vpop.f32.mrf.mxu1  ;;  %v1851_v56 = vadd.f32 %v5473_v39, %v1641_v59  ;;  %v1389_v59 = vadd.f32 %v5348_v6, %v5446_v11 }
 0x332   : > { %v5586_v1 = vadd.f32 %v5532_v38, %v2010_v48  ;;  %v1484_v29 = vadd.f32 %v1483_v9, %v1371_v23  ;;  %v5663_v39 = vpop.f32.mrf.mxu3 }
 0x334   : > { %3995 = vmatmul.msk.f32.gmra.mxu0 %vm744_vm0, %v4337_v30  ;;  %2775 = vrot.lane.b32.xlu1 %v5586_v1, %s4486_s22  ;;  %v5657_v30 = vadd.f32 %v5649_v15, %v1851_v56 }
 0x335   : > { %3929 = vmatmul.msk.f32.gmra.mxu2 %vm744_vm0, %v1484_v29 }
 0x336   : > { %v2097_v62 = vadd.f32 %v5539_v53, %v5657_v30 }
 0x338   : > { %v1644_v54 = vpop.f32.mrf.mxu2 }
 0x339   : > { %v2013_v61 = vpop.f32.mrf.mxu0  ;;  %v1486_v16 = vpop.f32.mrf.mxu1 }
 0x33a   : > { %v5600_v21 = vadd.f32 %v5532_v38, %v2013_v61  ;;  %v1487_v2 = vadd.f32 %v1486_v16, %v1374_v42  ;;  %v1854_v42 = vadd.f32 %v5489_v24, %v1644_v54  ;;  %v5684_v11 = vpop.f32.mrf.mxu3  ;;  %v1392_v24 = vadd.f32 %v5348_v6, %v5459_v34 }
 0x33c   : > { %3996 = vmatmul.msk.f32.gmra.mxu0 %vm744_vm0, %v4338_v35  ;;  %2777 = vrot.lane.b32.xlu2 %v5600_v21, %s4486_s22 }
 0x33d   : > { %3930 = vmatmul.msk.f32.gmra.mxu2 %vm744_vm0, %v1487_v2 }
 0x340   : > { %v1647_v47 = vpop.f32.mrf.mxu2 }
 0x341   : > { %v2016_v18 = vpop.f32.mrf.mxu0  ;;  %v1489_v52 = vpop.f32.mrf.mxu1  ;;  %v1857_v54 = vadd.f32 %v5503_v17, %v1647_v47  ;;  %v1395_v17 = vadd.f32 %v5348_v6, %v5470_v19 }
 0x342   : > { %v5610_v50 = vadd.f32 %v5532_v38, %v2016_v18  ;;  %v1490_v33 = vadd.f32 %v1489_v52, %v1377_v10  ;;  %v4008_v18 = vmul.f32 -1.442695, %v2097_v62  ;;  %v5677_v52 = vadd.f32 %v5649_v15, %v1854_v42 }
 0x344   : > { %3997 = vmatmul.msk.f32.gmra.mxu0 %vm744_vm0, %v4339_v36  ;;  %2779 = vrot.lane.b32.xlu2 %v5610_v50, %s4486_s22  ;;  %4126 = vpow2.f32 %v4008_v18  ;;  %v2098_v53 = vadd.f32 %v5555_v25, %v5677_v52 }
 0x345   : > { %3931 = vmatmul.msk.f32.gmra.mxu2 %vm744_vm0, %v1490_v33  ;;  %v4343_v33 = vld [vmem:[%s4696_s17 + $0xc8] sm:$0xff] }
 0x348   : > { %v5619_v31 = vpop.f32.mrf.mxu2 }
 0x349   : > { %v2019_v46 = vpop.f32.mrf.mxu0  ;;  %v1492_v14 = vpop.f32.mrf.mxu1  ;;  %v1860_v47 = vadd.f32 %v5519_v8, %v5619_v31  ;;  %v1398_v31 = vadd.f32 %v5348_v6, %v5483_v22 }
 0x34a   : > { %v5622_v43 = vadd.f32 %v5532_v38, %v2019_v46  ;;  %v1493_v45 = vadd.f32 %v1492_v14, %v1380_v7  ;;  %v4127_v34 = vpop.eup %4126 }
 0x34c   : > { %3998 = vmatmul.msk.f32.gmra.mxu0 %vm744_vm0, %v4340_v20  ;;  %2781 = vrot.lane.b32.xlu0 %v5622_v43, %s4486_s22  ;;  %v4009_v20 = vmul.f32 -1.442695, %v2098_v53  ;;  %v4346_v53 = vld [vmem:[%s4696_s17 + $0xe0] sm:$0xff] }
 0x34d   : > { %3932 = vmatmul.msk.f32.gmra.mxu2 %vm744_vm0, %v1493_v45 }
 0x34e   : > { %4128 = vpow2.f32 %v4009_v20 }
 0x350   : > { %v5631_v28 = vpop.f32.mrf.mxu2 }
 0x351   : > { %v2022_v3 = vpop.f32.mrf.mxu0  ;;  %v1495_v5 = vpop.f32.mrf.mxu1 }
 0x352   : > { %v5634_v55 = vadd.f32 %v5532_v38, %v2022_v3  ;;  %v1496_v63 = vadd.f32 %v1495_v5, %v1383_v12  ;;  %v5697_v12 = vadd.f32 %v5649_v15, %v1857_v54  ;;  %v4344_v3 = vld [vmem:[%s4696_s17 + $0xd0] sm:$0xff]  ;;  %v1401_v54 = vadd.f32 %v5348_v6, %v5496_v49 }
 0x354   : > { %3999 = vmatmul.msk.f32.gmra.mxu0 %vm744_vm0, %v4341_v0  ;;  %2783 = vrot.lane.b32.xlu1 %v5634_v55, %s4486_s22  ;;  %v2099_v25 = vadd.f32 %v5571_v60, %v5697_v12  ;;  %v5714_v0 = vadd.f32 1.0, %v4127_v34  ;;  %v4345_v60 = vld [vmem:[%s4696_s17 + $0xd8] sm:$0xff]  ;;  %v4129_v8 = vpop.eup %4128 }
 0x355   : > { %3933 = vmatmul.msk.f32.gmra.mxu2 %vm744_vm0, %v1496_v63  ;;  %v5712_v63 = vpop.f32.mrf.mxu3  ;;  %v5736_v42 = vadd.f32 1.0, %v4129_v8 }
 0x356   : > { %v4010_v19 = vmul.f32 -1.442695, %v2099_v25  ;;  %4130 = vrcp.f32 %v5714_v0  ;;  %vm2262_vm2 = vweird.f32 %v5714_v0 }
 0x357   : > { %vm2277_vm6 = vweird.f32 %v5736_v42 }
 0x358   : > { %v5651_v23 = vpop.f32.mrf.mxu2  ;;  %4132 = vpow2.f32 %v4010_v19 }
 0x359   : > { %v2025_v13 = vpop.f32.mrf.mxu0  ;;  %v1498_v48 = vpop.f32.mrf.mxu1  ;;  %4134 = vrcp.f32 %v5736_v42 }
 0x35a   : > { %v5654_v9 = vadd.f32 %v5532_v38, %v2025_v13  ;;  %v1499_v29 = vadd.f32 %v1498_v48, %v1386_v32 }
 0x35c   : > { %4000 = vmatmul.msk.f32.gmra.mxu0 %vm744_vm0, %v4342_v44  ;;  %2785 = vrot.lane.b32.xlu2 %v5654_v9, %s4486_s22  ;;  %v5743_v22 = vpop.eup %4130 }
 0x35d   : > { %3934 = vmatmul.msk.f32.gmra.mxu2 %vm744_vm0, %v1499_v29  ;;  %v5720_v29 = vadd.f32 %v5649_v15, %v1860_v47  ;;  %vm2263_vm1 = vweird.f32 %v5743_v22 }
 0x35e   : > { %vm5815_vm3 = vmor %vm2262_vm2, %vm2263_vm1 }
 0x35f   : > { %v2100_v44 = vadd.f32 %v5586_v1, %v5720_v29 }
 0x360   : > { %v5671_v61 = vpop.f32.mrf.mxu2 }
 0x361   : > { %v2028_v16 = vpop.f32.mrf.mxu0  ;;  %v1501_v2 = vpop.f32.mrf.mxu1 }
 0x362   : > { %v5674_v35 = vadd.f32 %v5532_v38, %v2028_v16  ;;  %v1502_v10 = vadd.f32 %v1501_v2, %v1389_v59  ;;  %v1863_v59 = vadd.f32 %v5542_v27, %v5631_v28  ;;  %v4133_v27 = vpop.eup %4132  ;;  %v2258_v28 = vmul.f32 %v5743_v22, %v5714_v0 }
 0x363   : > { %v5764_v20 = vadd.f32 1.0, %v4133_v27 }
 0x364   : > { %4001 = vmatmul.msk.f32.gmra.mxu0 %vm744_vm0, %v4343_v33  ;;  %2787 = vrot.lane.b32.xlu0 %v5674_v35, %s4486_s22  ;;  %v5741_v33 = vpop.f32.mrf.mxu3  ;;  %v5746_v1 = vadd.f32 %v5649_v15, %v1863_v59  ;;  %v2259_v25 = vsub.f32 1.0, %v2258_v28  ;;  %v4348_v28 = vld [vmem:[%s4696_s17 + $0xf0] sm:$0xff] }
 0x365   : > { %3935 = vmatmul.msk.f32.gmra.mxu2 %vm744_vm0, %v1502_v10  ;;  %vm2292_vm10 = vweird.f32 %v5764_v20 }
 0x368   : > { %v5691_v36 = vpop.f32.mrf.mxu2 }
 0x369   : > { %v2031_v7 = vpop.f32.mrf.mxu0  ;;  %v1504_v46 = vpop.f32.mrf.mxu1 }
 0x36a   : > { %v5694_v14 = vadd.f32 %v5532_v38, %v2031_v7  ;;  %v1505_v45 = vadd.f32 %v1504_v46, %v1392_v24  ;;  %v4011_v24 = vmul.f32 -1.442695, %v2100_v44  ;;  %v2101_v7 = vadd.f32 %v5600_v21, %v5746_v1  ;;  %v4347_v21 = vld [vmem:[%s4696_s17 + $0xe8] sm:$0xff] }
 0x36b   : > { %v1866_v46 = vadd.f32 %v5563_v51, %v5651_v23 }
 0x36c   : > { %4002 = vmatmul.msk.f32.gmra.mxu0 %vm744_vm0, %v4344_v3  ;;  %2789 = vrot.lane.b32.xlu1 %v5694_v14, %s4486_s22  ;;  %4136 = vpow2.f32 %v4011_v24  ;;  %v4012_v49 = vmul.f32 -1.442695, %v2101_v7  ;;  %v5778_v51 = vpop.f32.mrf.mxu3 }
 0x36d   : > { %3936 = vmatmul.msk.f32.gmra.mxu2 %vm744_vm0, %v1505_v45  ;;  %4138 = vrcp.f32 %v5764_v20 }
 0x36e   : > { %4140 = vpow2.f32 %v4012_v49  ;;  %v1407_v49 = vadd.f32 %v5348_v6, %v5522_v4 }
 0x370   : > { %v5710_v5 = vpop.f32.mrf.mxu2 }
 0x371   : > { %v2034_v32 = vpop.f32.mrf.mxu0  ;;  %v1507_v56 = vpop.f32.mrf.mxu1 }
 0x372   : > { %v5717_v13 = vadd.f32 %v5532_v38, %v2034_v32  ;;  %v1508_v48 = vadd.f32 %v1507_v56, %v1395_v17  ;;  %v5769_v32 = vpop.eup %4134  ;;  %v5772_v56 = vadd.f32 %v5649_v15, %v1866_v46 }
 0x373   : > { %v4137_v23 = vpop.eup %4136  ;;  %v2273_v19 = vmul.f32 %v5769_v32, %v5736_v42  ;;  %vm2278_vm5 = vweird.f32 %v5769_v32 }
 0x374   : > { %4003 = vmatmul.msk.f32.gmra.mxu0 %vm744_vm0, %v4345_v60  ;;  %2791 = vrot.lane.b32.xlu2 %v5717_v13, %s4486_s22  ;;  %v1404_v60 = vadd.f32 %v5348_v6, %v5509_v37  ;;  %v2102_v8 = vadd.f32 %v5610_v50, %v5772_v56  ;;  %v5793_v59 = vadd.f32 1.0, %v4137_v23  ;;  %v5800_v27 = vpop.eup %4138  ;;  %v2268_v50 = vand.u32 2147483648, %v5714_v0  ;;  %vm5862_vm7 = vmor %vm2277_vm6, %vm2278_vm5 }
 0x375   : > { %3937 = vmatmul.msk.f32.gmra.mxu2 %vm744_vm0, %v1508_v48  ;;  %v2260_v48 = vmul.f32 %v5743_v22, %v2259_v25  ;;  %v2274_v24 = vsub.f32 1.0, %v2273_v19  ;;  %v4141_v46 = vpop.eup %4140  ;;  %vm2293_vm9 = vweird.f32 %v5800_v27 }
 0x376   : > { %4142 = vrcp.f32 %v5793_v59  ;;  %v5836_v19 = vadd.f32 1.0, %v4141_v46  ;;  %vm5907_vm11 = vmor %vm2292_vm10, %vm2293_vm9  ;;  %vm2307_vm14 = vweird.f32 %v5793_v59 }
 0x377   : > { %v2261_v37 = vadd.f32 %v5743_v22, %v2260_v48  ;;  %v2275_v25 = vmul.f32 %v5769_v32, %v2274_v24  ;;  %v1872_v48 = vadd.f32 %v5596_v40, %v5691_v36 }
 0x378   : > { %v5734_v62 = vpop.f32.mrf.mxu2 }
 0x379   : > { %v2037_v16 = vpop.f32.mrf.mxu0  ;;  %v1510_v2 = vpop.f32.mrf.mxu1 }
 0x37a   : > { %v5739_v10 = vadd.f32 %v5532_v38, %v2037_v16  ;;  %v1511_v18 = vadd.f32 %v1510_v2, %v1398_v31  ;;  %v1869_v31 = vadd.f32 %v5579_v58, %v5671_v61  ;;  %v4013_v58 = vmul.f32 -1.442695, %v2102_v8 }
 0x37c   : > { %4004 = vmatmul.msk.f32.gmra.mxu0 %vm744_vm0, %v4346_v53  ;;  %2793 = vrot.lane.b32.xlu0 %v5739_v10, %s4486_s22  ;;  %v5804_v61 = vadd.f32 %v5649_v15, %v1869_v31  ;;  %4144 = vpow2.f32 %v4013_v58  ;;  %v5845_v40 = vpop.eup %4142  ;;  %v2281_v58 = vand.u32 2147483647, %v5736_v42 }
 0x37d   : > { %3938 = vmatmul.msk.f32.gmra.mxu2 %vm744_vm0, %v1511_v18  ;;  %4146 = vrcp.f32 %v5836_v19  ;;  %vm2308_vm13 = vweird.f32 %v5845_v40 }
 0x37e   : > { %v2103_v23 = vadd.f32 %v5622_v43, %v5804_v61  ;;  %v2276_v43 = vadd.f32 %v5769_v32, %v2275_v25  ;;  %vm2282_vm8 = vcmp.eq.f32.partialorder %v2281_v58, 8.507059e+37  ;;  %vm5952_vm15 = vmor %vm2307_vm14, %vm2308_vm13 }
 0x380   : > { %v5762_v45 = vpop.f32.mrf.mxu2  ;;  %v4014_v24 = vmul.f32 -1.442695, %v2103_v23  ;;  %v2280_v7 = vsel %vm5862_vm7, %v5769_v32, %v2276_v43  ;;  %v1410_v32 = vadd.f32 %v5348_v6, %v5440_v41  ;;  %v2298_v41 = vand.u32 2147483648, %v5764_v20 }
 0x381   : > { %v2040_v3 = vpop.f32.mrf.mxu0  ;;  %v1513_v34 = vpop.f32.mrf.mxu1 }
 0x382   : > { %v5767_v17 = vadd.f32 %v5532_v38, %v2040_v3  ;;  %v1514_v47 = vadd.f32 %v1513_v34, %v1401_v54  ;;  %v2266_v54 = vand.u32 2147483647, %v5714_v0  ;;  %v2265_v34 = vsel %vm5815_vm3, %v5743_v22, %v2261_v37 }
 0x383   : > { %v2288_v0 = vmul.f32 %v5800_v27, %v5764_v20  ;;  %v2283_v37 = vand.u32 2147483648, %v5736_v42  ;;  %v2303_v42 = vmul.f32 %v5845_v40, %v5793_v59  ;;  %4148 = vpow2.f32 %v4014_v24 }
 0x384   : > { %4005 = vmatmul.msk.f32.gmra.mxu0 %vm744_vm0, %v4347_v21  ;;  %2795 = vrot.lane.b32.xlu1 %v5767_v17, %s4486_s22  ;;  %v2269_v21 = vor.u32 1.1754944e-38, %v2268_v50  ;;  %vm2267_vm4 = vcmp.eq.f32.partialorder %v2266_v54, 8.507059e+37  ;;  %v4349_v50 = vld [vmem:[%s4696_s17 + $0xf8] sm:$0xff]  ;;  %v4145_v54 = vpop.eup %4144  ;;  %v2296_v24 = vand.u32 2147483647, %v5764_v20  ;;  %vm2322_vm3 = vweird.f32 %v5836_v19 }
 0x385   : > { %3939 = vmatmul.msk.f32.gmra.mxu2 %vm744_vm0, %v1514_v47  ;;  %v5826_v47 = vpop.f32.mrf.mxu3  ;;  %v5883_v23 = vadd.f32 1.0, %v4145_v54 }
 0x386   : > { %vm2297_vm12 = vcmp.eq.f32.partialorder %v2296_v24, 8.507059e+37 }
 0x387   : > { %4150 = vrcp.f32 %v5883_v23  ;;  %vm2337_vm7 = vweird.f32 %v5883_v23 }
 0x388   : > { %v5791_v44 = vpop.f32.mrf.mxu2 }
 0x389   : > { %v2043_v16 = vpop.f32.mrf.mxu0  ;;  %v1516_v2 = vpop.f32.mrf.mxu1 }
 0x38a   : > { %v5797_v18 = vadd.f32 %v5532_v38, %v2043_v16  ;;  %v1517_v53 = vadd.f32 %v1516_v2, %v1404_v60  ;;  %v5838_v60 = vsel %vm2267_vm4, %v2269_v21, %v2265_v34  ;;  %v2289_v16 = vsub.f32 1.0, %v2288_v0 }
 0x38b   : > { %7325 = vst [vmem:[#allocation11_spill] sm:$0xff] %v5838_v60  ;;  %v2284_v34 = vor.u32 1.1754944e-38, %v2283_v37  ;;  %v1875_v0 = vadd.f32 %v5636_v57, %v5710_v5  ;;  %v2304_v5 = vsub.f32 1.0, %v2303_v42 }
 0x38c   : > { %4006 = vmatmul.msk.f32.gmra.mxu0 %vm744_vm0, %v4348_v28  ;;  %2797 = vrot.lane.b32.xlu2 %v5797_v18, %s4486_s22  ;;  %v2290_v46 = vmul.f32 %v5800_v27, %v2289_v16  ;;  %v5893_v16 = vpop.eup %4146 }
 0x38d   : > { %3940 = vmatmul.msk.f32.gmra.mxu2 %vm744_vm0, %v1517_v53  ;;  %v5850_v53 = vadd.f32 %v5649_v15, %v1872_v48  ;;  %v5879_v21 = vpop.f32.mrf.mxu3  ;;  %v5885_v48 = vsel %vm2282_vm8, %v2284_v34, %v2280_v7  ;;  %v5897_v37 = vadd.f32 %v5649_v15, %v1875_v0  ;;  %v4149_v58 = vpop.eup %4148  ;;  %v2318_v28 = vmul.f32 %v5893_v16, %v5836_v19 }
 0x38e   : > { %v2770_v3 = vpop.permute.xlu0 %2769  ;;  %7328 = vst [vmem:[#allocation12_spill] sm:$0xff] %v5885_v48  ;;  %v2291_v57 = vadd.f32 %v5800_v27, %v2290_v46  ;;  %v2305_v20 = vmul.f32 %v5845_v40, %v2304_v5  ;;  %v2299_v46 = vor.u32 1.1754944e-38, %v2298_v41  ;;  %v5926_v0 = vadd.f32 1.0, %v4149_v58  ;;  %v5938_v5 = vpop.eup %4150 }
 0x38f   : > { %v2865_v36 = vmul.f32 %v2770_v3, %v5838_v60  ;;  %v2104_v25 = vadd.f32 %v5634_v55, %v5850_v53  ;;  %v2105_v42 = vadd.f32 %v5654_v9, %v5897_v37  ;;  %v2333_v58 = vmul.f32 %v5938_v5, %v5883_v23 }
 0x390   : > { %v5834_v22 = vpop.f32.mrf.mxu2  ;;  %v2295_v7 = vsel %vm5907_vm11, %v5800_v27, %v2291_v57  ;;  %vm2323_vm2 = vweird.f32 %v5893_v16  ;;  %vm2338_vm6 = vweird.f32 %v5938_v5  ;;  %vm2352_vm11 = vweird.f32 %v5926_v0 }
 0x391   : > { %v2046_v8 = vpop.f32.mrf.mxu0  ;;  %v1519_v4 = vpop.f32.mrf.mxu1  ;;  %vm2324_vm4 = vmor %vm2322_vm3, %vm2323_vm2 }
 0x392   : > { %v5842_v31 = vadd.f32 %v5532_v38, %v2046_v8  ;;  %v1520_v2 = vadd.f32 %v1519_v4, %v1407_v49  ;;  %vm2339_vm8 = vmor %vm2337_vm7, %vm2338_vm6 }
 0x394   : > { %4007 = vmatmul.msk.f32.gmra.mxu0 %vm744_vm0, %v4349_v50  ;;  %2799 = vrot.lane.b32.xlu0 %v5842_v31, %s4486_s22 }
 0x395   : > { %2929 = vrot.lane.b32.xlu2 %v2865_v36, %s4486_s22  ;;  %3941 = vmatmul.msk.f32.gmra.mxu2 %vm744_vm0, %v1520_v2  ;;  %v4015_v36 = vmul.f32 -1.442695, %v2104_v25  ;;  %v1413_v25 = vadd.f32 %v5348_v6, %v5456_v26  ;;  %v2313_v6 = vand.u32 2147483648, %v5793_v59 }
 0x396   : > { %v2772_v3 = vpop.permute.xlu0 %2771 }
 0x397   : > { %v2866_v55 = vmul.f32 %v2772_v3, %v5885_v48  ;;  %4152 = vpow2.f32 %v4015_v36  ;;  %v1878_v3 = vadd.f32 %v5663_v39, %v5734_v62  ;;  %v2306_v39 = vadd.f32 %v5845_v40, %v2305_v20  ;;  %v5936_v62 = vpop.f32.mrf.mxu3 }
 0x398   : > { %v5877_v49 = vpop.f32.mrf.mxu2  ;;  %4154 = vrcp.f32 %v5926_v0  ;;  %v1881_v20 = vadd.f32 %v5684_v11, %v5762_v45  ;;  %v2328_v11 = vand.u32 2147483648, %v5836_v19 }
 0x399   : > { %v2049_v8 = vpop.f32.mrf.mxu0  ;;  %v5942_v41 = vadd.f32 %v5649_v15, %v1878_v3 }
 0x39a   : > { %v5890_v4 = vadd.f32 %v5532_v38, %v2049_v8  ;;  %v1522_v43 = vpop.f32.mrf.mxu1  ;;  %v2319_v8 = vsub.f32 1.0, %v2318_v28 }
 0x39b   : > { %v1523_v2 = vadd.f32 %v1522_v43, %v1410_v32  ;;  %v5928_v32 = vsel %vm2297_vm12, %v2299_v46, %v2295_v7  ;;  %v4016_v43 = vmul.f32 -1.442695, %v2105_v42  ;;  %v2106_v7 = vadd.f32 %v5674_v35, %v5942_v41 }
 0x39c   : > { %2801 = vrot.lane.b32.xlu1 %v5890_v4, %s4486_s22  ;;  %2931 = vrot.lane.b32.xlu0 %v2866_v55, %s4486_s22  ;;  %7331 = vst [vmem:[#allocation13_spill] sm:$0xff] %v5928_v32  ;;  %v2320_v50 = vmul.f32 %v5893_v16, %v2319_v8 }
 0x39d   : > { %3942 = vmatmul.msk.f32.gmra.mxu2 %vm744_vm0, %v1523_v2  ;;  %v2311_v2 = vand.u32 2147483647, %v5793_v59  ;;  %v4153_v24 = vpop.eup %4152  ;;  %v2310_v59 = vsel %vm5952_vm15, %v5845_v40, %v2306_v39  ;;  %4156 = vpow2.f32 %v4016_v43  ;;  %v4017_v45 = vmul.f32 -1.442695, %v2106_v7 }
 0x39e   : > { %v2774_v54 = vpop.permute.xlu1 %2773  ;;  %v5969_v42 = vadd.f32 1.0, %v4153_v24  ;;  %v2321_v40 = vadd.f32 %v5893_v16, %v2320_v50  ;;  %v2326_v39 = vand.u32 2147483647, %v5836_v19  ;;  %v2329_v24 = vor.u32 1.1754944e-38, %v2328_v11 }
 0x39f   : > { %v2867_v55 = vmul.f32 %v2774_v54, %v5928_v32  ;;  %v2314_v54 = vor.u32 1.1754944e-38, %v2313_v6  ;;  %vm2312_vm1 = vcmp.eq.f32.partialorder %v2311_v2, 8.507059e+37  ;;  %v5990_v6 = vpop.f32.mrf.mxu3 }
 0x3a0   : > { %v5922_v34 = vpop.f32.mrf.mxu2  ;;  %4158 = vrcp.f32 %v5969_v42  ;;  %v2325_v2 = vsel %vm2324_vm4, %v5893_v16, %v2321_v40  ;;  %vm2327_vm5 = vcmp.eq.f32.partialorder %v2326_v39, 8.507059e+37  ;;  %vm2367_vm15 = vweird.f32 %v5969_v42 }
 0x3a1   : > { %v2052_v27 = vpop.f32.mrf.mxu0  ;;  %v5972_v3 = vsel %vm2312_vm1, %v2314_v54, %v2310_v59  ;;  %4160 = vpow2.f32 %v4017_v45  ;;  %v6007_v54 = vsel %vm2327_vm5, %v2329_v24, %v2325_v2 }
 0x3a2   : > { %v5933_v9 = vadd.f32 %v5532_v38, %v2052_v27  ;;  %v1525_v57 = vpop.f32.mrf.mxu1  ;;  %7334 = vst [vmem:[#allocation14_spill] sm:$0xff] %v5972_v3  ;;  %v2334_v27 = vsub.f32 1.0, %v2333_v58  ;;  %v1884_v58 = vadd.f32 %v5712_v63, %v5791_v44  ;;  %v2343_v63 = vand.u32 2147483648, %v5883_v23 }
 0x3a3   : > { %v1526_v26 = vadd.f32 %v1525_v57, %v1413_v25  ;;  %v5985_v57 = vadd.f32 %v5649_v15, %v1881_v20  ;;  %7335 = vst [vmem:[#allocation15_spill] sm:$0xff] %v6007_v54 }
 0x3a4   : > { %2933 = vrot.lane.b32.xlu1 %v2867_v55, %s4486_s22  ;;  %2803 = vrot.lane.b32.xlu2 %v5933_v9, %s4486_s22  ;;  %v5979_v55 = vpop.eup %4154  ;;  %v2335_v19 = vmul.f32 %v5938_v5, %v2334_v27  ;;  %v2341_v27 = vand.u32 2147483647, %v5883_v23  ;;  %v2344_v2 = vor.u32 1.1754944e-38, %v2343_v63 }
 0x3a5   : > { %3943 = vmatmul.msk.f32.gmra.mxu2 %vm744_vm0, %v1526_v26  ;;  %v2778_v26 = vpop.permute.xlu2 %2777  ;;  %v4157_v43 = vpop.eup %4156  ;;  %v2348_v36 = vmul.f32 %v5979_v55, %v5926_v0  ;;  %v2107_v50 = vadd.f32 %v5694_v14, %v5985_v57  ;;  %vm2353_vm10 = vweird.f32 %v5979_v55 }
 0x3a6   : > { %v2776_v28 = vpop.permute.xlu1 %2775  ;;  %v2869_v7 = vmul.f32 %v2778_v26, %v6007_v54  ;;  %v2336_v20 = vadd.f32 %v5938_v5, %v2335_v19  ;;  %v6015_v40 = vpop.eup %4158  ;;  %vm2342_vm9 = vcmp.eq.f32.partialorder %v2341_v27, 8.507059e+37  ;;  %vm2354_vm12 = vmor %vm2352_vm11, %vm2353_vm10 }
 0x3a7   : > { %v2868_v8 = vmul.f32 %v2776_v28, %v5972_v3  ;;  %v6005_v28 = vadd.f32 1.0, %v4157_v43  ;;  %v2349_v14 = vsub.f32 1.0, %v2348_v36  ;;  %v4018_v44 = vmul.f32 -1.442695, %v2107_v50  ;;  %v4161_v11 = vpop.eup %4160  ;;  %v6033_v26 = vpop.f32.mrf.mxu3 }
 0x3a8   : > { %v5967_v46 = vpop.f32.mrf.mxu2  ;;  %v2340_v45 = vsel %vm2339_vm8, %v5938_v5, %v2336_v20  ;;  %v2363_v23 = vmul.f32 %v6015_v40, %v5969_v42  ;;  %v1887_v36 = vadd.f32 %v5741_v33, %v5834_v22  ;;  %v6041_v5 = vadd.f32 1.0, %v4161_v11 }
 0x3a9   : > { %v2055_v25 = vpop.f32.mrf.mxu0  ;;  %4162 = vrcp.f32 %v6005_v28  ;;  %v2350_v39 = vmul.f32 %v5979_v55, %v2349_v14  ;;  %v6043_v50 = vsel %vm2342_vm9, %v2344_v2, %v2340_v45  ;;  %v2358_v33 = vand.u32 2147483648, %v5926_v0 }
 0x3aa   : > { %v5977_v35 = vadd.f32 %v5532_v38, %v2055_v25  ;;  %4164 = vpow2.f32 %v4018_v44  ;;  %7336 = vst [vmem:[#allocation16_spill] sm:$0xff] %v6043_v50  ;;  %v6055_v63 = vadd.f32 %v5649_v15, %v1887_v36  ;;  %v2356_v44 = vand.u32 2147483647, %v5926_v0 }
 0x3ab   : > { %v2351_v20 = vadd.f32 %v5979_v55, %v2350_v39  ;;  %4166 = vrcp.f32 %v6041_v5  ;;  %v1890_v0 = vadd.f32 %v5778_v51, %v5877_v49  ;;  %vm2368_vm14 = vweird.f32 %v6015_v40 }
 0x3ac   : > { %2805 = vrot.lane.b32.xlu0 %v5977_v35, %s4486_s22  ;;  %2935 = vrot.lane.b32.xlu2 %v2868_v8, %s4486_s22  ;;  %v6021_v8 = vadd.f32 %v5649_v15, %v1884_v58  ;;  %v2109_v2 = vadd.f32 %v5739_v10, %v6055_v63  ;;  %vm2357_vm13 = vcmp.eq.f32.partialorder %v2356_v44, 8.507059e+37  ;;  %vm2369_vm1 = vmor %vm2367_vm15, %vm2368_vm14  ;;  %vm2382_vm4 = vweird.f32 %v6005_v28 }
 0x3ad   : > { %v2780_v43 = vpop.permute.xlu2 %2779  ;;  %v2355_v45 = vsel %vm2354_vm12, %v5979_v55, %v2351_v20  ;;  %v6089_v44 = vadd.f32 %v5649_v15, %v1890_v0  ;;  %vm2397_vm8 = vweird.f32 %v6041_v5 }
 0x3ae   : > { %v2108_v19 = vadd.f32 %v5717_v13, %v6021_v8  ;;  %v2364_v13 = vsub.f32 1.0, %v2363_v23 }
 0x3af   : > { %v6051_v14 = vpop.eup %4162  ;;  %v6073_v36 = vpop.f32.mrf.mxu3  ;;  %v2110_v0 = vadd.f32 %v5767_v17, %v6089_v44 }
 0x3b0   : > { %v6003_v59 = vpop.f32.mrf.mxu2  ;;  %v4019_v22 = vmul.f32 -1.442695, %v2108_v19  ;;  %v4165_v27 = vpop.eup %4164  ;;  %v2378_v11 = vmul.f32 %v6051_v14, %v6005_v28  ;;  %v2365_v39 = vmul.f32 %v6015_v40, %v2364_v13  ;;  %vm2383_vm3 = vweird.f32 %v6051_v14 }
 0x3b1   : > { %v2058_v16 = vpop.f32.mrf.mxu0  ;;  %v6085_v49 = vpop.eup %4166  ;;  %vm2384_vm5 = vmor %vm2382_vm4, %vm2383_vm3 }
 0x3b2   : > { %v6013_v25 = vadd.f32 %v5532_v38, %v2058_v16  ;;  %v2870_v16 = vmul.f32 %v2780_v43, %v6043_v50  ;;  %v2359_v43 = vor.u32 1.1754944e-38, %v2358_v33  ;;  %4168 = vpow2.f32 %v4019_v22 }
 0x3b3   : > { %v2379_v20 = vsub.f32 1.0, %v2378_v11  ;;  %v2366_v51 = vadd.f32 %v6015_v40, %v2365_v39  ;;  %v2373_v33 = vand.u32 2147483648, %v5969_v42  ;;  %v4020_v22 = vmul.f32 -1.442695, %v2109_v2 }
 0x3b4   : > { %2807 = vrot.lane.b32.xlu1 %v6013_v25, %s4486_s22  ;;  %2937 = vrot.lane.b32.xlu0 %v2869_v7, %s4486_s22  ;;  %vm2398_vm7 = vweird.f32 %v6085_v49 }
 0x3b5   : > { %v2370_v39 = vsel %vm2369_vm1, %v6015_v40, %v2366_v51  ;;  %v2374_v2 = vor.u32 1.1754944e-38, %v2373_v33  ;;  %vm2399_vm9 = vmor %vm2397_vm8, %vm2398_vm7 }
 0x3b8   : > { %v6039_v24 = vpop.f32.mrf.mxu2  ;;  %v4169_v11 = vpop.eup %4168 }
 0x3b9   : > { %v2061_v58 = vpop.f32.mrf.mxu0 }
 0x3ba   : > { %v6048_v7 = vadd.f32 %v5532_v38, %v2061_v58  ;;  %v6075_v58 = vadd.f32 1.0, %v4165_v27  ;;  %v2371_v27 = vand.u32 2147483647, %v5969_v42  ;;  %v1893_v42 = vadd.f32 %v5826_v47, %v5922_v34 }
 0x3bb   : > { %v2388_v34 = vand.u32 2147483648, %v6005_v28 }
 0x3bc   : > { %2939 = vrot.lane.b32.xlu1 %v2870_v16, %s4486_s22  ;;  %2809 = vrot.lane.b32.xlu2 %v6048_v7, %s4486_s22  ;;  %v6077_v16 = vsel %vm2357_vm13, %v2359_v43, %v2355_v45  ;;  %4170 = vrcp.f32 %v6075_v58  ;;  %v2380_v45 = vmul.f32 %v6051_v14, %v2379_v20  ;;  %vm2372_vm2 = vcmp.eq.f32.partialorder %v2371_v27, 8.507059e+37 }
 0x3bd   : > { %7337 = vst [vmem:[#allocation17_spill] sm:$0xff] %v6077_v16  ;;  %4172 = vpow2.f32 %v4020_v22  ;;  %v6110_v40 = vsel %vm2372_vm2, %v2374_v2, %v2370_v39  ;;  %v4021_v27 = vmul.f32 -1.442695, %v2110_v0  ;;  %v6125_v39 = vadd.f32 %v5649_v15, %v1893_v42  ;;  %v2786_v2 = vpop.permute.xlu2 %2785 }
 0x3be   : > { %v2782_v23 = vpop.permute.xlu0 %2781  ;;  %7338 = vst [vmem:[#allocation18_spill] sm:$0xff] %v6110_v40  ;;  %v2381_v51 = vadd.f32 %v6051_v14, %v2380_v45  ;;  %v2389_v0 = vor.u32 1.1754944e-38, %v2388_v34  ;;  %v1896_v42 = vadd.f32 %v5879_v21, %v5967_v46  ;;  %vm2412_vm12 = vweird.f32 %v6075_v58 }
 0x3bf   : > { %v2871_v13 = vmul.f32 %v2782_v23, %v6077_v16  ;;  %v2393_v23 = vmul.f32 %v6085_v49, %v6041_v5  ;;  %v6117_v16 = vpop.f32.mrf.mxu3 }
 0x3c0   : > { %v6071_v19 = vpop.f32.mrf.mxu2 }
 0x3c1   : > { %v2064_v55 = vpop.f32.mrf.mxu0  ;;  %v2394_v17 = vsub.f32 1.0, %v2393_v23  ;;  %v2385_v23 = vsel %vm2384_vm5, %v6051_v14, %v2381_v51 }
 0x3c2   : > { %v6082_v10 = vadd.f32 %v5532_v38, %v2064_v55  ;;  %v6119_v47 = vpop.eup %4170 }
 0x3c3   : > { %v4173_v45 = vpop.eup %4172  ;;  %vm2413_vm11 = vweird.f32 %v6119_v47 }
 0x3c4   : > { %2811 = vrot.lane.b32.xlu0 %v6082_v10, %s4486_s22  ;;  %2941 = vrot.lane.b32.xlu2 %v2871_v13, %s4486_s22  ;;  %v6107_v13 = vadd.f32 1.0, %v4169_v11  ;;  %v2386_v11 = vand.u32 2147483647, %v6005_v28  ;;  %v2408_v28 = vmul.f32 %v6119_v47, %v6075_v58  ;;  %v6143_v3 = vadd.f32 1.0, %v4173_v45  ;;  %vm6208_vm13 = vmor %vm2412_vm12, %vm2413_vm11 }
 0x3c6   : > { %v2784_v43 = vpop.permute.xlu1 %2783  ;;  %4174 = vrcp.f32 %v6107_v13  ;;  %vm2387_vm6 = vcmp.eq.f32.partialorder %v2386_v11, 8.507059e+37  ;;  %v2409_v46 = vsub.f32 1.0, %v2408_v28  ;;  %v2403_v11 = vand.u32 2147483648, %v6041_v5 }
 0x3c7   : > { %v2872_v33 = vmul.f32 %v2784_v43, %v6110_v40  ;;  %v2395_v43 = vmul.f32 %v6085_v49, %v2394_v17  ;;  %4176 = vpow2.f32 %v4021_v27  ;;  %v6145_v14 = vsel %vm2387_vm6, %v2389_v0, %v2385_v23  ;;  %v6164_v23 = vpop.f32.mrf.mxu3 }
 0x3c8   : > { %v6105_v55 = vpop.f32.mrf.mxu2  ;;  %7339 = vst [vmem:[#allocation19_spill] sm:$0xff] %v6145_v14  ;;  %v2873_v17 = vmul.f32 %v2786_v2, %v6145_v14  ;;  %4178 = vrcp.f32 %v6143_v3  ;;  %v2410_v0 = vmul.f32 %v6119_v47, %v2409_v46  ;;  %vm2427_vm1 = vweird.f32 %v6107_v13 }
 0x3c9   : > { %v2067_v20 = vpop.f32.mrf.mxu0  ;;  %v2396_v21 = vadd.f32 %v6085_v49, %v2395_v43  ;;  %vm2442_vm5 = vweird.f32 %v6143_v3 }
 0x3ca   : > { %v6115_v22 = vadd.f32 %v5532_v38, %v2067_v20  ;;  %v2111_v20 = vadd.f32 %v5797_v18, %v6125_v39  ;;  %v6156_v18 = vadd.f32 %v5649_v15, %v1896_v42 }
 0x3cb   : > { %v2400_v2 = vsel %vm2399_vm9, %v6085_v49, %v2396_v21 }
 0x3cc   : > { %2813 = vrot.lane.b32.xlu1 %v6115_v22, %s4486_s22  ;;  %2943 = vrot.lane.b32.xlu0 %v2872_v33, %s4486_s22  ;;  %v6153_v27 = vpop.eup %4174  ;;  %v4022_v45 = vmul.f32 -1.442695, %v2111_v20  ;;  %v2112_v42 = vadd.f32 %v5842_v31, %v6156_v18  ;;  %v6188_v31 = vld [vmem:[%s7321_s27] ss:$0 sm:$0xff] }
 0x3cd   : > { %v4177_v43 = vpop.eup %4176  ;;  %v2423_v28 = vmul.f32 %v6153_v27, %v6107_v13  ;;  %vm2428_vm15 = vweird.f32 %v6153_v27 }
 0x3ce   : > { %4180 = vpow2.f32 %v4022_v45  ;;  %v6179_v14 = vadd.f32 1.0, %v4177_v43  ;;  %v6194_v46 = vpop.eup %4178  ;;  %vm2429_vm2 = vmor %vm2427_vm1, %vm2428_vm15 }
 0x3cf   : > { %v2424_v49 = vsub.f32 1.0, %v2423_v28  ;;  %vm2443_vm4 = vweird.f32 %v6194_v46 }
 0x3d0   : > { %v6141_v33 = vpop.f32.mrf.mxu2  ;;  %4182 = vrcp.f32 %v6179_v14  ;;  %vm2444_vm6 = vmor %vm2442_vm5, %vm2443_vm4  ;;  %vm2457_vm9 = vweird.f32 %v6179_v14 }
 0x3d1   : > { %v2070_v51 = vpop.f32.mrf.mxu0 }
 0x3d2   : > { %v6150_v34 = vadd.f32 %v5532_v38, %v2070_v51  ;;  %v2401_v38 = vand.u32 2147483647, %v6041_v5  ;;  %v1899_v5 = vadd.f32 %v5936_v62, %v6003_v59  ;;  %v2404_v51 = vor.u32 1.1754944e-38, %v2403_v11 }
 0x3d3   : > { %v2411_v59 = vadd.f32 %v6119_v47, %v2410_v0  ;;  %v4023_v11 = vmul.f32 -1.442695, %v2112_v42  ;;  %v2438_v42 = vmul.f32 %v6194_v46, %v6143_v3 }
 0x3d4   : > { %2945 = vrot.lane.b32.xlu1 %v2873_v17, %s4486_s22  ;;  %2815 = vrot.lane.b32.xlu2 %v6150_v34, %s4486_s22  ;;  %vm2402_vm10 = vcmp.eq.f32.partialorder %v2401_v38, 8.507059e+37  ;;  %v6197_v45 = vadd.f32 %v5649_v15, %v1899_v5  ;;  %v2418_v38 = vand.u32 2147483648, %v6075_v58  ;;  %v4181_v28 = vpop.eup %4180  ;;  %v6218_v5 = vpop.f32.mrf.mxu3 }
 0x3d5   : > { %v6181_v40 = vsel %vm2402_vm10, %v2404_v51, %v2400_v2  ;;  %v2425_v2 = vmul.f32 %v6153_v27, %v2424_v49  ;;  %v2415_v0 = vsel %vm6208_vm13, %v6119_v47, %v2411_v59  ;;  %4184 = vpow2.f32 %v4023_v11 }
 0x3d6   : > { %v2788_v20 = vpop.permute.xlu0 %2787  ;;  %7340 = vst [vmem:[#allocation20_spill] sm:$0xff] %v6181_v40 }
 0x3d7   : > { %v2874_v21 = vmul.f32 %v2788_v20, %v6181_v40  ;;  %v1902_v20 = vadd.f32 %v5990_v6, %v6039_v24  ;;  %v6226_v40 = vadd.f32 1.0, %v4181_v28  ;;  %v2426_v11 = vadd.f32 %v6153_v27, %v2425_v2  ;;  %v6236_v24 = vpop.eup %4182 }
 0x3d8   : > { %v6177_v17 = vpop.f32.mrf.mxu2  ;;  %v2439_v6 = vsub.f32 1.0, %v2438_v42  ;;  %v1905_v42 = vadd.f32 %v6033_v26, %v6071_v19  ;;  %vm2458_vm8 = vweird.f32 %v6236_v24 }
 0x3d9   : > { %v2073_v50 = vpop.f32.mrf.mxu0  ;;  %v6240_v28 = vadd.f32 %v5649_v15, %v1902_v20  ;;  %4186 = vrcp.f32 %v6226_v40  ;;  %vm2459_vm10 = vmor %vm2457_vm9, %vm2458_vm8  ;;  %vm2472_vm13 = vweird.f32 %v6226_v40 }
 0x3da   : > { %v6191_v62 = vadd.f32 %v6188_v31, %v2073_v50  ;;  %v2416_v50 = vand.u32 2147483647, %v6075_v58  ;;  %v2113_v58 = vadd.f32 %v5890_v4, %v6197_v45  ;;  %v2440_v20 = vmul.f32 %v6194_v46, %v2439_v6 }
 0x3db   : > { %v4185_v2 = vpop.eup %4184  ;;  %v6267_v19 = vadd.f32 %v5649_v15, %v1905_v42  ;;  %v2446_v42 = vand.u32 2147483647, %v6143_v3 }
 0x3dc   : > { %2817 = vrot.lane.b32.xlu0 %v6191_v62, %s4486_s22  ;;  %2947 = vrot.lane.b32.xlu2 %v2874_v21, %s4486_s22  ;;  %v2419_v21 = vor.u32 1.1754944e-38, %v2418_v38  ;;  %vm2417_vm14 = vcmp.eq.f32.partialorder %v2416_v50, 8.507059e+37  ;;  %v4024_v38 = vmul.f32 -1.442695, %v2113_v58  ;;  %v2433_v50 = vand.u32 2147483648, %v6107_v13  ;;  %v6262_v54 = vpop.f32.mrf.mxu3 }
 0x3dd   : > { %v2430_v58 = vsel %vm2429_vm2, %v6153_v27, %v2426_v11  ;;  %vm2447_vm7 = vcmp.eq.f32.partialorder %v2446_v42, 8.507059e+37  ;;  %v6320_v42 = vld [vmem:[%s7322_s0] ss:$0 sm:$0xff] }
 0x3de   : > { %v2790_v51 = vpop.permute.xlu1 %2789  ;;  %v6229_v47 = vsel %vm2417_vm14, %v2419_v21, %v2415_v0  ;;  %v2431_v0 = vand.u32 2147483647, %v6107_v13  ;;  %v2453_v13 = vmul.f32 %v6236_v24, %v6179_v14  ;;  %4188 = vpow2.f32 %v4024_v38 }
 0x3df   : > { %7343 = vst [vmem:[#allocation21_spill] sm:$0xff] %v6229_v47  ;;  %v2875_v43 = vmul.f32 %v2790_v51, %v6229_v47  ;;  %v2792_v51 = vpop.permute.xlu2 %2791  ;;  %v2434_v21 = vor.u32 1.1754944e-38, %v2433_v50  ;;  %v6275_v50 = vpop.eup %4186 }
 0x3e0   : > { %v6224_v49 = vpop.f32.mrf.mxu2  ;;  %vm2432_vm3 = vcmp.eq.f32.partialorder %v2431_v0, 8.507059e+37  ;;  %v2454_v38 = vsub.f32 1.0, %v2453_v13  ;;  %v1908_v13 = vadd.f32 %v6073_v36, %v6105_v55  ;;  %vm2473_vm12 = vweird.f32 %v6275_v50 }
 0x3e1   : > { %v2076_v59 = vpop.f32.mrf.mxu0  ;;  %v6264_v26 = vsel %vm2432_vm3, %v2434_v21, %v2430_v58  ;;  %vm2474_vm14 = vmor %vm2472_vm13, %vm2473_vm12 }
 0x3e2   : > { %v6234_v4 = vadd.f32 %v6188_v31, %v2076_v59  ;;  %v2114_v59 = vadd.f32 %v5933_v9, %v6240_v28  ;;  %7344 = vst [vmem:[#allocation22_spill] sm:$0xff] %v6264_v26  ;;  %v2876_v11 = vmul.f32 %v2792_v51, %v6264_v26  ;;  %v2441_v9 = vadd.f32 %v6194_v46, %v2440_v20 }
 0x3e3   : > { %v2115_v20 = vadd.f32 %v5977_v35, %v6267_v19  ;;  %v2468_v51 = vmul.f32 %v6275_v50, %v6226_v40  ;;  %v1911_v35 = vadd.f32 %v6117_v16, %v6141_v33  ;;  %v6301_v26 = vadd.f32 %v5649_v15, %v1908_v13 }
 0x3e4   : > { %2819 = vrot.lane.b32.xlu1 %v6234_v4, %s4486_s22  ;;  %2949 = vrot.lane.b32.xlu0 %v2875_v43, %s4486_s22  ;;  %v6258_v43 = vadd.f32 1.0, %v4185_v2  ;;  %v4025_v0 = vmul.f32 -1.442695, %v2114_v59  ;;  %v2448_v2 = vand.u32 2147483648, %v6143_v3  ;;  %v4189_v58 = vpop.eup %4188  ;;  %v2445_v21 = vsel %vm2444_vm6, %v6194_v46, %v2441_v9  ;;  %v6313_v33 = vpop.f32.mrf.mxu3 }
 0x3e5   : > { %v2455_v59 = vmul.f32 %v6236_v24, %v2454_v38  ;;  %v4026_v55 = vmul.f32 -1.442695, %v2115_v20  ;;  %7345 = vst [vmem:[#allocation23_spill] sm:$0xff] %v6301_v26  ;;  %v2469_v38 = vsub.f32 1.0, %v2468_v51  ;;  %v2463_v15 = vand.u32 2147483648, %v6179_v14 }
 0x3e6   : > { %4190 = vrcp.f32 %v6258_v43  ;;  %v2449_v3 = vor.u32 1.1754944e-38, %v2448_v2  ;;  %v2461_v20 = vand.u32 2147483647, %v6179_v14  ;;  %v2116_v51 = vadd.f32 %v6013_v25, %v6301_v26 }
 0x3e7   : > { %4192 = vpow2.f32 %v4025_v0  ;;  %v2456_v16 = vadd.f32 %v6236_v24, %v2455_v59  ;;  %vm2487_vm2 = vweird.f32 %v6258_v43 }
 0x3e8   : > { %v6260_v47 = vpop.f32.mrf.mxu2  ;;  %v6303_v60 = vsel %vm2447_vm7, %v2449_v3, %v2445_v21  ;;  %v2798_v21 = vpop.permute.xlu2 %2797  ;;  %vm2462_vm11 = vcmp.eq.f32.partialorder %v2461_v20, 8.507059e+37  ;;  %v4027_v25 = vmul.f32 -1.442695, %v2116_v51  ;;  %v2476_v20 = vand.u32 2147483647, %v6226_v40 }
 0x3e9   : > { %v2079_v27 = vpop.f32.mrf.mxu0  ;;  %7346 = vst [vmem:[#allocation24_spill] sm:$0xff] %v6303_v60  ;;  %v2460_v3 = vsel %vm2459_vm10, %v6236_v24, %v2456_v16  ;;  %v1914_v51 = vadd.f32 %v6164_v23, %v6177_v17 }
 0x3ea   : > { %v6272_v6 = vadd.f32 %v6188_v31, %v2079_v27  ;;  %vm2477_vm15 = vcmp.eq.f32.partialorder %v2476_v20, 8.507059e+37 }
 0x3eb   : > { %v6372_v17 = vadd.f32 %v6320_v42, %v1914_v51  ;;  %v1917_v51 = vadd.f32 %v6218_v5, %v6224_v49 }
 0x3ec   : > { %2951 = vrot.lane.b32.xlu1 %v2876_v11, %s4486_s22  ;;  %2821 = vrot.lane.b32.xlu2 %v6272_v6, %s4486_s22  ;;  %v6294_v11 = vadd.f32 1.0, %v4189_v58  ;;  %v6306_v9 = vpop.eup %4190  ;;  %v6323_v58 = vadd.f32 %v6320_v42, %v1911_v35 }
 0x3ed   : > { %v4193_v13 = vpop.eup %4192  ;;  %v2483_v59 = vmul.f32 %v6306_v9, %v6258_v43  ;;  %vm2488_vm1 = vweird.f32 %v6306_v9 }
 0x3ee   : > { %v2794_v27 = vpop.permute.xlu0 %2793  ;;  %4194 = vrcp.f32 %v6294_v11  ;;  %v2117_v14 = vadd.f32 %v6048_v7, %v6323_v58  ;;  %vm6403_vm3 = vmor %vm2487_vm2, %vm2488_vm1  ;;  %vm2502_vm6 = vweird.f32 %v6294_v11 }
 0x3ef   : > { %v2877_v0 = vmul.f32 %v2794_v27, %v6303_v60  ;;  %4196 = vpow2.f32 %v4026_v55  ;;  %v2470_v27 = vmul.f32 %v6275_v50, %v2469_v38  ;;  %v2484_v32 = vsub.f32 1.0, %v2483_v59 }
 0x3f0   : > { %v6298_v36 = vpop.f32.mrf.mxu2  ;;  %v2930_v23 = vpop.permute.xlu2 %2929 }
 0x3f1   : > { %v2082_v46 = vpop.f32.mrf.mxu0  ;;  %v2471_v38 = vadd.f32 %v6275_v50, %v2470_v27  ;;  %v2485_v59 = vmul.f32 %v6306_v9, %v2484_v32 }
 0x3f2   : > { %v6310_v2 = vadd.f32 %v6188_v31, %v2082_v46  ;;  %v2464_v46 = vor.u32 1.1754944e-38, %v2463_v15  ;;  %v2478_v15 = vand.u32 2147483648, %v6226_v40 }
 0x3f3   : > { %v2475_v40 = vsel %vm2474_vm14, %v6275_v50, %v2471_v38  ;;  %v3025_v38 = vadd.f32 %v2930_v23, %v5657_v30  ;;  %v2491_v30 = vand.u32 2147483647, %v6258_v43 }
 0x3f4   : > { %2823 = vrot.lane.b32.xlu0 %v6310_v2, %s4486_s22  ;;  %2953 = vrot.lane.b32.xlu2 %v2877_v0, %s4486_s22  ;;  %v6338_v0 = vadd.f32 1.0, %v4193_v13  ;;  %v6342_v55 = vsel %vm2462_vm11, %v2464_v46, %v2460_v3  ;;  %v6346_v26 = vpop.eup %4194  ;;  %v4028_v13 = vmul.f32 -1.442695, %v2117_v14  ;;  %v1920_v46 = vadd.f32 %v6262_v54, %v6260_v47 }
 0x3f5   : > { %7347 = vst [vmem:[#allocation25_spill] sm:$0xff] %v6342_v55  ;;  %v4197_v7 = vpop.eup %4196  ;;  %v2498_v27 = vmul.f32 %v6346_v26, %v6294_v11  ;;  %v2493_v47 = vand.u32 2147483648, %v6258_v43  ;;  %vm2492_vm4 = vcmp.eq.f32.partialorder %v2491_v30, 8.507059e+37  ;;  %vm2503_vm5 = vweird.f32 %v6346_v26 }
 0x3f6   : > { %v2796_v35 = vpop.permute.xlu1 %2795  ;;  %4198 = vrcp.f32 %v6338_v0  ;;  %v6368_v3 = vadd.f32 1.0, %v4197_v7  ;;  %vm6452_vm7 = vmor %vm2502_vm6, %vm2503_vm5  ;;  %vm2517_vm10 = vweird.f32 %v6338_v0 }
 0x3f7   : > { %v2878_v24 = vmul.f32 %v2796_v35, %v6342_v55  ;;  %4200 = vpow2.f32 %v4027_v25  ;;  %v2479_v35 = vor.u32 1.1754944e-38, %v2478_v15  ;;  %v2486_v25 = vadd.f32 %v6306_v9, %v2485_v59 }
 0x3f8   : > { %v6344_v48 = vpop.f32.mrf.mxu2  ;;  %4202 = vpow2.f32 %v4028_v13  ;;  %v2118_v13 = vadd.f32 %v6082_v10, %v6372_v17  ;;  %v6395_v59 = vadd.f32 %v6320_v42, %v1920_v46  ;;  %v2494_v23 = vor.u32 1.1754944e-38, %v2493_v47 }
 0x3f9   : > { %v2085_v60 = vpop.f32.mrf.mxu0  ;;  %v6376_v14 = vsel %vm2477_vm15, %v2479_v35, %v2475_v40  ;;  %4204 = vrcp.f32 %v6368_v3  ;;  %v2490_v43 = vsel %vm6403_vm3, %v6306_v9, %v2486_v25  ;;  %vm2532_vm14 = vweird.f32 %v6368_v3 }
 0x3fa   : > { %v6352_v16 = vadd.f32 %v6188_v31, %v2085_v60  ;;  %v6363_v60 = vpop.f32.mrf.mxu3  ;;  %7348 = vst [vmem:[#allocation26_spill] sm:$0xff] %v6376_v14  ;;  %v2879_v50 = vmul.f32 %v2798_v21, %v6376_v14  ;;  %4206 = vtanh.f32 %v3025_v38  ;;  %v6426_v14 = vsel %vm2492_vm4, %v2494_v23, %v2490_v43 }
 0x3fb   : > { %7349 = vst [vmem:[#allocation27_spill] sm:$0xff] %v6395_v59 }
 0x3fc   : > { %2825 = vrot.lane.b32.xlu1 %v6352_v16, %s4486_s22  ;;  %2955 = vrot.lane.b32.xlu0 %v2878_v24, %s4486_s22  ;;  %v2499_v24 = vsub.f32 1.0, %v2498_v27  ;;  %v6380_v7 = vpop.eup %4198  ;;  %7353 = vst [vmem:[#allocation29_spill] sm:$0xff] %v6426_v14 }
 0x3fd   : > { %v4201_v54 = vpop.eup %4200  ;;  %v2513_v49 = vmul.f32 %v6380_v7, %v6338_v0  ;;  %vm2518_vm9 = vweird.f32 %v6380_v7 }
 0x3fe   : > { %v2500_v10 = vmul.f32 %v6346_v26, %v2499_v24  ;;  %v4203_v27 = vpop.eup %4202  ;;  %v6408_v5 = vadd.f32 1.0, %v4201_v54  ;;  %v2120_v24 = vadd.f32 %v6150_v34, %v6395_v59  ;;  %v6424_v54 = vpop.permute.xlu2 %2803  ;;  %v2508_v34 = vand.u32 2147483648, %v6294_v11  ;;  %vm6487_vm11 = vmor %vm2517_vm10, %vm2518_vm9 }
 0x3ff   : > { %v6415_v46 = vpop.eup %4204  ;;  %v6422_v38 = vadd.f32 1.0, %v4203_v27  ;;  %v2514_v25 = vsub.f32 1.0, %v2513_v49  ;;  %v2506_v49 = vand.u32 2147483647, %v6294_v11 }
 0x400   : > { %v1719_v20 = vpop.f32.mrf.mxu2  ;;  %v2501_v9 = vadd.f32 %v6346_v26, %v2500_v10  ;;  %4208 = vrcp.f32 %v6408_v5  ;;  %v6439_v30 = vpop.eup %4206  ;;  %v4031_v27 = vmul.f32 -1.442695, %v2120_v24  ;;  %v2509_v24 = vor.u32 1.1754944e-38, %v2508_v34 }
 0x401   : > { %v2088_v32 = vpop.f32.mrf.mxu0  ;;  %7354 = vst [vmem:[#allocation30_spill] sm:$0xff] %v6439_v30  ;;  %v2515_v43 = vmul.f32 %v6380_v7, %v2514_v25  ;;  %vm2507_vm8 = vcmp.eq.f32.partialorder %v2506_v49, 8.507059e+37  ;;  %v2521_v25 = vand.u32 2147483647, %v6338_v0  ;;  %vm2533_vm13 = vweird.f32 %v6415_v46 }
 0x402   : > { %v6386_v15 = vadd.f32 %v6188_v31, %v2088_v32  ;;  %v1928_v35 = vpop.f32.mrf.mxu3  ;;  %v4029_v32 = vmul.f32 -1.442695, %v2118_v13  ;;  %v2505_v11 = vsel %vm6452_vm7, %v6346_v26, %v2501_v9  ;;  %vm6533_vm15 = vmor %vm2532_vm14, %vm2533_vm13  ;;  %vm2547_vm3 = vweird.f32 %v6408_v5 }
 0x403   : > { %v1929_v55 = vadd.f32 %v1928_v35, %v1719_v20  ;;  %v6468_v59 = vsel %vm2507_vm8, %v2509_v24, %v2505_v11  ;;  %v2516_v9 = vadd.f32 %v6380_v7, %v2515_v43  ;;  %v1923_v43 = vadd.f32 %v6313_v33, %v6298_v36 }
 0x404   : > { %2957 = vrot.lane.b32.xlu1 %v2879_v50, %s4486_s22  ;;  %2827 = vrot.lane.b32.xlu2 %v6386_v15, %s4486_s22  ;;  %v6418_v50 = vadd.f32 %v6320_v42, %v1917_v51  ;;  %v2528_v51 = vmul.f32 %v6415_v46, %v6368_v3  ;;  %4210 = vpow2.f32 %v4029_v32  ;;  %vm6500_vm12 = vcmp.eq.f32.partialorder %v2521_v25, 8.507059e+37 }
 0x405   : > { %4212 = vrcp.f32 %v6422_v38  ;;  %v6485_v49 = vadd.f32 %v6320_v42, %v1929_v55  ;;  %v2538_v25 = vand.u32 2147483648, %v6368_v3  ;;  %vm2562_vm6 = vweird.f32 %v6422_v38 }
 0x406   : > { %v2800_v40 = vpop.permute.xlu0 %2799  ;;  %7352 = vst [vmem:[#allocation28_spill] sm:$0xff] %v6418_v50  ;;  %v2119_v10 = vadd.f32 %v6115_v22, %v6418_v50  ;;  %4214 = vpow2.f32 %v4031_v27  ;;  %v2936_v20 = vpop.permute.xlu2 %2935  ;;  %v2523_v27 = vand.u32 2147483648, %v6338_v0  ;;  %v2520_v0 = vsel %vm6487_vm11, %v6380_v7, %v2516_v9 }
 0x407   : > { %v2880_v47 = vmul.f32 %v2800_v40, %v6426_v14  ;;  %v6463_v14 = vpop.eup %4208  ;;  %v2123_v7 = vadd.f32 %v6272_v6, %v6485_v49  ;;  %v2536_v9 = vand.u32 2147483647, %v6368_v3  ;;  %v2539_v55 = vor.u32 1.1754944e-38, %v2538_v25 }
 0x408   : > { %v6456_v22 = vpop.f32.mrf.mxu2  ;;  %vm2548_vm2 = vweird.f32 %v6463_v14  ;;  %v2551_v25 = vand.u32 2147483647, %v6408_v5 }
 0x409   : > { %v2091_v21 = vpop.f32.mrf.mxu0  ;;  %vm2537_vm1 = vcmp.eq.f32.partialorder %v2536_v9, 8.507059e+37  ;;  %vm6577_vm5 = vmor %vm2547_vm3, %vm2548_vm2 }
 0x40a   : > { %v6433_v13 = vadd.f32 %v6188_v31, %v2091_v21  ;;  %v6465_v50 = vpop.f32.mrf.mxu3  ;;  %v4211_v26 = vpop.eup %4210  ;;  %vm2552_vm8 = vcmp.eq.f32.partialorder %v2551_v25, 8.507059e+37 }
 0x40c   : > { %2829 = vrot.lane.b32.xlu0 %v6433_v13, %s4486_s22  ;;  %2959 = vrot.lane.b32.xlu2 %v2880_v47, %s4486_s22  ;;  %v2529_v47 = vsub.f32 1.0, %v2528_v51  ;;  %v6476_v51 = vpop.eup %4212 }
 0x40d   : > { %3121 = vrot.lane.b32.xlu1 %v6439_v30, %s4486_s22  ;;  %v4030_v30 = vmul.f32 -1.442695, %v2119_v10  ;;  %v2543_v10 = vmul.f32 %v6463_v14, %v6408_v5  ;;  %vm2563_vm4 = vweird.f32 %v6476_v51 }
 0x40e   : > { %v2802_v23 = vpop.permute.xlu1 %2801  ;;  %v2932_v32 = vpop.permute.xlu0 %2931  ;;  %v2530_v35 = vmul.f32 %v6415_v46, %v2529_v47  ;;  %v2524_v47 = vor.u32 1.1754944e-38, %v2523_v27  ;;  %vm6594_vm7 = vmor %vm2562_vm6, %vm2563_vm4 }
 0x40f   : > { %v3026_v21 = vadd.f32 %v2932_v32, %v5677_v52  ;;  %v2881_v52 = vmul.f32 %v2802_v23, %v6468_v59  ;;  %v6495_v23 = vadd.f32 1.0, %v4211_v26  ;;  %v2558_v32 = vmul.f32 %v6476_v51, %v6422_v38 }
 0x410   : > { %v2531_v33 = vadd.f32 %v6415_v46, %v2530_v35  ;;  %v6528_v6 = vsel %vm6500_vm12, %v2524_v47, %v2520_v0  ;;  %v3028_v35 = vadd.f32 %v2936_v20, %v5720_v29  ;;  %v1926_v20 = vadd.f32 %v6363_v60, %v6344_v48 }
 0x411   : > { %4216 = vtanh.f32 %v3026_v21  ;;  %v2094_v40 = vpop.f32.mrf.mxu0  ;;  %v2544_v21 = vsub.f32 1.0, %v2543_v10  ;;  %7361 = vst [vmem:[#allocation31_spill] sm:$0xff] %v6528_v6  ;;  %v2559_v10 = vsub.f32 1.0, %v2558_v32  ;;  %v2882_v3 = vmul.f32 %v6424_v54, %v6528_v6 }
 0x412   : > { %v6474_v34 = vadd.f32 %v6188_v31, %v2094_v40  ;;  %4218 = vpow2.f32 %v4030_v30  ;;  %v4215_v30 = vpop.eup %4214  ;;  %v6517_v40 = vpop.f32.mrf.mxu2  ;;  %v4034_v0 = vmul.f32 -1.442695, %v2123_v7  ;;  %v2553_v47 = vand.u32 2147483648, %v6408_v5 }
 0x413   : > { %v6519_v26 = vadd.f32 1.0, %v4215_v30  ;;  %v6537_v31 = vpop.f32.mrf.mxu3  ;;  %v2535_v30 = vsel %vm6533_vm15, %v6415_v46, %v2531_v33  ;;  %v2545_v29 = vmul.f32 %v6463_v14, %v2544_v21  ;;  %v2560_v46 = vmul.f32 %v6476_v51, %v2559_v10 }
 0x414   : > { %2961 = vrot.lane.b32.xlu0 %v2881_v52, %s4486_s22  ;;  %v6556_v32 = vsel %vm2537_vm1, %v2539_v55, %v2535_v30  ;;  %vm2577_vm11 = vweird.f32 %v6495_v23 }
 0x415   : > { %2831 = vrot.lane.b32.xlu1 %v6474_v34, %s4486_s22  ;;  %v2546_v60 = vadd.f32 %v6463_v14, %v2545_v29  ;;  %v2561_v9 = vadd.f32 %v6476_v51, %v2560_v46  ;;  %v2568_v29 = vand.u32 2147483648, %v6422_v38  ;;  %vm2607_vm15 = vweird.f32 %v6519_v26 }
 0x416   : > { %v2934_v11 = vpop.permute.xlu1 %2933 }
 0x417   : > { %v6506_v24 = vpop.eup %4216  ;;  %v3027_v36 = vadd.f32 %v2934_v11, %v5697_v12  ;;  %v6522_v12 = vadd.f32 %v6320_v42, %v1923_v43  ;;  %v6541_v43 = vpop.permute.xlu2 %2809  ;;  %v2550_v27 = vsel %vm6577_vm5, %v6463_v14, %v2546_v60  ;;  %v2566_v14 = vand.u32 2147483647, %v6422_v38 }
 0x418   : > { %3123 = vrot.lane.b32.xlu2 %v6506_v24, %s4486_s22  ;;  %v4219_v52 = vpop.eup %4218 }
 0x419   : > { %4220 = vtanh.f32 %v3027_v36  ;;  %v6549_v11 = vadd.f32 1.0, %v4219_v52  ;;  %v2121_v54 = vadd.f32 %v6191_v62, %v6522_v12  ;;  %v6566_v62 = vadd.f32 %v6320_v42, %v1926_v20 }
 0x41a   : > { %4222 = vrcp.f32 %v6495_v23  ;;  %v2554_v20 = vor.u32 1.1754944e-38, %v2553_v47  ;;  %vm2567_vm9 = vcmp.eq.f32.partialorder %v2566_v14, 8.507059e+37 }
 0x41b   : > { %4224 = vrcp.f32 %v6519_v26  ;;  %v4032_v7 = vmul.f32 -1.442695, %v2121_v54  ;;  %v2122_v5 = vadd.f32 %v6234_v4, %v6566_v62  ;;  %vm2592_vm3 = vweird.f32 %v6549_v11 }
 0x41c   : > { %4226 = vtanh.f32 %v3028_v35  ;;  %v1728_v35 = vpop.f32.mrf.mxu2 }
 0x41d   : > { %2963 = vrot.lane.b32.xlu1 %v2882_v3, %s4486_s22  ;;  %4228 = vpow2.f32 %v4034_v0  ;;  %v1937_v0 = vpop.f32.mrf.mxu3 }
 0x41e   : > { %v2806_v36 = vpop.permute.xlu0 %2805  ;;  %4230 = vrcp.f32 %v6549_v11  ;;  %v1938_v46 = vadd.f32 %v1937_v0, %v1728_v35  ;;  %v4033_v35 = vmul.f32 -1.442695, %v2122_v5  ;;  %v2569_v0 = vor.u32 1.1754944e-38, %v2568_v29 }
 0x41f   : > { %v6558_v33 = vpop.eup %4220  ;;  %v2883_v48 = vmul.f32 %v2806_v36, %v6556_v32  ;;  %4232 = vpow2.f32 %v4032_v7  ;;  %v2942_v54 = vpop.permute.xlu2 %2941  ;;  %v2565_v36 = vsel %vm6594_vm7, %v6476_v51, %v2561_v9  ;;  %v1932_v5 = vadd.f32 %v6465_v50, %v6456_v22 }
 0x420   : > { %v6563_v21 = vpop.eup %4222  ;;  %3125 = vrot.lane.b32.xlu0 %v6558_v33, %s4486_s22  ;;  %v6616_v51 = vadd.f32 %v6320_v42, %v1938_v46  ;;  %v6618_v9 = vsel %vm2567_vm9, %v2569_v0, %v2565_v36 }
 0x421   : > { %2965 = vrot.lane.b32.xlu2 %v2883_v48, %s4486_s22  ;;  %v6581_v10 = vpop.eup %4224  ;;  %v2573_v3 = vmul.f32 %v6563_v21, %v6495_v23  ;;  %v6604_v48 = vsel %vm2552_vm8, %v2554_v20, %v2550_v27  ;;  %v3031_v27 = vadd.f32 %v2942_v54, %v5804_v61  ;;  %vm2578_vm10 = vweird.f32 %v6563_v21 }
 0x422   : > { %v6588_v30 = vpop.eup %4226  ;;  %v2126_v61 = vadd.f32 %v6386_v15, %v6616_v51  ;;  %v6638_v22 = vadd.f32 %v6320_v42, %v1932_v5  ;;  %v2581_v15 = vand.u32 2147483647, %v6495_v23  ;;  %vm6651_vm12 = vmor %vm2577_vm11, %vm2578_vm10  ;;  %vm2608_vm13 = vweird.f32 %v6581_v10 }
 0x423   : > { %7366 = vst [vmem:[#allocation32_spill] sm:$0xff] %v6588_v30  ;;  %v4229_v4 = vpop.eup %4228  ;;  %v2574_v25 = vsub.f32 1.0, %v2573_v3  ;;  %v2885_v3 = vmul.f32 %v6541_v43, %v6618_v9  ;;  %vm6676_vm1 = vmor %vm2607_vm15, %vm2608_vm13 }
 0x424   : > { %v6606_v7 = vpop.eup %4230  ;;  %v6612_v6 = vadd.f32 1.0, %v4229_v4  ;;  %vm2582_vm14 = vcmp.eq.f32.partialorder %v2581_v15, 8.507059e+37  ;;  %v2598_v15 = vand.u32 2147483648, %v6549_v11 }
 0x425   : > { %3127 = vrot.lane.b32.xlu1 %v6588_v30, %s4486_s22  ;;  %v2603_v30 = vmul.f32 %v6581_v10, %v6519_v26  ;;  %v4233_v20 = vpop.eup %4232  ;;  %v2575_v55 = vmul.f32 %v6563_v21, %v2574_v25  ;;  %vm2593_vm2 = vweird.f32 %v6606_v7 }
 0x426   : > { %v2808_v60 = vpop.permute.xlu1 %2807  ;;  %v2938_v47 = vpop.permute.xlu0 %2937  ;;  %v6632_v14 = vadd.f32 1.0, %v4233_v20  ;;  %vm6704_vm5 = vmor %vm2592_vm3, %vm2593_vm2  ;;  %vm2652_vm8 = vweird.f32 %v6612_v6 }
 0x427   : > { %v2884_v52 = vmul.f32 %v2808_v60, %v6604_v48  ;;  %v3029_v38 = vadd.f32 %v2938_v47, %v5746_v1  ;;  %v2588_v1 = vmul.f32 %v6606_v7, %v6549_v11  ;;  %v2604_v29 = vsub.f32 1.0, %v2603_v30 }
 0x428   : > { %v2576_v36 = vadd.f32 %v6563_v21, %v2575_v55  ;;  %v2583_v60 = vand.u32 2147483648, %v6495_v23  ;;  %v4037_v47 = vmul.f32 -1.442695, %v2126_v61  ;;  %vm2622_vm11 = vweird.f32 %v6632_v14 }
 0x429   : > { %4234 = vtanh.f32 %v3029_v38  ;;  %2967 = vrot.lane.b32.xlu0 %v2884_v52, %s4486_s22  ;;  %v2589_v43 = vsub.f32 1.0, %v2588_v1  ;;  %v2605_v4 = vmul.f32 %v6581_v10, %v2604_v29  ;;  %v2613_v1 = vand.u32 2147483648, %v6519_v26 }
 0x42a   : > { %4236 = vpow2.f32 %v4033_v35  ;;  %v2124_v35 = vadd.f32 %v6310_v2, %v6638_v22  ;;  %v2580_v23 = vsel %vm6651_vm12, %v6563_v21, %v2576_v36  ;;  %v2584_v20 = vor.u32 1.1754944e-38, %v2583_v60 }
 0x42b   : > { %4238 = vrcp.f32 %v6612_v6  ;;  %v2590_v38 = vmul.f32 %v6606_v7, %v2589_v43  ;;  %v2606_v0 = vadd.f32 %v6581_v10, %v2605_v4  ;;  %v2611_v2 = vand.u32 2147483647, %v6519_v26 }
 0x42c   : > { %4240 = vtanh.f32 %v3031_v27  ;;  %v6680_v29 = vsel %vm2582_vm14, %v2584_v20, %v2580_v23  ;;  %v4035_v26 = vmul.f32 -1.442695, %v2124_v35  ;;  %v2614_v36 = vor.u32 1.1754944e-38, %v2613_v1 }
 0x42d   : > { %2969 = vrot.lane.b32.xlu1 %v2885_v3, %s4486_s22  ;;  %v1935_v3 = vadd.f32 %v6537_v31, %v6517_v40  ;;  %v2591_v61 = vadd.f32 %v6606_v7, %v2590_v38  ;;  %v2610_v31 = vsel %vm6676_vm1, %v6581_v10, %v2606_v0  ;;  %vm2612_vm4 = vcmp.eq.f32.partialorder %v2611_v2, 8.507059e+37 }
 0x42e   : > { %v2940_v54 = vpop.permute.xlu1 %2939  ;;  %v2816_v46 = vpop.permute.xlu2 %2815  ;;  %v2599_v20 = vor.u32 1.1754944e-38, %v2598_v15  ;;  %v2658_v10 = vand.u32 2147483648, %v6612_v6 }
 0x42f   : > { %v6635_v50 = vpop.eup %4234  ;;  %v3030_v30 = vadd.f32 %v2940_v54, %v5772_v56  ;;  %v6699_v60 = vadd.f32 %v6320_v42, %v1935_v3  ;;  %v2595_v38 = vsel %vm6704_vm5, %v6606_v7, %v2591_v61 }
 0x430   : > { %3129 = vrot.lane.b32.xlu2 %v6635_v50, %s4486_s22  ;;  %v4237_v52 = vpop.eup %4236 }
 0x431   : > { %4242 = vtanh.f32 %v3030_v30  ;;  %v6656_v25 = vpop.eup %4238  ;;  %v6674_v5 = vadd.f32 1.0, %v4237_v52  ;;  %v6710_v52 = vsel %vm2612_vm4, %v2614_v36, %v2610_v31 }
 0x432   : > { %4244 = vrcp.f32 %v6632_v14  ;;  %v6665_v27 = vpop.eup %4240  ;;  %v2648_v30 = vmul.f32 %v6656_v25, %v6612_v6  ;;  %v2888_v0 = vmul.f32 %v2816_v46, %v6710_v52  ;;  %vm2653_vm7 = vweird.f32 %v6656_v25 }
 0x433   : > { %4246 = vpow2.f32 %v4037_v47  ;;  %v2596_v47 = vand.u32 2147483647, %v6549_v11  ;;  %v2125_v11 = vadd.f32 %v6352_v16, %v6699_v60  ;;  %vm6747_vm9 = vmor %vm2652_vm8, %vm2653_vm7  ;;  %vm2637_vm1 = vweird.f32 %v6674_v5 }
 0x434   : > { %4248 = vrcp.f32 %v6674_v5  ;;  %v2649_v23 = vsub.f32 1.0, %v2648_v30 }
 0x435   : > { %3133 = vrot.lane.b32.xlu1 %v6665_v27, %s4486_s22  ;;  %4250 = vpow2.f32 %v4035_v26  ;;  %vm2597_vm6 = vcmp.eq.f32.partialorder %v2596_v47, 8.507059e+37  ;;  %v4036_v31 = vmul.f32 -1.442695, %v2125_v11  ;;  %v1940_v47 = vpop.f32.mrf.mxu3 }
 0x436   : > { %v2812_v55 = vpop.permute.xlu0 %2811  ;;  %v2948_v43 = vpop.permute.xlu2 %2947  ;;  %v6724_v3 = vsel %vm2597_vm6, %v2599_v20, %v2595_v38 }
 0x437   : > { %v6684_v40 = vpop.eup %4242  ;;  %v2886_v54 = vmul.f32 %v2812_v55, %v6680_v29  ;;  %v3034_v56 = vadd.f32 %v2948_v43, %v5942_v41  ;;  %v2650_v55 = vmul.f32 %v6656_v25, %v2649_v23 }
 0x438   : > { %v6692_v4 = vpop.eup %4244  ;;  %3131 = vrot.lane.b32.xlu0 %v6684_v40, %s4486_s22 }
 0x439   : > { %2971 = vrot.lane.b32.xlu2 %v2886_v54, %s4486_s22  ;;  %v4247_v35 = vpop.eup %4246  ;;  %v2618_v1 = vmul.f32 %v6692_v4, %v6632_v14  ;;  %4252 = vtanh.f32 %v3034_v56  ;;  %v1731_v54 = vpop.f32.mrf.mxu2  ;;  %v2651_v43 = vadd.f32 %v6656_v25, %v2650_v55  ;;  %v2656_v56 = vand.u32 2147483647, %v6612_v6 }
 0x43a   : > { %v6722_v41 = vadd.f32 1.0, %v4247_v35  ;;  %v6729_v26 = vpop.eup %4248  ;;  %v1941_v38 = vadd.f32 %v1940_v47, %v1731_v54  ;;  %vm2623_vm10 = vweird.f32 %v6692_v4 }
 0x43b   : > { %v2619_v61 = vsub.f32 1.0, %v2618_v1  ;;  %v4251_v16 = vpop.eup %4250  ;;  %v2655_v11 = vsel %vm6747_vm9, %v6656_v25, %v2651_v43  ;;  %vm2657_vm12 = vcmp.eq.f32.partialorder %v2656_v56, 8.507059e+37  ;;  %vm2624_vm13 = vmor %vm2622_vm11, %vm2623_vm10  ;;  %vm2638_vm15 = vweird.f32 %v6729_v26 }
 0x43c   : > { %v6740_v15 = vadd.f32 1.0, %v4251_v16  ;;  %v6768_v25 = vadd.f32 %v6320_v42, %v1941_v38  ;;  %vm2639_vm2 = vmor %vm2637_vm1, %vm2638_vm15  ;;  %vm2697_vm5 = vweird.f32 %v6722_v41 }
 0x43d   : > { %2975 = vrot.lane.b32.xlu1 %v2888_v0, %s4486_s22  ;;  %v2620_v30 = vmul.f32 %v6692_v4, %v2619_v61 }
 0x43e   : > { %v2814_v7 = vpop.permute.xlu1 %2813  ;;  %v2944_v2 = vpop.permute.xlu0 %2943  ;;  %vm2667_vm9 = vweird.f32 %v6740_v15 }
 0x43f   : > { %v2887_v46 = vmul.f32 %v2814_v7, %v6724_v3  ;;  %v3032_v21 = vadd.f32 %v2944_v2, %v5850_v53  ;;  %v2633_v53 = vmul.f32 %v6729_v26, %v6674_v5  ;;  %v6738_v36 = vpop.eup %4252  ;;  %v2621_v7 = vadd.f32 %v6692_v4, %v2620_v30 }
 0x441   : > { %4254 = vtanh.f32 %v3032_v21  ;;  %2973 = vrot.lane.b32.xlu0 %v2887_v46, %s4486_s22  ;;  %v2634_v6 = vsub.f32 1.0, %v2633_v53  ;;  %v2659_v46 = vor.u32 1.1754944e-38, %v2658_v10  ;;  %v2628_v21 = vand.u32 2147483648, %v6632_v14 }
 0x442   : > { %4256 = vrcp.f32 %v6722_v41 }
 0x443   : > { %4258 = vpow2.f32 %v4036_v31  ;;  %v6770_v55 = vsel %vm2657_vm12, %v2659_v46, %v2655_v11  ;;  %v2625_v31 = vsel %vm2624_vm13, %v6692_v4, %v2621_v7  ;;  %v2635_v54 = vmul.f32 %v6729_v26, %v2634_v6  ;;  %v1943_v46 = vpop.f32.mrf.mxu3 }
 0x444   : > { %4260 = vrcp.f32 %v6740_v15  ;;  %v2629_v30 = vor.u32 1.1754944e-38, %v2628_v21  ;;  %v2643_v11 = vand.u32 2147483648, %v6674_v5  ;;  %v2641_v7 = vand.u32 2147483647, %v6674_v5 }
 0x445   : > { %3139 = vrot.lane.b32.xlu1 %v6738_v36, %s4486_s22 }
 0x446   : > { %v2946_v35 = vpop.permute.xlu1 %2945  ;;  %v2822_v23 = vpop.permute.xlu2 %2821  ;;  %vm2642_vm3 = vcmp.eq.f32.partialorder %v2641_v7, 8.507059e+37 }
 0x447   : > { %v6752_v1 = vpop.eup %4254  ;;  %v3033_v20 = vadd.f32 %v2946_v35, %v5897_v37  ;;  %v2626_v37 = vand.u32 2147483647, %v6632_v14  ;;  %v2891_v16 = vmul.f32 %v2822_v23, %v6770_v55  ;;  %v2127_v14 = vadd.f32 %v6433_v13, %v6768_v25  ;;  %v1734_v13 = vpop.f32.mrf.mxu2 }
 0x448   : > { %v6759_v2 = vpop.eup %4256  ;;  %3135 = vrot.lane.b32.xlu2 %v6752_v1, %s4486_s22  ;;  %v2636_v23 = vadd.f32 %v6729_v26, %v2635_v54  ;;  %v1944_v21 = vadd.f32 %v1943_v46, %v1734_v13 }
 0x449   : > { %4262 = vtanh.f32 %v3033_v20  ;;  %v4259_v61 = vpop.eup %4258  ;;  %v2693_v43 = vmul.f32 %v6759_v2, %v6722_v41  ;;  %vm2627_vm14 = vcmp.eq.f32.partialorder %v2626_v37, 8.507059e+37  ;;  %v4038_v6 = vmul.f32 -1.442695, %v2127_v14 }
 0x44a   : > { %v6782_v53 = vpop.eup %4260  ;;  %v6784_v10 = vadd.f32 1.0, %v4259_v61  ;;  %v6786_v47 = vsel %vm2627_vm14, %v2629_v30, %v2625_v31  ;;  %v2640_v37 = vsel %vm2639_vm2, %v6729_v26, %v2636_v23  ;;  %v6810_v30 = vadd.f32 %v6320_v42, %v1944_v21 }
 0x44b   : > { %v2694_v20 = vsub.f32 1.0, %v2693_v43  ;;  %vm2698_vm4 = vweird.f32 %v6759_v2  ;;  %v2701_v42 = vand.u32 2147483647, %v6722_v41  ;;  %vm2668_vm8 = vweird.f32 %v6782_v53 }
 0x44c   : > { %vm2699_vm6 = vmor %vm2697_vm5, %vm2698_vm4  ;;  %v2128_v13 = vadd.f32 %v6474_v34, %v6810_v30  ;;  %vm2682_vm13 = vweird.f32 %v6784_v10 }
 0x44d   : > { %2981 = vrot.lane.b32.xlu1 %v2891_v16, %s4486_s22  ;;  %v2695_v61 = vmul.f32 %v6759_v2, %v2694_v20  ;;  %v2644_v16 = vor.u32 1.1754944e-38, %v2643_v11  ;;  %vm2702_vm7 = vcmp.eq.f32.partialorder %v2701_v42, 8.507059e+37  ;;  %vm2669_vm10 = vmor %vm2667_vm9, %vm2668_vm8 }
 0x44e   : > { %v2818_v56 = vpop.permute.xlu0 %2817  ;;  %v2954_v4 = vpop.permute.xlu2 %2953 }
 0x44f   : > { %v6789_v38 = vpop.eup %4262  ;;  %v2889_v35 = vmul.f32 %v2818_v56, %v6786_v47  ;;  %v3037_v0 = vadd.f32 %v2954_v4, %v6055_v63  ;;  %v2663_v63 = vmul.f32 %v6782_v53, %v6740_v15  ;;  %v6807_v31 = vsel %vm2642_vm3, %v2644_v16, %v2640_v37 }
 0x450   : > { %3137 = vrot.lane.b32.xlu0 %v6789_v38, %s4486_s22  ;;  %v2696_v26 = vadd.f32 %v6759_v2, %v2695_v61  ;;  %v4039_v61 = vmul.f32 -1.442695, %v2128_v13 }
 0x451   : > { %4264 = vtanh.f32 %v3037_v0  ;;  %2977 = vrot.lane.b32.xlu2 %v2889_v35, %s4486_s22  ;;  %v2664_v43 = vsub.f32 1.0, %v2663_v63  ;;  %v2703_v0 = vand.u32 2147483648, %v6722_v41 }
 0x452   : > { %4266 = vrcp.f32 %v6784_v10  ;;  %v2700_v20 = vsel %vm2699_vm6, %v6759_v2, %v2696_v26 }
 0x453   : > { %4268 = vpow2.f32 %v4038_v6  ;;  %v2704_v7 = vor.u32 1.1754944e-38, %v2703_v0 }
 0x455   : > { %v6834_v63 = vsel %vm2702_vm7, %v2704_v7, %v2700_v20  ;;  %v2688_v20 = vand.u32 2147483648, %v6784_v10 }
 0x456   : > { %v2820_v5 = vpop.permute.xlu1 %2819  ;;  %v2950_v54 = vpop.permute.xlu0 %2949 }
 0x457   : > { %v6812_v14 = vpop.eup %4264  ;;  %v2890_v56 = vmul.f32 %v2820_v5, %v6807_v31  ;;  %v3035_v4 = vadd.f32 %v2950_v54, %v5985_v57  ;;  %v2665_v57 = vmul.f32 %v6782_v53, %v2664_v43  ;;  %v2673_v5 = vand.u32 2147483648, %v6740_v15 }
 0x458   : > { %v6818_v35 = vpop.eup %4266  ;;  %3145 = vrot.lane.b32.xlu1 %v6812_v14, %s4486_s22  ;;  %v2671_v54 = vand.u32 2147483647, %v6740_v15 }
 0x459   : > { %4270 = vtanh.f32 %v3035_v4  ;;  %2979 = vrot.lane.b32.xlu0 %v2890_v56, %s4486_s22  ;;  %v4269_v23 = vpop.eup %4268  ;;  %v2678_v11 = vmul.f32 %v6818_v35, %v6784_v10  ;;  %v2666_v21 = vadd.f32 %v6782_v53, %v2665_v57  ;;  %v2674_v56 = vor.u32 1.1754944e-38, %v2673_v5 }
 0x45a   : > { %v6832_v6 = vadd.f32 1.0, %v4269_v23  ;;  %vm2672_vm11 = vcmp.eq.f32.partialorder %v2671_v54, 8.507059e+37  ;;  %vm2683_vm12 = vweird.f32 %v6818_v35 }
 0x45b   : > { %v2679_v16 = vsub.f32 1.0, %v2678_v11  ;;  %v2686_v11 = vand.u32 2147483647, %v6784_v10  ;;  %vm2684_vm14 = vmor %vm2682_vm13, %vm2683_vm12 }
 0x45c   : > { %vm2712_vm2 = vweird.f32 %v6832_v6 }
 0x45d   : > { %v2680_v43 = vmul.f32 %v6818_v35, %v2679_v16  ;;  %vm2687_vm15 = vcmp.eq.f32.partialorder %v2686_v11, 8.507059e+37 }
 0x45e   : > { %v2952_v46 = vpop.permute.xlu1 %2951  ;;  %v2828_v41 = vpop.permute.xlu2 %2827 }
 0x45f   : > { %v6838_v37 = vpop.eup %4270  ;;  %v3036_v2 = vadd.f32 %v2952_v46, %v6021_v8  ;;  %v2894_v34 = vmul.f32 %v2828_v41, %v6834_v63  ;;  %v2670_v8 = vsel %vm2669_vm10, %v6782_v53, %v2666_v21  ;;  %v2681_v23 = vadd.f32 %v6818_v35, %v2680_v43  ;;  %v4352_v43 = vld [vmem:[%s4696_s17 + $0x8] sm:$0xff] }
 0x460   : > { %3141 = vrot.lane.b32.xlu2 %v6838_v37, %s4486_s22  ;;  %v6851_v4 = vsel %vm2672_vm11, %v2674_v56, %v2670_v8  ;;  %v2689_v41 = vor.u32 1.1754944e-38, %v2688_v20 }
 0x461   : > { %4272 = vtanh.f32 %v3036_v2  ;;  %2987 = vrot.lane.b32.xlu1 %v2894_v34, %s4486_s22 }
 0x462   : > { %4274 = vrcp.f32 %v6832_v6 }
 0x463   : > { %4276 = vpow2.f32 %v4039_v61 }
 0x466   : > { %v2824_v26 = vpop.permute.xlu0 %2823  ;;  %v2960_v0 = vpop.permute.xlu2 %2959 }
 0x467   : > { %v6853_v42 = vpop.eup %4272  ;;  %v2892_v57 = vmul.f32 %v2824_v26, %v6851_v4  ;;  %v3040_v15 = vadd.f32 %v2960_v0, %v6156_v18  ;;  %v2685_v18 = vsel %vm2684_vm14, %v6818_v35, %v2681_v23  ;;  %v2716_v23 = vand.u32 2147483647, %v6832_v6 }
 0x468   : > { %v4275_v53 = vpop.eup %4274  ;;  %3143 = vrot.lane.b32.xlu0 %v6853_v42, %s4486_s22  ;;  %v6869_v21 = vsel %vm2687_vm15, %v2689_v41, %v2685_v18 }
 0x469   : > { %v4277_v13 = vpop.eup %4276  ;;  %4278 = vtanh.f32 %v3040_v15  ;;  %2983 = vrot.lane.b32.xlu2 %v2892_v57, %s4486_s22  ;;  %v2708_v7 = vmul.f32 %v4275_v53, %v6832_v6  ;;  %vm2713_vm1 = vweird.f32 %v4275_v53  ;;  %v2718_v15 = vand.u32 2147483648, %v6832_v6 }
 0x46a   : > { %v6867_v46 = vadd.f32 1.0, %v4277_v13  ;;  %vm2714_vm3 = vmor %vm2712_vm2, %vm2713_vm1  ;;  %vm2717_vm4 = vcmp.eq.f32.partialorder %v2716_v23, 8.507059e+37 }
 0x46b   : > { %v2709_v5 = vsub.f32 1.0, %v2708_v7  ;;  %v2719_v18 = vor.u32 1.1754944e-38, %v2718_v15 }
 0x46c   : > { %4280 = vrcp.f32 %v6867_v46  ;;  %vm2727_vm6 = vweird.f32 %v6867_v46 }
 0x46d   : > { %v2710_v54 = vmul.f32 %v4275_v53, %v2709_v5 }
 0x46e   : > { %v2826_v2 = vpop.permute.xlu1 %2825  ;;  %v2956_v34 = vpop.permute.xlu0 %2955 }
 0x46f   : > { %v6871_v61 = vpop.eup %4278  ;;  %v2893_v16 = vmul.f32 %v2826_v2, %v6869_v21  ;;  %v3038_v10 = vadd.f32 %v2956_v34, %v6089_v44  ;;  %v2711_v44 = vadd.f32 %v4275_v53, %v2710_v54 }
 0x470   : > { %3151 = vrot.lane.b32.xlu1 %v6871_v61, %s4486_s22 }
 0x471   : > { %4282 = vtanh.f32 %v3038_v10  ;;  %2985 = vrot.lane.b32.xlu0 %v2893_v16, %s4486_s22 }
 0x472   : > { %v3124_v35 = vpop.permute.xlu2 %3123  ;;  %v4281_v8 = vpop.eup %4280 }
 0x473   : > { %v3218_v56 = vsub.f32 %v4352_v43, %v3124_v35  ;;  %v2723_v20 = vmul.f32 %v4281_v8, %v6867_v46  ;;  %vm2728_vm5 = vweird.f32 %v4281_v8 }
 0x474   : > { %vm2729_vm7 = vmor %vm2727_vm6, %vm2728_vm5 }
 0x475   : > { %v2724_v2 = vsub.f32 1.0, %v2723_v20  ;;  %v4354_v20 = vld [vmem:[%s4696_s17 + $0x20] sm:$0xff] }
 0x476   : > { %v2958_v26 = vpop.permute.xlu1 %2957 }
 0x477   : > { %v6880_v0 = vpop.eup %4282  ;;  %v3039_v57 = vadd.f32 %v2958_v26, %v6125_v39  ;;  %v2715_v39 = vsel %vm2714_vm3, %v4275_v53, %v2711_v44  ;;  %v2725_v53 = vmul.f32 %v4281_v8, %v2724_v2 }
 0x478   : > { %3147 = vrot.lane.b32.xlu2 %v6880_v0, %s4486_s22  ;;  %3283 = vrot.lane.b32.xlu1 %v3218_v56, %s4487_s12  ;;  %v6891_v7 = vsel %vm2717_vm4, %v2719_v18, %v2715_v39  ;;  %v2733_v56 = vand.u32 2147483648, %v6867_v46 }
 0x479   : > { %4284 = vtanh.f32 %v3039_v57  ;;  %v2726_v54 = vadd.f32 %v4281_v8, %v2725_v53  ;;  %v2731_v57 = vand.u32 2147483647, %v6867_v46 }
 0x47a   : > { %v2734_v23 = vor.u32 1.1754944e-38, %v2733_v56 }
 0x47b   : > { %v2966_v13 = vpop.permute.xlu2 %2965  ;;  %v2730_v44 = vsel %vm2729_vm7, %v4281_v8, %v2726_v54  ;;  %vm2732_vm8 = vcmp.eq.f32.partialorder %v2731_v57, 8.507059e+37 }
 0x47c   : > { %v3043_v11 = vadd.f32 %v2966_v13, %v6267_v19  ;;  %v4353_v19 = vld [vmem:[%s4696_s17] sm:$0xff]  ;;  %v6910_v39 = vsel %vm2732_vm8, %v2734_v23, %v2730_v44  ;;  %v4357_v44 = vld [vmem:[%s4696_s17 + $0x38] sm:$0xff] }
 0x47e   : > { %4286 = vtanh.f32 %v3043_v11  ;;  %v2830_v41 = vpop.permute.xlu0 %2829 }
 0x47f   : > { %v6893_v34 = vpop.eup %4284  ;;  %v2895_v16 = vmul.f32 %v2830_v41, %v6891_v7  ;;  %v3122_v6 = vpop.permute.xlu1 %3121 }
 0x480   : > { %3149 = vrot.lane.b32.xlu0 %v6893_v34, %s4486_s22  ;;  %v3217_v5 = vsub.f32 %v4353_v19, %v3122_v6 }
 0x481   : > { %2989 = vrot.lane.b32.xlu2 %v2895_v16, %s4486_s22  ;;  %v4355_v16 = vld [vmem:[%s4696_s17 + $0x10] sm:$0xff] }
 0x484   : > { %v6899_v10 = vpop.eup %4286 }
 0x485   : > { %3157 = vrot.lane.b32.xlu1 %v6899_v10, %s4486_s22 }
 0x486   : > { %v2962_v35 = vpop.permute.xlu0 %2961 }
 0x487   : > { %v3041_v43 = vadd.f32 %v2962_v35, %v6197_v45  ;;  %v2832_v26 = vpop.permute.xlu1 %2831  ;;  %v7377_v35 = vld [vmem:[#allocation23_spill] sm:$0xff] }
 0x488   : > { %3281 = vrot.lane.b32.xlu0 %v3217_v5, %s4487_s12  ;;  %v2896_v45 = vmul.f32 %v2832_v26, %v6910_v39 }
 0x489   : > { %4288 = vtanh.f32 %v3041_v43 }
 0x48a   : > { %v3130_v15 = vpop.permute.xlu2 %3129 }
 0x48b   : > { %v3221_v13 = vsub.f32 %v4354_v20, %v3130_v15 }
 0x48d   : > { %3289 = vrot.lane.b32.xlu1 %v3221_v13, %s4487_s12 }
 0x48f   : > { %v6914_v11 = vpop.eup %4288  ;;  %v2964_v46 = vpop.permute.xlu1 %2963 }
 0x490   : > { %v3042_v18 = vadd.f32 %v2964_v46, %v6240_v28  ;;  %3153 = vrot.lane.b32.xlu2 %v6914_v11, %s4486_s22  ;;  %2991 = vrot.lane.b32.xlu0 %v2896_v45, %s4486_s22  ;;  %v4358_v45 = vld [vmem:[%s4696_s17 + $0x28] sm:$0xff] }
 0x492   : > { %4290 = vtanh.f32 %v3042_v18  ;;  %v3126_v8 = vpop.permute.xlu0 %3125 }
 0x493   : > { %v2972_v41 = vpop.permute.xlu2 %2971  ;;  %v3219_v6 = vsub.f32 %v4355_v16, %v3126_v8 }
 0x494   : > { %v3046_v2 = vadd.f32 %v2972_v41, %v6372_v17  ;;  %v4356_v17 = vld [vmem:[%s4696_s17 + $0x18] sm:$0xff]  ;;  %v4359_v41 = vld [vmem:[%s4696_s17 + $0x30] sm:$0xff] }
 0x496   : > { %4292 = vtanh.f32 %v3046_v2 }
 0x497   : > { %v3128_v53 = vpop.permute.xlu1 %3127 }
 0x498   : > { %v6922_v19 = vpop.eup %4290  ;;  %3285 = vrot.lane.b32.xlu2 %v3219_v6, %s4487_s12  ;;  %v3220_v43 = vsub.f32 %v4356_v17, %v3128_v53  ;;  %v7378_v6 = vld [vmem:[#allocation27_spill] sm:$0xff] }
 0x499   : > { %3155 = vrot.lane.b32.xlu0 %v6922_v19, %s4486_s22 }
 0x49b   : > { %v2968_v28 = vpop.permute.xlu0 %2967 }
 0x49c   : > { %v6927_v5 = vpop.eup %4292  ;;  %v3044_v54 = vadd.f32 %v2968_v28, %v7377_v35 }
 0x49d   : > { %3163 = vrot.lane.b32.xlu1 %v6927_v5, %s4486_s22 }
 0x49e   : > { %4294 = vtanh.f32 %v3044_v54  ;;  %v7379_v54 = vld [vmem:[#allocation28_spill] sm:$0xff] }
 0x49f   : > { %v2970_v56 = vpop.permute.xlu1 %2969 }
 0x4a0   : > { %v3045_v26 = vadd.f32 %v2970_v56, %v6323_v58 }
 0x4a1   : > { %3287 = vrot.lane.b32.xlu0 %v3220_v43, %s4487_s12 }
 0x4a2   : > { %4296 = vtanh.f32 %v3045_v26  ;;  %v3136_v57 = vpop.permute.xlu2 %3135  ;;  %v4360_v26 = vld [vmem:[%s4696_s17 + $0x50] sm:$0xff] }
 0x4a3   : > { %v3224_v15 = vsub.f32 %v4357_v44, %v3136_v57 }
 0x4a4   : > { %v6936_v23 = vpop.eup %4294 }
 0x4a5   : > { %3159 = vrot.lane.b32.xlu2 %v6936_v23, %s4486_s22  ;;  %3295 = vrot.lane.b32.xlu1 %v3224_v15, %s4487_s12  ;;  %v4361_v15 = vld [vmem:[%s4696_s17 + $0x48] sm:$0xff] }
 0x4a7   : > { %v3134_v20 = vpop.permute.xlu1 %3133 }
 0x4a8   : > { %v6941_v13 = vpop.eup %4296  ;;  %v3223_v2 = vsub.f32 %v4359_v41, %v3134_v20 }
 0x4a9   : > { %3161 = vrot.lane.b32.xlu0 %v6941_v13, %s4486_s22 }
 0x4aa   : > { %v3132_v58 = vpop.permute.xlu0 %3131 }
 0x4ab   : > { %v3222_v46 = vsub.f32 %v4358_v45, %v3132_v58  ;;  %v2978_v18 = vpop.permute.xlu2 %2977 }
 0x4ac   : > { %v3049_v8 = vadd.f32 %v2978_v18, %v6522_v12  ;;  %v4362_v18 = vld [vmem:[%s4696_s17 + $0x40] sm:$0xff] }
 0x4ad   : > { %3291 = vrot.lane.b32.xlu2 %v3222_v46, %s4487_s12 }
 0x4ae   : > { %4298 = vtanh.f32 %v3049_v8 }
 0x4af   : > { %v2976_v16 = vpop.permute.xlu1 %2975 }
 0x4b0   : > { %v3048_v53 = vadd.f32 %v2976_v16, %v7378_v6 }
 0x4b1   : > { %3293 = vrot.lane.b32.xlu0 %v3223_v2, %s4487_s12 }
 0x4b2   : > { %4300 = vtanh.f32 %v3048_v53 }
 0x4b3   : > { %v2974_v28 = vpop.permute.xlu0 %2973 }
 0x4b4   : > { %v6951_v35 = vpop.eup %4298  ;;  %v3047_v17 = vadd.f32 %v2974_v28, %v7379_v54 }
 0x4b5   : > { %3169 = vrot.lane.b32.xlu1 %v6951_v35, %s4486_s22 }
 0x4b6   : > { %4302 = vtanh.f32 %v3047_v17 }
 0x4b7   : > { %v3140_v12 = vpop.permute.xlu1 %3139 }
 0x4b8   : > { %v6956_v43 = vpop.eup %4300  ;;  %v3226_v20 = vsub.f32 %v4361_v15, %v3140_v12  ;;  %v4364_v12 = vld [vmem:[%s4696_s17 + $0x68] sm:$0xff] }
 0x4b9   : > { %3167 = vrot.lane.b32.xlu0 %v6956_v43, %s4486_s22 }
 0x4ba   : > { %v3142_v56 = vpop.permute.xlu2 %3141 }
 0x4bb   : > { %v3227_v57 = vsub.f32 %v4360_v26, %v3142_v56 }
 0x4bc   : > { %v6961_v44 = vpop.eup %4302 }
 0x4bd   : > { %3165 = vrot.lane.b32.xlu2 %v6961_v44, %s4486_s22  ;;  %3301 = vrot.lane.b32.xlu1 %v3227_v57, %s4487_s12 }
 0x4bf   : > { %v2982_v58 = vpop.permute.xlu1 %2981 }
 0x4c0   : > { %v3051_v45 = vadd.f32 %v2982_v58, %v6485_v49 }
 0x4c1   : > { %3299 = vrot.lane.b32.xlu0 %v3226_v20, %s4487_s12  ;;  %v4365_v20 = vld [vmem:[%s4696_s17 + $0x58] sm:$0xff] }
 0x4c2   : > { %4304 = vtanh.f32 %v3051_v45  ;;  %v3138_v46 = vpop.permute.xlu0 %3137 }
 0x4c3   : > { %v3225_v8 = vsub.f32 %v4362_v18, %v3138_v46  ;;  %v2984_v41 = vpop.permute.xlu2 %2983 }
 0x4c4   : > { %v3052_v2 = vadd.f32 %v2984_v41, %v6638_v22  ;;  %v4363_v22 = vld [vmem:[%s4696_s17 + $0x60] sm:$0xff] }
 0x4c5   : > { %3297 = vrot.lane.b32.xlu2 %v3225_v8, %s4487_s12  ;;  %v4366_v8 = vld [vmem:[%s4696_s17 + $0x78] sm:$0xff] }
 0x4c6   : > { %4306 = vtanh.f32 %v3052_v2 }
 0x4c8   : > { %v6972_v16 = vpop.eup %4304 }
 0x4c9   : > { %3173 = vrot.lane.b32.xlu0 %v6972_v16, %s4486_s22 }
 0x4ca   : > { %v3146_v49 = vpop.permute.xlu1 %3145 }
 0x4cb   : > { %v2980_v6 = vpop.permute.xlu0 %2979  ;;  %v3229_v54 = vsub.f32 %v4363_v22, %v3146_v49  ;;  %v7380_v22 = vld [vmem:[#allocation12_spill] sm:$0xff] }
 0x4cc   : > { %v6976_v53 = vpop.eup %4306  ;;  %v3050_v28 = vadd.f32 %v2980_v6, %v6566_v62 }
 0x4cd   : > { %3175 = vrot.lane.b32.xlu1 %v6976_v53, %s4486_s22 }
 0x4ce   : > { %4308 = vtanh.f32 %v3050_v28 }
 0x4d1   : > { %3305 = vrot.lane.b32.xlu0 %v3229_v54, %s4487_s12 }
 0x4d2   : > { %v3148_v17 = vpop.permute.xlu2 %3147 }
 0x4d3   : > { %v3230_v56 = vsub.f32 %v4364_v12, %v3148_v17  ;;  %v2988_v26 = vpop.permute.xlu1 %2987  ;;  %v4367_v17 = vld [vmem:[%s4696_s17 + $0x80] sm:$0xff] }
 0x4d4   : > { %v6984_v57 = vpop.eup %4308  ;;  %v3054_v15 = vadd.f32 %v2988_v26, %v6616_v51 }
 0x4d5   : > { %3171 = vrot.lane.b32.xlu2 %v6984_v57, %s4486_s22  ;;  %3307 = vrot.lane.b32.xlu1 %v3230_v56, %s4487_s12 }
 0x4d6   : > { %4310 = vtanh.f32 %v3054_v15  ;;  %v4368_v15 = vld [vmem:[%s4696_s17 + $0x70] sm:$0xff] }
 0x4da   : > { %v3144_v62 = vpop.permute.xlu0 %3143 }
 0x4db   : > { %v3228_v58 = vsub.f32 %v4365_v20, %v3144_v62  ;;  %v2990_v45 = vpop.permute.xlu2 %2989  ;;  %v7381_v20 = vld [vmem:[#allocation13_spill] sm:$0xff] }
 0x4dc   : > { %v6991_v46 = vpop.eup %4310  ;;  %v3055_v18 = vadd.f32 %v2990_v45, %v6768_v25 }
 0x4dd   : > { %3303 = vrot.lane.b32.xlu2 %v3228_v58, %s4487_s12  ;;  %3179 = vrot.lane.b32.xlu0 %v6991_v46, %s4486_s22 }
 0x4de   : > { %4312 = vtanh.f32 %v3055_v18  ;;  %v4369_v18 = vld [vmem:[%s4696_s17 + $0x90] sm:$0xff] }
 0x4e2   : > { %v3152_v51 = vpop.permute.xlu1 %3151 }
 0x4e3   : > { %v3232_v41 = vsub.f32 %v4366_v8, %v3152_v51  ;;  %v2986_v2 = vpop.permute.xlu0 %2985 }
 0x4e4   : > { %v6998_v49 = vpop.eup %4312  ;;  %v3053_v6 = vadd.f32 %v2986_v2, %v6699_v60 }
 0x4e5   : > { %3311 = vrot.lane.b32.xlu0 %v3232_v41, %s4487_s12  ;;  %3181 = vrot.lane.b32.xlu1 %v6998_v49, %s4486_s22  ;;  %v7382_v41 = vld [vmem:[#allocation11_spill] sm:$0xff] }
 0x4e6   : > { %4314 = vtanh.f32 %v3053_v6 }
 0x4ea   : > { %v3284_v25 = vpop.permute.xlu1 %3283  ;;  %v3154_v28 = vpop.permute.xlu2 %3153 }
 0x4eb   : > { %v3378_v54 = vmul.f32 %v3284_v25, %v7380_v22  ;;  %v3233_v12 = vsub.f32 %v4367_v17, %v3154_v28  ;;  %v7383_v28 = vld [vmem:[#allocation15_spill] sm:$0xff] }
 0x4ec   : > { %v7006_v56 = vpop.eup %4314 }
 0x4ed   : > { %3177 = vrot.lane.b32.xlu2 %v7006_v56, %s4486_s22  ;;  %3443 = vrot.lane.b32.xlu0 %v3378_v54, %s4487_s12  ;;  %v4370_v54 = vld [vmem:[%s4696_s17 + $0x98] sm:$0xff] }
 0x4ee   : > { %3313 = vrot.lane.b32.xlu1 %v3233_v12, %s4487_s12 }
 0x4f2   : > { %v3150_v60 = vpop.permute.xlu0 %3149  ;;  %v3286_v26 = vpop.permute.xlu2 %3285 }
 0x4f3   : > { %v3231_v62 = vsub.f32 %v4368_v15, %v3150_v60  ;;  %v3379_v58 = vmul.f32 %v3286_v26, %v7381_v20  ;;  %v7384_v15 = vld [vmem:[#allocation16_spill] sm:$0xff] }
 0x4f5   : > { %3309 = vrot.lane.b32.xlu2 %v3231_v62, %s4487_s12 }
 0x4f6   : > { %3445 = vrot.lane.b32.xlu1 %v3379_v58, %s4487_s12 }
 0x4f7   : > { %v3158_v45 = vpop.permute.xlu1 %3157 }
 0x4f8   : > { %v3235_v51 = vsub.f32 %v4369_v18, %v3158_v45  ;;  %v4371_v18 = vld [vmem:[%s4696_s17 + $0xa8] sm:$0xff] }
 0x4fa   : > { %v3282_v8 = vpop.permute.xlu0 %3281  ;;  %3317 = vrot.lane.b32.xlu0 %v3235_v51, %s4487_s12 }
 0x4fb   : > { %v3377_v2 = vmul.f32 %v3282_v8, %v7382_v41  ;;  %v4372_v8 = vld [vmem:[%s4696_s17 + $0x88] sm:$0xff] }
 0x4fd   : > { %3441 = vrot.lane.b32.xlu2 %v3377_v2, %s4487_s12 }
 0x4ff   : > { %v3290_v6 = vpop.permute.xlu1 %3289  ;;  %v3160_v25 = vpop.permute.xlu2 %3159 }
 0x500   : > { %v3381_v22 = vmul.f32 %v3290_v6, %v7383_v28  ;;  %v3236_v17 = vsub.f32 %v4370_v54, %v3160_v25  ;;  %v7385_v25 = vld [vmem:[#allocation18_spill] sm:$0xff] }
 0x502   : > { %v2992_v12 = vpop.permute.xlu0 %2991  ;;  %3449 = vrot.lane.b32.xlu0 %v3381_v22, %s4487_s12  ;;  %3319 = vrot.lane.b32.xlu1 %v3236_v17, %s4487_s12  ;;  %v4373_v22 = vld [vmem:[%s4696_s17 + $0xb0] sm:$0xff]  ;;  %v7386_v17 = vld [vmem:[#allocation14_spill] sm:$0xff] }
 0x503   : > { %v3056_v60 = vadd.f32 %v2992_v12, %v6810_v30 }
 0x505   : > { %4316 = vtanh.f32 %v3056_v60 }
 0x507   : > { %v3292_v26 = vpop.permute.xlu2 %3291 }
 0x508   : > { %v3382_v62 = vmul.f32 %v3292_v26, %v7384_v15  ;;  %v7387_v15 = vld [vmem:[#allocation19_spill] sm:$0xff] }
 0x50a   : > { %3451 = vrot.lane.b32.xlu1 %v3382_v62, %s4487_s12 }
 0x50b   : > { %v7027_v20 = vpop.eup %4316  ;;  %v3156_v58 = vpop.permute.xlu0 %3155 }
 0x50c   : > { %3183 = vrot.lane.b32.xlu2 %v7027_v20, %s4486_s22  ;;  %v3234_v41 = vsub.f32 %v4372_v8, %v3156_v58  ;;  %v4374_v58 = vld [vmem:[%s4696_s17 + $0xa0] sm:$0xff] }
 0x50d   : > { %v4375_v8 = vld [vmem:[%s4696_s17 + $0xc0] sm:$0xff] }
 0x50f   : > { %v3164_v45 = vpop.permute.xlu1 %3163 }
 0x510   : > { %v3238_v51 = vsub.f32 %v4371_v18, %v3164_v45 }
 0x512   : > { %3323 = vrot.lane.b32.xlu0 %v3238_v51, %s4487_s12 }
 0x513   : > { %v3288_v30 = vpop.permute.xlu0 %3287 }
 0x514   : > { %3315 = vrot.lane.b32.xlu2 %v3234_v41, %s4487_s12  ;;  %v3380_v12 = vmul.f32 %v3288_v30, %v7386_v17  ;;  %v7388_v30 = vld [vmem:[#allocation17_spill] sm:$0xff]  ;;  %v4376_v17 = vld [vmem:[%s4696_s17 + $0xc8] sm:$0xff] }
 0x517   : > { %v3296_v2 = vpop.permute.xlu1 %3295  ;;  %v3166_v6 = vpop.permute.xlu2 %3165 }
 0x518   : > { %v3384_v28 = vmul.f32 %v3296_v2, %v7385_v25  ;;  %v3239_v54 = vsub.f32 %v4373_v22, %v3166_v6  ;;  %v7389_v22 = vld [vmem:[#allocation21_spill] sm:$0xff] }
 0x51a   : > { %3455 = vrot.lane.b32.xlu0 %v3384_v28, %s4487_s12  ;;  %3325 = vrot.lane.b32.xlu1 %v3239_v54, %s4487_s12 }
 0x51b   : > { %v3162_v60 = vpop.permute.xlu0 %3161 }
 0x51c   : > { %3447 = vrot.lane.b32.xlu2 %v3380_v12, %s4487_s12  ;;  %v3237_v45 = vsub.f32 %v4374_v58, %v3162_v60  ;;  %v4377_v60 = vld [vmem:[%s4696_s17 + $0xb8] sm:$0xff] }
 0x51d   : > { %v7390_v58 = vld [vmem:[#allocation22_spill] sm:$0xff] }
 0x51f   : > { %v3298_v26 = vpop.permute.xlu2 %3297 }
 0x520   : > { %v3385_v62 = vmul.f32 %v3298_v26, %v7387_v15 }
 0x522   : > { %3457 = vrot.lane.b32.xlu1 %v3385_v62, %s4487_s12 }
 0x523   : > { %v3294_v18 = vpop.permute.xlu0 %3293 }
 0x524   : > { %3321 = vrot.lane.b32.xlu2 %v3237_v45, %s4487_s12  ;;  %v3383_v2 = vmul.f32 %v3294_v18, %v7388_v30  ;;  %v7391_v18 = vld [vmem:[#allocation20_spill] sm:$0xff]  ;;  %v4378_v30 = vld [vmem:[%s4696_s17 + $0xd8] sm:$0xff] }
 0x527   : > { %v3170_v51 = vpop.permute.xlu1 %3169 }
 0x528   : > { %v3241_v41 = vsub.f32 %v4375_v8, %v3170_v51 }
 0x52a   : > { %3329 = vrot.lane.b32.xlu0 %v3241_v41, %s4487_s12 }
 0x52b   : > { %v3168_v6 = vpop.permute.xlu0 %3167 }
 0x52c   : > { %3453 = vrot.lane.b32.xlu2 %v3383_v2, %s4487_s12  ;;  %v3240_v26 = vsub.f32 %v4377_v60, %v3168_v6  ;;  %v4379_v6 = vld [vmem:[%s4696_s17 + $0xd0] sm:$0xff]  ;;  %v4380_v60 = vld [vmem:[%s4696_s17 + $0xe0] sm:$0xff] }
 0x52f   : > { %v3302_v25 = vpop.permute.xlu1 %3301  ;;  %v3172_v28 = vpop.permute.xlu2 %3171 }
 0x530   : > { %v3387_v54 = vmul.f32 %v3302_v25, %v7389_v22  ;;  %v3242_v12 = vsub.f32 %v4376_v17, %v3172_v28  ;;  %v7392_v17 = vld [vmem:[#allocation25_spill] sm:$0xff] }
 0x532   : > { %3461 = vrot.lane.b32.xlu0 %v3387_v54, %s4487_s12  ;;  %3331 = vrot.lane.b32.xlu1 %v3242_v12, %s4487_s12 }
 0x533   : > { %v3300_v15 = vpop.permute.xlu0 %3299 }
 0x534   : > { %3327 = vrot.lane.b32.xlu2 %v3240_v26, %s4487_s12  ;;  %v3386_v51 = vmul.f32 %v3300_v15, %v7391_v18  ;;  %v7393_v15 = vld [vmem:[#allocation24_spill] sm:$0xff]  ;;  %v7394_v18 = vld [vmem:[#allocation26_spill] sm:$0xff] }
 0x537   : > { %v3304_v62 = vpop.permute.xlu2 %3303 }
 0x538   : > { %v3388_v45 = vmul.f32 %v3304_v62, %v7390_v58 }
 0x53a   : > { %3463 = vrot.lane.b32.xlu1 %v3388_v45, %s4487_s12 }
 0x53b   : > { %v3174_v8 = vpop.permute.xlu0 %3173 }
 0x53c   : > { %3459 = vrot.lane.b32.xlu2 %v3386_v51, %s4487_s12  ;;  %v3243_v25 = vsub.f32 %v4379_v6, %v3174_v8  ;;  %v4381_v8 = vld [vmem:[%s4696_s17 + $0xe8] sm:$0xff]  ;;  %v4382_v6 = vld [vmem:[%s4696_s17 + $0xf0] sm:$0xff] }
 0x53f   : > { %v3176_v41 = vpop.permute.xlu1 %3175 }
 0x540   : > { %v3244_v2 = vsub.f32 %v4378_v30, %v3176_v41 }
 0x542   : > { %3335 = vrot.lane.b32.xlu0 %v3244_v2, %s4487_s12 }
 0x543   : > { %v3306_v28 = vpop.permute.xlu0 %3305 }
 0x544   : > { %3333 = vrot.lane.b32.xlu2 %v3243_v25, %s4487_s12  ;;  %v3389_v62 = vmul.f32 %v3306_v28, %v7393_v15 }
 0x547   : > { %v3308_v22 = vpop.permute.xlu1 %3307  ;;  %v3178_v54 = vpop.permute.xlu2 %3177 }
 0x548   : > { %v3390_v12 = vmul.f32 %v3308_v22, %v7392_v17  ;;  %v3245_v26 = vsub.f32 %v4380_v60, %v3178_v54  ;;  %v7395_v22 = vld [vmem:[#allocation30_spill] sm:$0xff]  ;;  %v7396_v17 = vld [vmem:[#allocation29_spill] sm:$0xff] }
 0x54a   : > { %3467 = vrot.lane.b32.xlu0 %v3390_v12, %s4487_s12  ;;  %3337 = vrot.lane.b32.xlu1 %v3245_v26, %s4487_s12 }
 0x54c   : > { %3465 = vrot.lane.b32.xlu2 %v3389_v62, %s4487_s12 }
 0x54f   : > { %v3180_v58 = vpop.permute.xlu0 %3179  ;;  %v3310_v45 = vpop.permute.xlu2 %3309 }
 0x550   : > { %v3391_v51 = vmul.f32 %v3310_v45, %v7394_v18  ;;  %v3246_v41 = vsub.f32 %v4381_v8, %v3180_v58  ;;  %v4383_v45 = vld [vmem:[%s4696_s17 + $0xf8] sm:$0xff] }
 0x552   : > { %3469 = vrot.lane.b32.xlu1 %v3391_v51, %s4487_s12 }
 0x554   : > { %3339 = vrot.lane.b32.xlu2 %v3246_v41, %s4487_s12 }
 0x557   : > { %v3312_v30 = vpop.permute.xlu0 %3311  ;;  %v3182_v2 = vpop.permute.xlu1 %3181 }
 0x558   : > { %v3247_v25 = vsub.f32 %v4382_v6, %v3182_v2  ;;  %v3442_v28 = vpop.permute.xlu2 %3441  ;;  %v3392_v12 = vmul.f32 %v3312_v30, %v7396_v17  ;;  %v7397_v2 = vld [vmem:[#allocation31_spill] sm:$0xff] }
 0x559   : > { %v3537_v54 = vadd.f32 %v7395_v22, %v3442_v28 }
 0x55a   : > { %3341 = vrot.lane.b32.xlu0 %v3247_v25, %s4487_s12 }
 0x55b   : > { %3601 = vrot.lane.b32.xlu1 %v3537_v54, %s4486_s22  ;;  %v7398_v54 = vld [vmem:[#allocation32_spill] sm:$0xff] }
 0x55c   : > { %3471 = vrot.lane.b32.xlu2 %v3392_v12, %s4487_s12 }
 0x55f   : > { %v3444_v60 = vpop.permute.xlu0 %3443 }
 0x560   : > { %v3314_v26 = vpop.permute.xlu1 %3313  ;;  %v3538_v62 = vadd.f32 %v6506_v24, %v3444_v60 }
 0x561   : > { %v3393_v15 = vmul.f32 %v3314_v26, %v6468_v59 }
 0x563   : > { %3473 = vrot.lane.b32.xlu0 %v3393_v15, %s4487_s12 }
 0x564   : > { %3603 = vrot.lane.b32.xlu2 %v3538_v62, %s4486_s22 }
 0x566   : > { %v3184_v58 = vpop.permute.xlu2 %3183 }
 0x567   : > { %v3248_v18 = vsub.f32 %v4383_v45, %v3184_v58 }
 0x568   : > { %v3446_v51 = vpop.permute.xlu1 %3445 }
 0x569   : > { %v3539_v8 = vadd.f32 %v6558_v33, %v3446_v51  ;;  %3343 = vrot.lane.b32.xlu1 %v3248_v18, %s4487_s12 }
 0x56b   : > { %3605 = vrot.lane.b32.xlu0 %v3539_v8, %s4486_s22 }
 0x56c   : > { %v3318_v41 = vpop.permute.xlu0 %3317 }
 0x56d   : > { %v3395_v30 = vmul.f32 %v3318_v41, %v6556_v32 }
 0x56e   : > { %v3316_v59 = vpop.permute.xlu2 %3315 }
 0x56f   : > { %v3394_v24 = vmul.f32 %v3316_v59, %v7397_v2  ;;  %3477 = vrot.lane.b32.xlu2 %v3395_v30, %s4487_s12 }
 0x571   : > { %3475 = vrot.lane.b32.xlu1 %v3394_v24, %s4487_s12 }
 0x574   : > { %v3450_v6 = vpop.permute.xlu0 %3449  ;;  %v3320_v25 = vpop.permute.xlu1 %3319 }
 0x575   : > { %v3541_v28 = vadd.f32 %v6635_v50, %v3450_v6  ;;  %v3396_v33 = vmul.f32 %v3320_v25, %v6604_v48 }
 0x576   : > { %v3448_v22 = vpop.permute.xlu2 %3447 }
 0x577   : > { %v3540_v17 = vadd.f32 %v7398_v54, %v3448_v22  ;;  %3609 = vrot.lane.b32.xlu2 %v3541_v28, %s4486_s22  ;;  %3479 = vrot.lane.b32.xlu0 %v3396_v33, %s4487_s12 }
 0x579   : > { %3607 = vrot.lane.b32.xlu1 %v3540_v17, %s4486_s22 }
 0x57c   : > { %v3452_v32 = vpop.permute.xlu1 %3451 }
 0x57d   : > { %v3542_v12 = vadd.f32 %v6684_v40, %v3452_v32 }
 0x57e   : > { %v3322_v60 = vpop.permute.xlu2 %3321 }
 0x57f   : > { %v3397_v26 = vmul.f32 %v3322_v60, %v6618_v9  ;;  %3611 = vrot.lane.b32.xlu0 %v3542_v12, %s4486_s22 }
 0x581   : > { %3481 = vrot.lane.b32.xlu1 %v3397_v26, %s4487_s12 }
 0x584   : > { %v3324_v48 = vpop.permute.xlu0 %3323 }
 0x585   : > { %v3398_v50 = vmul.f32 %v3324_v48, %v6680_v29 }
 0x586   : > { %v3454_v15 = vpop.permute.xlu2 %3453 }
 0x587   : > { %v3543_v62 = vadd.f32 %v6665_v27, %v3454_v15  ;;  %3483 = vrot.lane.b32.xlu2 %v3398_v50, %s4487_s12 }
 0x589   : > { %3613 = vrot.lane.b32.xlu1 %v3543_v62, %s4486_s22 }
 0x58c   : > { %v3456_v58 = vpop.permute.xlu0 %3455  ;;  %v3326_v45 = vpop.permute.xlu1 %3325 }
 0x58d   : > { %v3544_v40 = vadd.f32 %v6752_v1, %v3456_v58  ;;  %v3399_v9 = vmul.f32 %v3326_v45, %v6724_v3 }
 0x58e   : > { %v3328_v18 = vpop.permute.xlu2 %3327 }
 0x58f   : > { %v3400_v51 = vmul.f32 %v3328_v18, %v6710_v52  ;;  %3615 = vrot.lane.b32.xlu2 %v3544_v40, %s4486_s22  ;;  %3485 = vrot.lane.b32.xlu0 %v3399_v9, %s4487_s12 }
 0x591   : > { %3487 = vrot.lane.b32.xlu1 %v3400_v51, %s4487_s12 }
 0x594   : > { %v3458_v27 = vpop.permute.xlu1 %3457 }
 0x595   : > { %v3545_v29 = vadd.f32 %v6789_v38, %v3458_v27 }
 0x596   : > { %v3460_v8 = vpop.permute.xlu2 %3459 }
 0x597   : > { %v3546_v41 = vadd.f32 %v6738_v36, %v3460_v8  ;;  %3617 = vrot.lane.b32.xlu0 %v3545_v29, %s4486_s22 }
 0x599   : > { %3619 = vrot.lane.b32.xlu1 %v3546_v41, %s4486_s22 }
 0x59c   : > { %v3330_v3 = vpop.permute.xlu0 %3329 }
 0x59d   : > { %v3401_v1 = vmul.f32 %v3330_v3, %v6786_v47 }
 0x59e   : > { %v3334_v52 = vpop.permute.xlu2 %3333 }
 0x59f   : > { %v3403_v30 = vmul.f32 %v3334_v52, %v6770_v55  ;;  %3489 = vrot.lane.b32.xlu2 %v3401_v1, %s4487_s12 }
 0x5a1   : > { %3493 = vrot.lane.b32.xlu1 %v3403_v30, %s4487_s12 }
 0x5a4   : > { %v3462_v59 = vpop.permute.xlu0 %3461  ;;  %v3332_v2 = vpop.permute.xlu1 %3331 }
 0x5a5   : > { %v3547_v38 = vadd.f32 %v6838_v37, %v3462_v59  ;;  %v3402_v36 = vmul.f32 %v3332_v2, %v6807_v31 }
 0x5a6   : > { %v3466_v24 = vpop.permute.xlu2 %3465 }
 0x5a7   : > { %v3549_v6 = vadd.f32 %v6812_v14, %v3466_v24  ;;  %3621 = vrot.lane.b32.xlu2 %v3547_v38, %s4486_s22  ;;  %3491 = vrot.lane.b32.xlu0 %v3402_v36, %s4487_s12 }
 0x5a9   : > { %3625 = vrot.lane.b32.xlu1 %v3549_v6, %s4486_s22 }
 0x5ac   : > { %v3464_v55 = vpop.permute.xlu1 %3463 }
 0x5ad   : > { %v3548_v47 = vadd.f32 %v6853_v42, %v3464_v55 }
 0x5ae   : > { %v3340_v25 = vpop.permute.xlu2 %3339 }
 0x5af   : > { %v3406_v28 = vmul.f32 %v3340_v25, %v6834_v63  ;;  %3623 = vrot.lane.b32.xlu0 %v3548_v47, %s4486_s22 }
 0x5b1   : > { %3499 = vrot.lane.b32.xlu1 %v3406_v28, %s4487_s12 }
 0x5b4   : > { %v3336_v31 = vpop.permute.xlu0 %3335 }
 0x5b5   : > { %v3404_v14 = vmul.f32 %v3336_v31, %v6851_v4 }
 0x5b6   : > { %v3472_v37 = vpop.permute.xlu2 %3471 }
 0x5b7   : > { %v3552_v33 = vadd.f32 %v6871_v61, %v3472_v37  ;;  %3495 = vrot.lane.b32.xlu2 %v3404_v14, %s4487_s12 }
 0x5b9   : > { %3631 = vrot.lane.b32.xlu1 %v3552_v33, %s4486_s22 }
 0x5bc   : > { %v3468_v63 = vpop.permute.xlu0 %3467  ;;  %v3338_v42 = vpop.permute.xlu1 %3337 }
 0x5bd   : > { %v3550_v22 = vadd.f32 %v6880_v0, %v3468_v63  ;;  %v3405_v4 = vmul.f32 %v3338_v42, %v6869_v21 }
 0x5be   : > { %v3604_v61 = vpop.permute.xlu2 %3603 }
 0x5bf   : > { %3698 = vst.msk [vmem:[%s7138_s18 + $0x8] sm:$0xff] %vm744_vm0, %v3604_v61  ;;  %3627 = vrot.lane.b32.xlu2 %v3550_v22, %s4486_s22  ;;  %3497 = vrot.lane.b32.xlu0 %v3405_v4, %s4487_s12 }
 0x5c4   : > { %v3470_v54 = vpop.permute.xlu1 %3469 }
 0x5c5   : > { %v3551_v45 = vadd.f32 %v6893_v34, %v3470_v54 }
 0x5c9   : > { %v3478_v17 = vpop.permute.xlu2 %3477 }
 0x5ca   : > { %v3555_v32 = vadd.f32 %v6899_v10, %v3478_v17 }
 0x5cc   : > { %v3342_v12 = vpop.permute.xlu0 %3341  ;;  %3637 = vrot.lane.b32.xlu1 %v3555_v32, %s4486_s22 }
 0x5cd   : > { %v3407_v0 = vmul.f32 %v3342_v12, %v6891_v7  ;;  %v3602_v60 = vpop.permute.xlu1 %3601 }
 0x5ce   : > { %3697 = vst.msk [vmem:[%s7138_s18] sm:$0xff] %vm744_vm0, %v3602_v60 }
 0x5cf   : > { %3501 = vrot.lane.b32.xlu2 %v3407_v0, %s4487_s12 }
 0x5d1   : > { %v3610_v21 = vpop.permute.xlu2 %3609 }
 0x5d2   : > { %3701 = vst.msk [vmem:[%s7138_s18 + $0x20] sm:$0xff] %vm744_vm0, %v3610_v21 }
 0x5d5   : > { %v3474_v26 = vpop.permute.xlu0 %3473 }
 0x5d6   : > { %v3553_v48 = vadd.f32 %v6914_v11, %v3474_v26 }
 0x5d8   : > { %3633 = vrot.lane.b32.xlu2 %v3553_v48, %s4486_s22 }
 0x5db   : > { %v3344_v10 = vpop.permute.xlu1 %3343 }
 0x5dc   : > { %v3408_v50 = vmul.f32 %v3344_v10, %v6910_v39 }
 0x5dd   : > { %v3606_v15 = vpop.permute.xlu0 %3605 }
 0x5de   : > { %3699 = vst.msk [vmem:[%s7138_s18 + $0x10] sm:$0xff] %vm744_vm0, %v3606_v15  ;;  %3503 = vrot.lane.b32.xlu0 %v3408_v50, %s4487_s12 }
 0x5e1   : > { %v3484_v7 = vpop.permute.xlu2 %3483 }
 0x5e2   : > { %v3558_v62 = vadd.f32 %v6927_v5, %v3484_v7 }
 0x5e3   : > { %v3476_v58 = vpop.permute.xlu1 %3475 }
 0x5e4   : > { %3643 = vrot.lane.b32.xlu1 %v3558_v62, %s4486_s22  ;;  %v3554_v18 = vadd.f32 %v6922_v19, %v3476_v58 }
 0x5e6   : > { %3629 = vrot.lane.b32.xlu0 %v3551_v45, %s4486_s22 }
 0x5e9   : > { %v3480_v11 = vpop.permute.xlu0 %3479  ;;  %v3616_v40 = vpop.permute.xlu2 %3615 }
 0x5ea   : > { %v3556_v39 = vadd.f32 %v6936_v23, %v3480_v11  ;;  %3704 = vst.msk [vmem:[%s7138_s18 + $0x38] sm:$0xff] %vm744_vm0, %v3616_v40 }
 0x5eb   : > { %v3608_v9 = vpop.permute.xlu1 %3607 }
 0x5ec   : > { %3700 = vst.msk [vmem:[%s7138_s18 + $0x18] sm:$0xff] %vm744_vm0, %v3608_v9  ;;  %3639 = vrot.lane.b32.xlu2 %v3556_v39, %s4486_s22 }
 0x5ee   : > { %3635 = vrot.lane.b32.xlu0 %v3554_v18, %s4486_s22 }
 0x5f1   : > { %v3612_v34 = vpop.permute.xlu0 %3611 }
 0x5f2   : > { %3702 = vst.msk [vmem:[%s7138_s18 + $0x28] sm:$0xff] %vm744_vm0, %v3612_v34 }
 0x5f3   : > { %v3482_v5 = vpop.permute.xlu1 %3481 }
 0x5f4   : > { %v3557_v51 = vadd.f32 %v6941_v13, %v3482_v5 }
 0x5f6   : > { %3641 = vrot.lane.b32.xlu0 %v3557_v51, %s4486_s22 }
 0x5f9   : > { %v3490_v23 = vpop.permute.xlu2 %3489 }
 0x5fa   : > { %v3561_v19 = vadd.f32 %v6951_v35, %v3490_v23 }
 0x5fb   : > { %v3614_v27 = vpop.permute.xlu1 %3613 }
 0x5fc   : > { %3703 = vst.msk [vmem:[%s7138_s18 + $0x30] sm:$0xff] %vm744_vm0, %v3614_v27  ;;  %3649 = vrot.lane.b32.xlu1 %v3561_v19, %s4486_s22 }
 0x601   : > { %v3486_v29 = vpop.permute.xlu0 %3485  ;;  %v3622_v8 = vpop.permute.xlu2 %3621 }
 0x602   : > { %v3559_v41 = vadd.f32 %v6961_v44, %v3486_v29  ;;  %3707 = vst.msk [vmem:[%s7138_s18 + $0x50] sm:$0xff] %vm744_vm0, %v3622_v8 }
 0x603   : > { %v3488_v3 = vpop.permute.xlu1 %3487 }
 0x604   : > { %v3560_v13 = vadd.f32 %v6956_v43, %v3488_v3  ;;  %3645 = vrot.lane.b32.xlu2 %v3559_v41, %s4486_s22 }
 0x606   : > { %3647 = vrot.lane.b32.xlu0 %v3560_v13, %s4486_s22 }
 0x609   : > { %v3618_v35 = vpop.permute.xlu0 %3617 }
 0x60a   : > { %3705 = vst.msk [vmem:[%s7138_s18 + $0x40] sm:$0xff] %vm744_vm0, %v3618_v35 }
 0x60b   : > { %v3620_v1 = vpop.permute.xlu1 %3619 }
 0x60c   : > { %3706 = vst.msk [vmem:[%s7138_s18 + $0x48] sm:$0xff] %vm744_vm0, %v3620_v1 }
 0x611   : > { %v3496_v52 = vpop.permute.xlu2 %3495 }
 0x612   : > { %v3564_v44 = vadd.f32 %v6976_v53, %v3496_v52 }
 0x613   : > { %v3494_v30 = vpop.permute.xlu1 %3493 }
 0x614   : > { %v3563_v59 = vadd.f32 %v6972_v16, %v3494_v30  ;;  %3655 = vrot.lane.b32.xlu1 %v3564_v44, %s4486_s22 }
 0x616   : > { %3653 = vrot.lane.b32.xlu0 %v3563_v59, %s4486_s22 }
 0x619   : > { %v3492_v43 = vpop.permute.xlu0 %3491  ;;  %v3628_v2 = vpop.permute.xlu2 %3627 }
 0x61a   : > { %v3562_v38 = vadd.f32 %v6984_v57, %v3492_v43  ;;  %3710 = vst.msk [vmem:[%s7138_s18 + $0x68] sm:$0xff] %vm744_vm0, %v3628_v2 }
 0x61b   : > { %v3626_v36 = vpop.permute.xlu1 %3625 }
 0x61c   : > { %3709 = vst.msk [vmem:[%s7138_s18 + $0x60] sm:$0xff] %vm744_vm0, %v3626_v36  ;;  %3651 = vrot.lane.b32.xlu2 %v3562_v38, %s4486_s22 }
 0x621   : > { %v3624_v53 = vpop.permute.xlu0 %3623 }
 0x622   : > { %3708 = vst.msk [vmem:[%s7138_s18 + $0x58] sm:$0xff] %vm744_vm0, %v3624_v53 }
 0x623   : > { %v3500_v16 = vpop.permute.xlu1 %3499 }
 0x624   : > { %v3566_v24 = vadd.f32 %v6991_v46, %v3500_v16 }
 0x626   : > { %3659 = vrot.lane.b32.xlu0 %v3566_v24, %s4486_s22 }
 0x629   : > { %v3502_v6 = vpop.permute.xlu2 %3501 }
 0x62a   : > { %v3567_v57 = vadd.f32 %v6998_v49, %v3502_v6 }
 0x62b   : > { %v3632_v55 = vpop.permute.xlu1 %3631 }
 0x62c   : > { %3712 = vst.msk [vmem:[%s7138_s18 + $0x78] sm:$0xff] %vm744_vm0, %v3632_v55  ;;  %3661 = vrot.lane.b32.xlu1 %v3567_v57, %s4486_s22 }
 0x631   : > { %v3498_v47 = vpop.permute.xlu0 %3497 }
 0x632   : > { %v3565_v25 = vadd.f32 %v7006_v56, %v3498_v47  ;;  %v3634_v28 = vpop.permute.xlu2 %3633 }
 0x633   : > { %3713 = vst.msk [vmem:[%s7138_s18 + $0x80] sm:$0xff] %vm744_vm0, %v3634_v28 }
 0x634   : > { %3657 = vrot.lane.b32.xlu2 %v3565_v25, %s4486_s22 }
 0x63e   : > { %v3638_v46 = vpop.permute.xlu1 %3637 }
 0x63f   : > { %3715 = vst.msk [vmem:[%s7138_s18 + $0x90] sm:$0xff] %vm744_vm0, %v3638_v46 }
 0x646   : > { %v3640_v49 = vpop.permute.xlu2 %3639 }
 0x647   : > { %3716 = vst.msk [vmem:[%s7138_s18 + $0x98] sm:$0xff] %vm744_vm0, %v3640_v49 }
 0x650   : > { %v3504_v31 = vpop.permute.xlu0 %3503 }
 0x651   : > { %v3568_v14 = vadd.f32 %v7027_v20, %v3504_v31 }
 0x653   : > { %3663 = vrot.lane.b32.xlu2 %v3568_v14, %s4486_s22 }
 0x656   : > { %v3644_v56 = vpop.permute.xlu1 %3643 }
 0x657   : > { %3718 = vst.msk [vmem:[%s7138_s18 + $0xa8] sm:$0xff] %vm744_vm0, %v3644_v56 }
 0x658   : > { %v3630_v37 = vpop.permute.xlu0 %3629 }
 0x659   : > { %3711 = vst.msk [vmem:[%s7138_s18 + $0x70] sm:$0xff] %vm744_vm0, %v3630_v37 }
 0x65e   : > { %v3646_v33 = vpop.permute.xlu2 %3645 }
 0x65f   : > { %3719 = vst.msk [vmem:[%s7138_s18 + $0xb0] sm:$0xff] %vm744_vm0, %v3646_v33 }
 0x660   : > { %v3636_v63 = vpop.permute.xlu0 %3635 }
 0x661   : > { %3714 = vst.msk [vmem:[%s7138_s18 + $0x88] sm:$0xff] %vm744_vm0, %v3636_v63 }
 0x668   : > { %v3642_v20 = vpop.permute.xlu0 %3641 }
 0x669   : > { %3717 = vst.msk [vmem:[%s7138_s18 + $0xa0] sm:$0xff] %vm744_vm0, %v3642_v20 }
 0x66e   : > { %v3650_v42 = vpop.permute.xlu1 %3649 }
 0x66f   : > { %3721 = vst.msk [vmem:[%s7138_s18 + $0xc0] sm:$0xff] %vm744_vm0, %v3650_v42 }
 0x676   : > { %v3652_v22 = vpop.permute.xlu2 %3651 }
 0x677   : > { %3722 = vst.msk [vmem:[%s7138_s18 + $0xc8] sm:$0xff] %vm744_vm0, %v3652_v22 }
 0x678   : > { %v3648_v4 = vpop.permute.xlu0 %3647 }
 0x679   : > { %3720 = vst.msk [vmem:[%s7138_s18 + $0xb8] sm:$0xff] %vm744_vm0, %v3648_v4 }
 0x686   : > { %v3656_v61 = vpop.permute.xlu1 %3655 }
 0x687   : > { %3724 = vst.msk [vmem:[%s7138_s18 + $0xd8] sm:$0xff] %vm744_vm0, %v3656_v61 }
 0x688   : > { %v3654_v54 = vpop.permute.xlu0 %3653 }
 0x689   : > { %3723 = vst.msk [vmem:[%s7138_s18 + $0xd0] sm:$0xff] %vm744_vm0, %v3654_v54 }
 0x68e   : > { %v3658_v17 = vpop.permute.xlu2 %3657 }
 0x68f   : > { %3725 = vst.msk [vmem:[%s7138_s18 + $0xe0] sm:$0xff] %vm744_vm0, %v3658_v17 }
 0x698   : > { %v3660_v32 = vpop.permute.xlu0 %3659 }
 0x699   : > { %3726 = vst.msk [vmem:[%s7138_s18 + $0xe8] sm:$0xff] %vm744_vm0, %v3660_v32 }
 0x69e   : > { %v3662_v12 = vpop.permute.xlu1 %3661 }
 0x69f   : > { %3727 = vst.msk [vmem:[%s7138_s18 + $0xf0] sm:$0xff] %vm744_vm0, %v3662_v12 }
 0x6ad   : > { %v3664_v0 = vpop.permute.xlu2 %3663 }
 0x6ae   : > { %3728 = vst.msk [vmem:[%s7138_s18 + $0xf8] sm:$0xff] %vm744_vm0, %v3664_v0 }
 0x6af PF: > { %s7400_s16 = sld [smem:[#allocation9_spill]]  ;;  %s7403_s29 = smov %s4474_s30 }
 0x6b0   : > { %s7401_s13 = sld [smem:[#allocation8_spill]] }
 0x6b1   : > { %s7402_s15 = sld [smem:[#allocation10_spill]] }
 0x6b5   : > { %p27_p7 = scmp.ge.s32.totalorder %s7400_s16, 4  }
 0x6b6   : > { %s7404_s30 = smov %s7401_s13 }
 0x6b7   :  { %29 = sbr.rel (!%p27_p7) target bundleno = 11 (0xb), region = 132 }
 0x6bc   :  { %3751 = vsyncpa [#allocation3], 1 }
 0x6bd   :  { %3753 = vsyncpa [#allocation3 + $0x1], 1 }
 0x6be   :  { %3754 = vsyncpa [#allocation5], 1 }
 0x6bf   :  { %3756 = vsyncpa [#allocation5 + $0x1], 1 }

</bundles_post_ra>
